<compile_context>
chip_gen: v6e
topology: v6e:2x2x1
jax: 0.10.0
libtpu: 0.0.40
codegen_flags: <defaults>
</compile_context>

<pallas_src>
import numpy as np

import jax
import jax.numpy as jnp
from jax import lax
from jax.experimental import pallas as pl
from jax.experimental.pallas import tpu as pltpu

_NEG_SLOPE = 0.01  # torch.nn.LeakyReLU default negative_slope


# -----------------------------------------------------------------------------
# Host-side (one-time) weight preprocessing: conv -> exact dense matrix.
# -----------------------------------------------------------------------------
def _conv_as_dense(w, b, in_hw, stride, pad):
    """Lower a Conv2d (OIHW weight, NCHW activations) to a dense matmul.

    Returns (M, bias, out_hw) such that  y_flat = x_flat @ M + bias,
    where x_flat / y_flat use torch's NCHW flatten order (c*H*W + h*W + w).
    Exact reformulation: convolution is a linear operator.
    """
    w = np.asarray(w, dtype=np.float32)
    b = np.asarray(b, dtype=np.float32)
    cout, cin, kh, kw = w.shape
    H, W = in_hw
    oh_n = (H + 2 * pad - kh) // stride + 1
    ow_n = (W + 2 * pad - kw) // stride + 1

    M = np.zeros((cin * H * W, cout * oh_n * ow_n), dtype=np.float32)
    co, ci, ki, kj, oh, ow = np.meshgrid(
        np.arange(cout), np.arange(cin), np.arange(kh), np.arange(kw),
        np.arange(oh_n), np.arange(ow_n), indexing="ij")
    h_in = oh * stride + ki - pad
    w_in = ow * stride + kj - pad
    valid = (h_in >= 0) & (h_in < H) & (w_in >= 0) & (w_in < W)
    rows = (ci * H * W + h_in * W + w_in)[valid]
    cols = (co * (oh_n * ow_n) + oh * ow_n + ow)[valid]
    vals = np.broadcast_to(w[:, :, :, :, None, None], co.shape)[valid]
    M[rows, cols] = vals

    bias = np.repeat(b, oh_n * ow_n).astype(np.float32)
    return M, bias, (oh_n, ow_n)


def _pad2(a, rows, cols):
    a = np.asarray(a, np.float32)
    return np.pad(a, ((0, rows - a.shape[0]), (0, cols - a.shape[1])))


def _pad1(a, n):
    a = np.asarray(a, np.float32)
    return np.pad(a, ((0, n - a.shape[0]),))


def build_encoder_params(w1, b1, w2, b2, w3, b3, w4, b4, *,
                         weight_dtype=jnp.bfloat16):
    """Precompute the four dense (matrix, bias-row) pairs of Encoderv3.

    Matrices are zero-padded to lane multiples of 128 (exact) and stored in
    `weight_dtype` (bf16 by default, for native-MXU matmuls); biases stay f32.
    """
    m1, v1, hw1 = _conv_as_dense(w1, b1, (10, 10), stride=1, pad=1)  # (100, 800)
    m2, v2, hw2 = _conv_as_dense(w2, b2, hw1, stride=2, pad=1)       # (800, 576)
    m3, v3, hw3 = _conv_as_dense(w3, b3, hw2, stride=2, pad=1)       # (576, 512)
    assert hw3 == (4, 4) and m3.shape[1] == 512
    m4 = np.asarray(w4, np.float32).T                                # (512, 1024)
    v4 = np.asarray(b4, np.float32)

    rup = lambda n: ((n + 127) // 128) * 128
    d0, d1 = rup(m1.shape[0]), rup(m1.shape[1])   # 128, 896
    d2, d3 = rup(m2.shape[1]), rup(m3.shape[1])   # 640, 512
    d4 = rup(m4.shape[1])                         # 1024

    m1 = _pad2(m1, d0, d1); v1 = _pad1(v1, d1)
    m2 = _pad2(m2, d1, d2); v2 = _pad1(v2, d2)
    m3 = _pad2(m3, d2, d3); v3 = _pad1(v3, d3)
    m4 = _pad2(m4, d3, d4); v4 = _pad1(v4, d4)

    mats = tuple(jnp.asarray(m, dtype=weight_dtype) for m in (m1, m2, m3, m4))
    biases = tuple(jnp.asarray(v, jnp.float32)[None, :] for v in (v1, v2, v3, v4))
    return mats, biases


# -----------------------------------------------------------------------------
# Pallas kernel: whole Encoderv3 forward for one batch tile.
# -----------------------------------------------------------------------------
def _encoder_kernel(x_ref, m1_ref, v1_ref, m2_ref, v2_ref,
                    m3_ref, v3_ref, m4_ref, v4_ref, o_ref):
    def lrelu(h):
        return jnp.maximum(h, _NEG_SLOPE * h)

    # conv1 (as matmul): bf16 operands, f32 accumulation on the MXU.
    h = jnp.dot(x_ref[...].astype(m1_ref.dtype), m1_ref[...],
                preferred_element_type=jnp.float32)
    h = lrelu(h + v1_ref[...])
    # conv2
    h = jnp.dot(h.astype(m2_ref.dtype), m2_ref[...],
                preferred_element_type=jnp.float32)
    h = lrelu(h + v2_ref[...])
    # conv3
    h = jnp.dot(h.astype(m3_ref.dtype), m3_ref[...],
                preferred_element_type=jnp.float32)
    h = lrelu(h + v3_ref[...])
    # Flatten is implicit (activations already in torch NCHW-flatten order).
    # Linear(512, 1024)
    h = jnp.dot(h.astype(m4_ref.dtype), m4_ref[...],
                preferred_element_type=jnp.float32)
    o_ref[...] = (h + v4_ref[...]).astype(o_ref.dtype)


def _tile_plan(b, block_b):
    """Adaptive batch tiling: (padded_batch, tile_rows)."""
    rup = lambda v, m: ((v + m - 1) // m) * m
    if b <= 32:
        tb = max(8, rup(b, 8))          # one small sublane-rounded tile
        return tb, tb
    # >= 2 tiles so both v7x TensorCores get work; tiles capped at block_b and
    # sized to the batch so ragged batches don't pay for a full padded tile.
    n = max(2, -(-b // block_b))
    tb = rup(-(-b // n), 8)
    return n * tb, tb


def encoder_forward(x, mats, biases, *, block_b=256, out_dtype=jnp.float32,
                    vmem_limit_bytes=40 * 1024 * 1024):
    """Encoderv3 forward: x of shape (B, 100) (or any (B, ...) with 100 feats)."""
    m1, m2, m3, m4 = mats
    v1, v2, v3, v4 = biases
    b = x.shape[0]
    d_in = m1.shape[0]     # 128 (padded from 100)
    d_out = m4.shape[1]    # 1024

    x2 = x.reshape(b, -1).astype(jnp.float32)
    feat = x2.shape[1]
    assert feat <= d_in, f"expected <= {d_in} features, got {feat}"

    bp, tb = _tile_plan(b, block_b)
    x2 = jnp.pad(x2, ((0, bp - b), (0, d_in - feat)))   # zero pad: exact
    grid = (bp // tb,)

    def full_spec(a):
        # Whole-array block, constant index_map -> stays resident in VMEM.
        return pl.BlockSpec(a.shape, lambda i: (0, 0))

    d1, d2, d3 = m1.shape[1], m2.shape[1], m3.shape[1]
    flops = 2 * bp * (d_in * d1 + d1 * d2 + d2 * d3 + d3 * d_out)
    bytes_accessed = (bp * d_in * 4 + bp * d_out * jnp.dtype(out_dtype).itemsize
                      + sum(int(m.size) * m.dtype.itemsize for m in mats)
                      + sum(int(v.size) * 4 for v in biases))

    out = pl.pallas_call(
        _encoder_kernel,
        out_shape=jax.ShapeDtypeStruct((bp, d_out), out_dtype),
        grid=grid,
        in_specs=[
            pl.BlockSpec((tb, d_in), lambda i: (i, 0)),
            full_spec(m1), full_spec(v1),
            full_spec(m2), full_spec(v2),
            full_spec(m3), full_spec(v3),
            full_spec(m4), full_spec(v4),
        ],
        out_specs=pl.BlockSpec((tb, d_out), lambda i: (i, 0)),
        compiler_params=pltpu.CompilerParams(
            dimension_semantics=("parallel",),
            vmem_limit_bytes=vmem_limit_bytes),
        cost_estimate=pl.CostEstimate(flops=flops, transcendentals=0,
                                      bytes_accessed=int(bytes_accessed)),
    )(x2, m1, v1, m2, v2, m3, v3, m4, v4)
    return out[:b]


# -----------------------------------------------------------------------------
# References for validation.
# -----------------------------------------------------------------------------
def _ref_dense(x, mats, biases):
    """Mirrors the kernel math (bf16 operands, f32 accumulation) outside Pallas."""
    b = x.shape[0]
    h = x.reshape(b, -1).astype(jnp.float32)
    h = jnp.pad(h, ((0, 0), (0, mats[0].shape[0] - h.shape[1])))
    for i, (m, v) in enumerate(zip(mats, biases)):
        h = jnp.dot(h.astype(m.dtype), m, preferred_element_type=jnp.float32) + v
        if i < len(mats) - 1:
            h = jnp.maximum(h, _NEG_SLOPE * h)
    return h


def _ref_forward(x, w1, b1, w2, b2, w3, b3, w4, b4):
    """Op-for-op f32 mirror of the torch module."""
    B = x.shape[0]
    dn = ("NCHW", "OIHW", "NCHW")
    h = x.reshape(B, 1, 10, 10)
    h = lax.conv_general_dilated(h, w1, (1, 1), [(1, 1), (1, 1)],
                                 dimension_numbers=dn) + b1[None, :, None, None]
    h = jnp.where(h > 0, h, _NEG_SLOPE * h)
    h = lax.conv_general_dilated(h, w2, (2, 2), [(1, 1), (1, 1)],
                                 dimension_numbers=dn) + b2[None, :, None, None]
    h = jnp.where(h > 0, h, _NEG_SLOPE * h)
    h = lax.conv_general_dilated(h, w3, (2, 2), [(1, 1), (1, 1)],
                                 dimension_numbers=dn) + b3[None, :, None, None]
    h = jnp.where(h > 0, h, _NEG_SLOPE * h)
    h = h.reshape(B, -1)
    return h @ w4.T + b4[None, :]


if __name__ == "__main__":
    key = jax.random.PRNGKey(0)
    ks = jax.random.split(key, 9)

    batch = 2
    # Encoderv3 input: per-sample 100 features (Reshape((1, 10, 10))).
    x = jax.random.normal(ks[0], (batch, 100), dtype=jnp.float32)

    # Deterministic random parameters with PyTorch layouts.
    w1 = 0.20 * jax.random.normal(ks[1], (8, 1, 3, 3), jnp.float32)
    b1 = 0.10 * jax.random.normal(ks[2], (8,), jnp.float32)
    w2 = 0.20 * jax.random.normal(ks[3], (16, 8, 2, 2), jnp.float32)
    b2 = 0.10 * jax.random.normal(ks[4], (16,), jnp.float32)
    w3 = 0.20 * jax.random.normal(ks[5], (32, 16, 2, 2), jnp.float32)
    b3 = 0.10 * jax.random.normal(ks[6], (32,), jnp.float32)
    w4 = 0.05 * jax.random.normal(ks[7], (1024, 512), jnp.float32)
    b4 = 0.10 * jax.random.normal(ks[8], (1024,), jnp.float32)

    mats, biases = build_encoder_params(w1, b1, w2, b2, w3, b3, w4, b4)

    y = encoder_forward(x, mats, biases)
    y = jax.block_until_ready(y)
    assert y.shape == (batch, 1024), y.shape
    assert y.dtype == jnp.float32

    # 1) Kernel matches the same bf16-operand / f32-accumulate math done by XLA.
    ref_b = _ref_dense(x, mats, biases)
    err_b = float(jnp.max(jnp.abs(y - ref_b)))
    assert bool(jnp.allclose(y, ref_b, rtol=2e-3, atol=2e-3)), err_b

    # 2) Kernel matches the exact f32 torch-mirror forward within bf16 precision.
    ref_f = _ref_forward(x, w1, b1, w2, b2, w3, b3, w4, b4)
    err_f = float(jnp.max(jnp.abs(y - ref_f)))
    assert bool(jnp.allclose(y, ref_f, rtol=5e-2, atol=5e-2)), err_f

    print("KERNEL_OK")
</pallas_src>

<mosaic_0001>
module attributes {stable_mosaic.version = 11 : i64} {
  func.func @_encoder_kernel(%arg0: i32, %arg1: memref<8x128xf32, #tpu.memory_space<vmem>>, %arg2: memref<128x896xbf16, #tpu.memory_space<vmem>>, %arg3: memref<1x896xf32, #tpu.memory_space<vmem>>, %arg4: memref<896x640xbf16, #tpu.memory_space<vmem>>, %arg5: memref<1x640xf32, #tpu.memory_space<vmem>>, %arg6: memref<640x512xbf16, #tpu.memory_space<vmem>>, %arg7: memref<1x512xf32, #tpu.memory_space<vmem>>, %arg8: memref<512x1024xbf16, #tpu.memory_space<vmem>>, %arg9: memref<1x1024xf32, #tpu.memory_space<vmem>>, %arg10: memref<8x1024xf32, #tpu.memory_space<vmem>>) attributes {dimension_semantics = [#tpu.dimension_semantics<parallel>], iteration_bounds = array<i64: 1>, scalar_prefetch = 0 : i64, scratch_operands = 0 : i64, tpu.core_type = #tpu.core_type<tc>, window_params = [{transform_indices = @transform_0, window_bounds = array<i64: 8, 128>}, {pipeline_mode = #tpu.pipeline_mode<synchronous>, transform_indices = @transform_1, window_bounds = array<i64: 128, 896>}, {pipeline_mode = #tpu.pipeline_mode<synchronous>, transform_indices = @transform_2, window_bounds = array<i64: 1, 896>}, {pipeline_mode = #tpu.pipeline_mode<synchronous>, transform_indices = @transform_3, window_bounds = array<i64: 896, 640>}, {pipeline_mode = #tpu.pipeline_mode<synchronous>, transform_indices = @transform_4, window_bounds = array<i64: 1, 640>}, {pipeline_mode = #tpu.pipeline_mode<synchronous>, transform_indices = @transform_5, window_bounds = array<i64: 640, 512>}, {pipeline_mode = #tpu.pipeline_mode<synchronous>, transform_indices = @transform_6, window_bounds = array<i64: 1, 512>}, {pipeline_mode = #tpu.pipeline_mode<synchronous>, transform_indices = @transform_7, window_bounds = array<i64: 512, 1024>}, {pipeline_mode = #tpu.pipeline_mode<synchronous>, transform_indices = @transform_8, window_bounds = array<i64: 1, 1024>}, {transform_indices = @transform_9, window_bounds = array<i64: 8, 1024>}]} {
    %c0 = arith.constant 0 : index
    %c0_0 = arith.constant 0 : index
    %0 = vector.load %arg1[%c0, %c0_0] : memref<8x128xf32, #tpu.memory_space<vmem>>, vector<8x128xf32>
    %1 = arith.truncf %0 : vector<8x128xf32> to vector<8x128xbf16>
    %c0_1 = arith.constant 0 : index
    %c0_2 = arith.constant 0 : index
    %2 = vector.load %arg2[%c0_1, %c0_2] : memref<128x896xbf16, #tpu.memory_space<vmem>>, vector<128x896xbf16>
    %cst = arith.constant dense<0.000000e+00> : vector<8x896xf32>
    %3 = tpu.matmul %1, %2, %cst {dimension_numbers = #tpu.dot_dimension_numbers<[1], [0], [0], [1], [0, 0, 1, 1], [], []>} : vector<8x128xbf16>, vector<128x896xbf16>, vector<8x896xf32> -> vector<8x896xf32>
    %c0_3 = arith.constant 0 : index
    %c0_4 = arith.constant 0 : index
    %4 = vector.load %arg3[%c0_3, %c0_4] : memref<1x896xf32, #tpu.memory_space<vmem>>, vector<1x896xf32>
    %5 = vector.broadcast %4 : vector<1x896xf32> to vector<8x896xf32>
    %6 = arith.addf %3, %5 : vector<8x896xf32>
    %cst_5 = arith.constant 0.00999999977 : f32
    %7 = vector.broadcast %cst_5 : f32 to vector<8x896xf32>
    %8 = arith.mulf %7, %6 : vector<8x896xf32>
    %9 = arith.maximumf %6, %8 : vector<8x896xf32>
    %10 = arith.truncf %9 : vector<8x896xf32> to vector<8x896xbf16>
    %c0_6 = arith.constant 0 : index
    %c0_7 = arith.constant 0 : index
    %11 = vector.load %arg4[%c0_6, %c0_7] : memref<896x640xbf16, #tpu.memory_space<vmem>>, vector<896x640xbf16>
    %cst_8 = arith.constant dense<0.000000e+00> : vector<8x640xf32>
    %12 = tpu.matmul %10, %11, %cst_8 {dimension_numbers = #tpu.dot_dimension_numbers<[1], [0], [0], [1], [0, 0, 1, 1], [], []>} : vector<8x896xbf16>, vector<896x640xbf16>, vector<8x640xf32> -> vector<8x640xf32>
    %c0_9 = arith.constant 0 : index
    %c0_10 = arith.constant 0 : index
    %13 = vector.load %arg5[%c0_9, %c0_10] : memref<1x640xf32, #tpu.memory_space<vmem>>, vector<1x640xf32>
    %14 = vector.broadcast %13 : vector<1x640xf32> to vector<8x640xf32>
    %15 = arith.addf %12, %14 : vector<8x640xf32>
    %cst_11 = arith.constant 0.00999999977 : f32
    %16 = vector.broadcast %cst_11 : f32 to vector<8x640xf32>
    %17 = arith.mulf %16, %15 : vector<8x640xf32>
    %18 = arith.maximumf %15, %17 : vector<8x640xf32>
    %19 = arith.truncf %18 : vector<8x640xf32> to vector<8x640xbf16>
    %c0_12 = arith.constant 0 : index
    %c0_13 = arith.constant 0 : index
    %20 = vector.load %arg6[%c0_12, %c0_13] : memref<640x512xbf16, #tpu.memory_space<vmem>>, vector<640x512xbf16>
    %cst_14 = arith.constant dense<0.000000e+00> : vector<8x512xf32>
    %21 = tpu.matmul %19, %20, %cst_14 {dimension_numbers = #tpu.dot_dimension_numbers<[1], [0], [0], [1], [0, 0, 1, 1], [], []>} : vector<8x640xbf16>, vector<640x512xbf16>, vector<8x512xf32> -> vector<8x512xf32>
    %c0_15 = arith.constant 0 : index
    %c0_16 = arith.constant 0 : index
    %22 = vector.load %arg7[%c0_15, %c0_16] : memref<1x512xf32, #tpu.memory_space<vmem>>, vector<1x512xf32>
    %23 = vector.broadcast %22 : vector<1x512xf32> to vector<8x512xf32>
    %24 = arith.addf %21, %23 : vector<8x512xf32>
    %cst_17 = arith.constant 0.00999999977 : f32
    %25 = vector.broadcast %cst_17 : f32 to vector<8x512xf32>
    %26 = arith.mulf %25, %24 : vector<8x512xf32>
    %27 = arith.maximumf %24, %26 : vector<8x512xf32>
    %28 = arith.truncf %27 : vector<8x512xf32> to vector<8x512xbf16>
    %c0_18 = arith.constant 0 : index
    %c0_19 = arith.constant 0 : index
    %29 = vector.load %arg8[%c0_18, %c0_19] : memref<512x1024xbf16, #tpu.memory_space<vmem>>, vector<512x1024xbf16>
    %cst_20 = arith.constant dense<0.000000e+00> : vector<8x1024xf32>
    %30 = tpu.matmul %28, %29, %cst_20 {dimension_numbers = #tpu.dot_dimension_numbers<[1], [0], [0], [1], [0, 0, 1, 1], [], []>} : vector<8x512xbf16>, vector<512x1024xbf16>, vector<8x1024xf32> -> vector<8x1024xf32>
    %c0_21 = arith.constant 0 : index
    %c0_22 = arith.constant 0 : index
    %31 = vector.load %arg9[%c0_21, %c0_22] : memref<1x1024xf32, #tpu.memory_space<vmem>>, vector<1x1024xf32>
    %32 = vector.broadcast %31 : vector<1x1024xf32> to vector<8x1024xf32>
    %33 = arith.addf %30, %32 : vector<8x1024xf32>
    %c0_23 = arith.constant 0 : index
    %c0_24 = arith.constant 0 : index
    %34 = vector.load %arg10[%c0_23, %c0_24] : memref<8x1024xf32, #tpu.memory_space<vmem>>, vector<8x1024xf32>
    tpu.vector_store %arg10[%c0_23, %c0_24], %33 {strides = array<i32>} : memref<8x1024xf32, #tpu.memory_space<vmem>>, vector<8x1024xf32>,
    return
  }
  func.func @transform_0(%arg0: i32) -> (i32, i32) {
    %c0_i32 = arith.constant 0 : i32
    %c0_i32_0 = arith.constant 0 : i32
    return %arg0, %c0_i32 : i32, i32
  }
  func.func @transform_1(%arg0: i32) -> (i32, i32) {
    %c0_i32 = arith.constant 0 : i32
    %c0_i32_0 = arith.constant 0 : i32
    %c0_i32_1 = arith.constant 0 : i32
    return %c0_i32, %c0_i32_0 : i32, i32
  }
  func.func @transform_2(%arg0: i32) -> (i32, i32) {
    %c0_i32 = arith.constant 0 : i32
    %c0_i32_0 = arith.constant 0 : i32
    %c0_i32_1 = arith.constant 0 : i32
    return %c0_i32, %c0_i32_0 : i32, i32
  }
  func.func @transform_3(%arg0: i32) -> (i32, i32) {
    %c0_i32 = arith.constant 0 : i32
    %c0_i32_0 = arith.constant 0 : i32
    %c0_i32_1 = arith.constant 0 : i32
    return %c0_i32, %c0_i32_0 : i32, i32
  }
  func.func @transform_4(%arg0: i32) -> (i32, i32) {
    %c0_i32 = arith.constant 0 : i32
    %c0_i32_0 = arith.constant 0 : i32
    %c0_i32_1 = arith.constant 0 : i32
    return %c0_i32, %c0_i32_0 : i32, i32
  }
  func.func @transform_5(%arg0: i32) -> (i32, i32) {
    %c0_i32 = arith.constant 0 : i32
    %c0_i32_0 = arith.constant 0 : i32
    %c0_i32_1 = arith.constant 0 : i32
    return %c0_i32, %c0_i32_0 : i32, i32
  }
  func.func @transform_6(%arg0: i32) -> (i32, i32) {
    %c0_i32 = arith.constant 0 : i32
    %c0_i32_0 = arith.constant 0 : i32
    %c0_i32_1 = arith.constant 0 : i32
    return %c0_i32, %c0_i32_0 : i32, i32
  }
  func.func @transform_7(%arg0: i32) -> (i32, i32) {
    %c0_i32 = arith.constant 0 : i32
    %c0_i32_0 = arith.constant 0 : i32
    %c0_i32_1 = arith.constant 0 : i32
    return %c0_i32, %c0_i32_0 : i32, i32
  }
  func.func @transform_8(%arg0: i32) -> (i32, i32) {
    %c0_i32 = arith.constant 0 : i32
    %c0_i32_0 = arith.constant 0 : i32
    %c0_i32_1 = arith.constant 0 : i32
    return %c0_i32, %c0_i32_0 : i32, i32
  }
  func.func @transform_9(%arg0: i32) -> (i32, i32) {
    %c0_i32 = arith.constant 0 : i32
    %c0_i32_0 = arith.constant 0 : i32
    return %arg0, %c0_i32 : i32, i32
  }
}

</mosaic_0001>

<bundles_post_ra>
// kernel: tpu_custom_call.1
= control target key start
LH: loop header
LB: loop body
LE: loop exit
PB: predicated region body
PF: predicated region fallthrough
CT: control target
= control target key end

     0   :  { %14 = vsyncpa [#allocation3], 0  ;;  %s8383_s0 = inlined_call_operand.hbm [shape: f32[8,128], index: 0, kind: input, shape index: {}]   ;;  %s8384_s1 = inlined_call_operand.hbm [shape: bf16[128,896], index: 1, kind: input, shape index: {}]   ;;  %s8385_s2 = inlined_call_operand.hbm [shape: f32[1,896], index: 2, kind: input, shape index: {}]   ;;  %s8386_s3 = inlined_call_operand.hbm [shape: bf16[896,640], index: 3, kind: input, shape index: {}]   ;;  %s8387_s4 = inlined_call_operand.hbm [shape: f32[1,640], index: 4, kind: input, shape index: {}]   ;;  %s8388_s5 = inlined_call_operand.hbm [shape: bf16[640,512], index: 5, kind: input, shape index: {}]   ;;  %s8389_s6 = inlined_call_operand.hbm [shape: f32[1,512], index: 6, kind: input, shape index: {}]   ;;  %s8390_s7 = inlined_call_operand.hbm [shape: bf16[512,1024], index: 7, kind: input, shape index: {}]   ;;  %s8391_s8 = inlined_call_operand.hbm [shape: f32[1,1024], index: 8, kind: input, shape index: {}]   ;;  %s8392_s9 = inlined_call_operand.hbm [shape: f32[8,1024], index: 9, kind: output, shape index: {}]  }
   0x1   :  { %15 = vsyncpa [#allocation6], 0 }
   0x2   :  { %16 = vsyncpa [#allocation9], 0 }
   0x3   :  { %17 = vsyncpa [#allocation12], 0 }
   0x4   :  { %18 = vsyncpa [#allocation15], 0 }
   0x5   :  { %19 = vsyncpa [#allocation4], 0  ;;  %s8037_s30 = smov [#allocation5]  }
   0x6   :  { %s35_s10 = sshll.u32 %s8037_s30, 4  ;;  %s36_s10 = int_to_ptr.vmem [resolvable:$true] %s35_s10 }
   0x7   :  { %s7833_s11 = scalar_lea.vmem %s36_s10, 7168  ;;  %p7838_p1 = scmp.lt.s32.totalorder %s36_s10, %s36_s10 }
   0x8   :  { %p7834_p0 = scmp.ne.s32.totalorder %s36_s10, %s7833_s11  ;;  %p7839_p2 = scmp.lt.s32.totalorder %s7833_s11, %s7833_s11 }
   0xa   :  { %p7840_p3 = por %p7839_p2, %p7838_p1 }
   0xc   :  { %p7841_p4 = pnand %p7840_p3, %p7834_p0 }
   0xe   :  { %7844 = shalt.err (!%p7841_p4)
}
   0xf   :  { %s8038_s12 = smov 448   ;;  %s8039_s13 = smov 28  }
  0x10   :  { %41 = dma.hbm_to_vmem [thread:$0]  %s8384_s1, 7168, %s36_s10, [#allocation6], %s8038_s12, %s8038_s12, %s8039_s13  }
  0x11   :  { %s8040_s16 = smov [#allocation8]  }
  0x12   :  { %s57_s17 = sshll.u32 %s8040_s16, 4  ;;  %s58_s17 = int_to_ptr.vmem [resolvable:$true] %s57_s17 }
  0x13   :  { %s7853_s18 = scalar_lea.vmem %s58_s17, 35840  ;;  %p7858_p6 = scmp.lt.s32.totalorder %s58_s17, %s58_s17 }
  0x14   :  { %p7854_p5 = scmp.ne.s32.totalorder %s58_s17, %s7853_s18  ;;  %p7859_p7 = scmp.lt.s32.totalorder %s7853_s18, %s7853_s18 }
  0x16   :  { %p7860_p8 = por %p7859_p7, %p7858_p6 }
  0x18   :  { %p7861_p9 = pnand %p7860_p8, %p7854_p5 }
  0x1a   :  { %7864 = shalt.err (!%p7861_p9)
}
  0x1b   :  { %s8041_s19 = smov 320   ;;  %s8042_s20 = smov 20  }
  0x1c   :  { %63 = dma.hbm_to_vmem [thread:$0]  %s8386_s3, 35840, %s58_s17, [#allocation9], %s8041_s19, %s8041_s19, %s8042_s20  }
  0x1d   :  { %s8043_s23 = smov [#allocation11]  }
  0x1e   :  { %s79_s24 = sshll.u32 %s8043_s23, 4  ;;  %s80_s24 = int_to_ptr.vmem [resolvable:$true] %s79_s24 }
  0x1f   :  { %s7873_s1 = scalar_lea.vmem %s80_s24, 20480  ;;  %p7878_p11 = scmp.lt.s32.totalorder %s80_s24, %s80_s24 }
  0x20   :  { %p7874_p10 = scmp.ne.s32.totalorder %s80_s24, %s7873_s1  ;;  %p7879_p12 = scmp.lt.s32.totalorder %s7873_s1, %s7873_s1 }
  0x22   :  { %p7880_p13 = por %p7879_p12, %p7878_p11 }
  0x24   :  { %p7881_p0 = pnand %p7880_p13, %p7874_p10 }
  0x26   :  { %7884 = shalt.err (!%p7881_p0)
}
  0x27   :  { %s8044_s25 = smov 256   ;;  %s8045_s26 = smov 16  }
  0x28   :  { %85 = dma.hbm_to_vmem [thread:$0]  %s8388_s5, 20480, %s80_s24, [#allocation12], %s8044_s25, %s8044_s25, %s8045_s26  }
  0x29   :  { %s8046_s29 = smov [#allocation14]  }
  0x2a   :  { %s101_s30 = sshll.u32 %s8046_s29, 4  ;;  %s102_s30 = int_to_ptr.vmem [resolvable:$true] %s101_s30 }
  0x2b   :  { %s7893_s3 = scalar_lea.vmem %s102_s30, 32768  ;;  %p7898_p2 = scmp.lt.s32.totalorder %s102_s30, %s102_s30 }
  0x2c   :  { %p7894_p1 = scmp.ne.s32.totalorder %s102_s30, %s7893_s3  ;;  %p7899_p3 = scmp.lt.s32.totalorder %s7893_s3, %s7893_s3 }
  0x2e   :  { %p7900_p4 = por %p7899_p3, %p7898_p2 }
  0x30   :  { %p7901_p5 = pnand %p7900_p4, %p7894_p1 }
  0x32   :  { %7904 = shalt.err (!%p7901_p5)
}
  0x33   :  { %s8047_s10 = smov 512   ;;  %s8048_s11 = smov 32  }
  0x34   :  { %107 = dma.hbm_to_vmem [thread:$0]  %s8390_s7, 32768, %s102_s30, [#allocation15], %s8047_s10, %s8047_s10, %s8048_s11  }
  0x35   :  { %s8049_s14 = smov [#allocation2]   ;;  %s8050_s16 = smov [#allocation7]  }
  0x36   :  { %s26_s15 = sshll.u32 %s8049_s14, 4  ;;  %s48_s5 = sshll.u32 %s8050_s16, 4  ;;  %s27_s15 = int_to_ptr.vmem [resolvable:$true] %s26_s15  ;;  %s49_s5 = int_to_ptr.vmem [resolvable:$true] %s48_s5 }
  0x37   :  { %s7913_s17 = scalar_lea.vmem %s27_s15, 128  ;;  %p7918_p7 = scmp.lt.s32.totalorder %s27_s15, %s27_s15 }
  0x38   :  { %p7914_p6 = scmp.ne.s32.totalorder %s27_s15, %s7913_s17  ;;  %p7919_p8 = scmp.lt.s32.totalorder %s7913_s17, %s7913_s17 }
  0x3a   :  { %p7920_p9 = por %p7919_p8, %p7918_p7 }
  0x3c   :  { %p7921_p10 = pnand %p7920_p9, %p7914_p6 }
  0x3e   :  { %7924 = shalt.err (!%p7921_p10)
}
  0x3f   :  { %29 = dma.hbm_to_vmem [thread:$0]  %s8383_s0, 128, %s27_s15, [#allocation3]  }
  0x40   :  { %s7933_s20 = scalar_lea.vmem %s49_s5, 112  ;;  %s7937_s7 = scalar_lea.vmem %s49_s5, 128 }
  0x41   :  { %p7934_p11 = scmp.ne.s32.totalorder %s49_s5, %s7933_s20  ;;  %p7938_p12 = scmp.lt.s32.totalorder %s49_s5, %s49_s5 }
  0x42   :  { %p7939_p13 = scmp.lt.s32.totalorder %s7937_s7, %s7933_s20 }
  0x44   :  { %p7940_p0 = por %p7939_p13, %p7938_p12 }
  0x46   :  { %p7941_p1 = pnand %p7940_p0, %p7934_p11 }
  0x48   :  { %7944 = shalt.err (!%p7941_p1)
}
  0x49   :  { %51 = dma.hbm_to_vmem [thread:$0]  %s8385_s2, 112, %s49_s5, [#allocation6]  }
  0x4a   :  { %s8051_s23 = smov [#allocation10]   ;;  %s8052_s1 = smov [#allocation13]  }
  0x4b   :  { %s70_s24 = sshll.u32 %s8051_s23, 4  ;;  %s92_s25 = sshll.u32 %s8052_s1, 4  ;;  %s71_s24 = int_to_ptr.vmem [resolvable:$true] %s70_s24  ;;  %s93_s25 = int_to_ptr.vmem [resolvable:$true] %s92_s25 }
  0x4c   :  { %s7953_s26 = scalar_lea.vmem %s71_s24, 80  ;;  %s7957_s0 = scalar_lea.vmem %s71_s24, 96 }
  0x4d   :  { %p7954_p2 = scmp.ne.s32.totalorder %s71_s24, %s7953_s26  ;;  %p7958_p3 = scmp.lt.s32.totalorder %s71_s24, %s71_s24 }
  0x4e   :  { %p7959_p4 = scmp.lt.s32.totalorder %s7957_s0, %s7953_s26 }
  0x50   :  { %p7960_p5 = por %p7959_p4, %p7958_p3 }
  0x52   :  { %p7961_p6 = pnand %p7960_p5, %p7954_p2 }
  0x54   :  { %7964 = shalt.err (!%p7961_p6)
}
  0x55   :  { %73 = dma.hbm_to_vmem [thread:$0]  %s8387_s4, 80, %s71_s24, [#allocation9]  }
  0x56   :  { %s7973_s29 = scalar_lea.vmem %s93_s25, 64  ;;  %p7978_p8 = scmp.lt.s32.totalorder %s93_s25, %s93_s25 }
  0x57   :  { %p7974_p7 = scmp.ne.s32.totalorder %s93_s25, %s7973_s29  ;;  %p7979_p9 = scmp.lt.s32.totalorder %s7973_s29, %s7973_s29 }
  0x59   :  { %p7980_p10 = por %p7979_p9, %p7978_p8 }
  0x5b   :  { %p7981_p11 = pnand %p7980_p10, %p7974_p7 }
  0x5d   :  { %7984 = shalt.err (!%p7981_p11)
}
  0x5e   :  { %95 = dma.hbm_to_vmem [thread:$0]  %s8389_s6, 64, %s93_s25, [#allocation12]  }
  0x5f   :  { %s8053_s3 = smov [#allocation16]  }
  0x60   :  { %s114_s10 = sshll.u32 %s8053_s3, 4  ;;  %s115_s10 = int_to_ptr.vmem [resolvable:$true] %s114_s10 }
  0x61   :  { %s7993_s11 = scalar_lea.vmem %s115_s10, 128  ;;  %p7998_p13 = scmp.lt.s32.totalorder %s115_s10, %s115_s10 }
  0x62   :  { %p7994_p12 = scmp.ne.s32.totalorder %s115_s10, %s7993_s11  ;;  %p7999_p0 = scmp.lt.s32.totalorder %s7993_s11, %s7993_s11 }
  0x64   :  { %p8000_p1 = por %p7999_p0, %p7998_p13 }
  0x66   :  { %p8001_p2 = pnand %p8000_p1, %p7994_p12 }
  0x68   :  { %8004 = shalt.err (!%p8001_p2)
}
  0x69   :  { %117 = dma.hbm_to_vmem [thread:$0]  %s8391_s8, 128, %s115_s10, [#allocation15]  }
  0x6a   :  { %8025 = dma.done.wait [#allocation3], 128  }
  0x6b   :  { %8026 = vsyncadd [#allocation3], 4294967168 }
  0x6c   :  { %8027 = dma.done.wait [#allocation6], 7280  }
  0x6d   :  { %8028 = vsyncadd [#allocation6], 4294960016 }
  0x6e   :  { %8029 = dma.done.wait [#allocation9], 35920  }
  0x6f   :  { %8030 = vsyncadd [#allocation9], 4294931376 }
  0x70   :  { %8031 = dma.done.wait [#allocation12], 20544  }
  0x71   :  { %8032 = vsyncadd [#allocation12], 4294946752 }
  0x72   :  { %8033 = dma.done.wait [#allocation15], 32896  }
  0x73   :  { %8034 = vsyncadd [#allocation15], 4294934400  ;;  %v8054_v0 = vmov 0   ;;  %v7113_v1 = vld [vmem:[#allocation5 + $0x18c] ss:$28 sps:$4 sm:$0xff]   ;;  %v146_v33 = vld [vmem:[#allocation2] sm:$0xff] }
  0x74   :  { %569 = vmatprep.mubr.bf16.mxu0 %v8054_v0  ;;  %610 = vmatprep.mubr.bf16.mxu1 %v8054_v0  ;;  %v7115_v2 = vld [vmem:[#allocation5 + $0x194] ss:$28 sps:$4 sm:$0xff]   ;;  %v7117_v3 = vld [vmem:[#allocation5 + $0x188] ss:$28 sps:$4 sm:$0xff]   ;;  %v7121_v6 = vld [vmem:[#allocation5 + $0x15c] ss:$28 sps:$4 sm:$0xff]   ;;  %v8137_v35 = vpack.c.bf16 %v146_v33, %v146_v33 }
  0x75   :  { %537 = vmatprep.subr.bf16.mxu0 %v7113_v1  ;;  %v7118_v4 = vld [vmem:[#allocation5 + $0x190] ss:$28 sps:$4 sm:$0xff]   ;;  %578 = vmatprep.subr.bf16.mxu1 %v7115_v2  ;;  %v7124_v8 = vld [vmem:[#allocation5 + $0x158] ss:$28 sps:$4 sm:$0xff]   ;;  %v7127_v10 = vld [vmem:[#allocation5 + $0x124] ss:$28 sps:$4 sm:$0xff]  }
  0x76   :  { %v7119_v5 = vld [vmem:[#allocation5 + $0x154] ss:$28 sps:$4 sm:$0xff]   ;;  %538 = vmatpush1.bf16.msra.mxu0 %v7117_v3  ;;  %579 = vmatpush1.bf16.msra.mxu1 %v7118_v4  ;;  %v7125_v9 = vld [vmem:[#allocation5 + $0x11c] ss:$28 sps:$4 sm:$0xff]   ;;  %v7131_v13 = vld [vmem:[#allocation5 + $0xe4] ss:$28 sps:$4 sm:$0xff]  }
  0x77   :  { %v7123_v7 = vld [vmem:[#allocation5 + $0x150] ss:$28 sps:$4 sm:$0xff]   ;;  %539 = vmatprep.subr.bf16.mxu0 %v7119_v5  ;;  %580 = vmatprep.subr.bf16.mxu1 %v7121_v6  ;;  %v7129_v11 = vld [vmem:[#allocation5 + $0x118] ss:$28 sps:$4 sm:$0xff]   ;;  %v7130_v12 = vld [vmem:[#allocation5 + $0x120] ss:$28 sps:$4 sm:$0xff]  }
  0x78   :  { %v7133_v14 = vld [vmem:[#allocation5 + $0xec] ss:$28 sps:$4 sm:$0xff]   ;;  %v7135_v15 = vld [vmem:[#allocation5 + $0xe0] ss:$28 sps:$4 sm:$0xff]   ;;  %v7139_v18 = vld [vmem:[#allocation5 + $0xb4] ss:$28 sps:$4 sm:$0xff]  }
  0x79   :  { %v7136_v16 = vld [vmem:[#allocation5 + $0xe8] ss:$28 sps:$4 sm:$0xff]   ;;  %v7142_v20 = vld [vmem:[#allocation5 + $0xb0] ss:$28 sps:$4 sm:$0xff]   ;;  %v7145_v22 = vld [vmem:[#allocation5 + $0x7c] ss:$28 sps:$4 sm:$0xff]  }
  0x7a   :  { %540 = vmatpush1.bf16.msra.mxu0 %v7123_v7  ;;  %581 = vmatpush1.bf16.msra.mxu1 %v7124_v8  ;;  %v7137_v17 = vld [vmem:[#allocation5 + $0xac] ss:$28 sps:$4 sm:$0xff]   ;;  %v7143_v21 = vld [vmem:[#allocation5 + $0x74] ss:$28 sps:$4 sm:$0xff]   ;;  %v7149_v25 = vld [vmem:[#allocation5 + $0x3c] ss:$28 sps:$4 sm:$0xff]  }
  0x7b   :  { %541 = vmatprep.subr.bf16.mxu0 %v7125_v9  ;;  %582 = vmatprep.subr.bf16.mxu1 %v7127_v10  ;;  %v7141_v19 = vld [vmem:[#allocation5 + $0xa8] ss:$28 sps:$4 sm:$0xff]   ;;  %v7147_v23 = vld [vmem:[#allocation5 + $0x70] ss:$28 sps:$4 sm:$0xff]   ;;  %v7148_v24 = vld [vmem:[#allocation5 + $0x78] ss:$28 sps:$4 sm:$0xff]  }
  0x7c   :  { %v7151_v26 = vld [vmem:[#allocation5 + $0x44] ss:$28 sps:$4 sm:$0xff]   ;;  %v7153_v27 = vld [vmem:[#allocation5 + $0x38] ss:$28 sps:$4 sm:$0xff]   ;;  %v7157_v30 = vld [vmem:[#allocation5 + $0xc] ss:$28 sps:$4 sm:$0xff]  }
  0x7d   :  { %v7154_v28 = vld [vmem:[#allocation5 + $0x40] ss:$28 sps:$4 sm:$0xff]   ;;  %v7160_v32 = vld [vmem:[#allocation5 + $0x8] ss:$28 sps:$4 sm:$0xff]   ;;  %v7167_v37 = vld [vmem:[#allocation5 + $0x198] ss:$28 sps:$4 sm:$0xff]  }
  0x7e   :  { %542 = vmatpush1.bf16.msra.mxu0 %v7129_v11  ;;  %583 = vmatpush1.bf16.msra.mxu1 %v7130_v12  ;;  %v7155_v29 = vld [vmem:[#allocation5 + $0x4] ss:$28 sps:$4 sm:$0xff]   ;;  %v7169_v34 = vld [vmem:[#allocation5 + $0x19c] ss:$28 sps:$4 sm:$0xff]   ;;  %v8055_v38 = vmov 0.0   ;;  %vm8056_vm0 = vmmov 0  }
  0x7f   :  { %543 = vmatprep.subr.bf16.mxu0 %v7131_v13  ;;  %584 = vmatprep.subr.bf16.mxu1 %v7133_v14  ;;  %v7159_v31 = vld [vmem:[#allocation5] ss:$28 sps:$4 sm:$0xff]   ;;  %v7162_v40 = vld [vmem:[#allocation5 + $0x168] ss:$28 sps:$4 sm:$0xff]   ;;  %v7163_v43 = vld [vmem:[#allocation5 + $0x130] ss:$28 sps:$4 sm:$0xff]  }
  0x80   :  { %v7161_v36 = vld [vmem:[#allocation5 + $0x1a0] ss:$28 sps:$4 sm:$0xff]   ;;  %v7177_v42 = vld [vmem:[#allocation5 + $0x12c] ss:$28 sps:$4 sm:$0xff]   ;;  %v7180_v45 = vld [vmem:[#allocation5 + $0xf4] ss:$28 sps:$4 sm:$0xff]  }
  0x81   :  { %v7173_v39 = vld [vmem:[#allocation5 + $0x164] ss:$28 sps:$4 sm:$0xff]   ;;  %v7164_v46 = vld [vmem:[#allocation5 + $0xf8] ss:$28 sps:$4 sm:$0xff]   ;;  %v7178_v47 = vld [vmem:[#allocation5 + $0xf0] ss:$28 sps:$4 sm:$0xff]  }
  0x82   :  { %544 = vmatpush1.bf16.msra.mxu0 %v7135_v15  ;;  %585 = vmatpush1.bf16.msra.mxu1 %v7136_v16  ;;  %v7171_v41 = vld [vmem:[#allocation5 + $0x160] ss:$28 sps:$4 sm:$0xff]   ;;  %v7175_v44 = vld [vmem:[#allocation5 + $0x128] ss:$28 sps:$4 sm:$0xff]   ;;  %v7181_v50 = vld [vmem:[#allocation5 + $0xb8] ss:$28 sps:$4 sm:$0xff]  }
  0x83   :  { %545 = vmatprep.subr.bf16.mxu0 %v7137_v17  ;;  %586 = vmatprep.subr.bf16.mxu1 %v7139_v18  ;;  %v7183_v48 = vld [vmem:[#allocation5 + $0xbc] ss:$28 sps:$4 sm:$0xff]   ;;  %v7186_v51 = vld [vmem:[#allocation5 + $0x84] ss:$28 sps:$4 sm:$0xff]   ;;  %v7189_v54 = vld [vmem:[#allocation5 + $0x4c] ss:$28 sps:$4 sm:$0xff]  }
  0x84   :  { %v7165_v49 = vld [vmem:[#allocation5 + $0xc0] ss:$28 sps:$4 sm:$0xff]   ;;  %v7166_v52 = vld [vmem:[#allocation5 + $0x88] ss:$28 sps:$4 sm:$0xff]   ;;  %v7170_v55 = vld [vmem:[#allocation5 + $0x50] ss:$28 sps:$4 sm:$0xff]  }
  0x85   :  { %v7184_v53 = vld [vmem:[#allocation5 + $0x80] ss:$28 sps:$4 sm:$0xff]   ;;  %v7187_v56 = vld [vmem:[#allocation5 + $0x48] ss:$28 sps:$4 sm:$0xff]   ;;  %v7192_v57 = vld [vmem:[#allocation5 + $0x14] ss:$28 sps:$4 sm:$0xff]  }
  0x86   :  { %546 = vmatpush1.bf16.msra.mxu0 %v7141_v19  ;;  %587 = vmatpush1.bf16.msra.mxu1 %v7142_v20  ;;  %v7174_v58 = vld [vmem:[#allocation5 + $0x18] ss:$28 sps:$4 sm:$0xff]   ;;  %v7190_v59 = vld [vmem:[#allocation5 + $0x10] ss:$28 sps:$4 sm:$0xff]   ;;  %v7211_v11 = vld [vmem:[#allocation8 + $0xa0] ss:$20 sps:$4 sm:$0xff]  }
  0x87   :  { %547 = vmatprep.subr.bf16.mxu0 %v7143_v21  ;;  %588 = vmatprep.subr.bf16.mxu1 %v7145_v22  ;;  %v7195_v60 = vld [vmem:[#allocation8 + $0x11c] ss:$20 sps:$4 sm:$0xff]   ;;  %v7193_v62 = vld [vmem:[#allocation8 + $0x118] ss:$20 sps:$4 sm:$0xff]   ;;  %v7201_v1 = vld [vmem:[#allocation8 + $0xf4] ss:$20 sps:$4 sm:$0xff]  }
  0x88   :  { %v7198_v61 = vld [vmem:[#allocation8 + $0x39c] ss:$20 sps:$4 sm:$0xff]   ;;  %v7196_v63 = vld [vmem:[#allocation8 + $0x398] ss:$20 sps:$4 sm:$0xff]   ;;  %v7204_v2 = vld [vmem:[#allocation8 + $0x374] ss:$20 sps:$4 sm:$0xff]  }
  0x89   :  { %v7199_v3 = vld [vmem:[#allocation8 + $0xf0] ss:$20 sps:$4 sm:$0xff]   ;;  %v7207_v5 = vld [vmem:[#allocation8 + $0xcc] ss:$20 sps:$4 sm:$0xff]   ;;  %v7205_v7 = vld [vmem:[#allocation8 + $0xc8] ss:$20 sps:$4 sm:$0xff]  }
  0x8a   :  { %548 = vmatpush1.bf16.msra.mxu0 %v7147_v23  ;;  %589 = vmatpush1.bf16.msra.mxu1 %v7148_v24  ;;  %v7202_v4 = vld [vmem:[#allocation8 + $0x370] ss:$20 sps:$4 sm:$0xff]   ;;  %v7210_v6 = vld [vmem:[#allocation8 + $0x34c] ss:$20 sps:$4 sm:$0xff]   ;;  %v7208_v8 = vld [vmem:[#allocation8 + $0x348] ss:$20 sps:$4 sm:$0xff]  }
  0x8b   :  { %549 = vmatprep.subr.bf16.mxu0 %v7149_v25  ;;  %590 = vmatprep.subr.bf16.mxu1 %v7151_v26  ;;  %v7213_v9 = vld [vmem:[#allocation8 + $0xa4] ss:$20 sps:$4 sm:$0xff]   ;;  %v7214_v12 = vld [vmem:[#allocation8 + $0x320] ss:$20 sps:$4 sm:$0xff]   ;;  %v7219_v13 = vld [vmem:[#allocation8 + $0x7c] ss:$20 sps:$4 sm:$0xff]  }
  0x8c   :  { %v7216_v10 = vld [vmem:[#allocation8 + $0x324] ss:$20 sps:$4 sm:$0xff]   ;;  %v7222_v14 = vld [vmem:[#allocation8 + $0x2fc] ss:$20 sps:$4 sm:$0xff]   ;;  %v7225_v17 = vld [vmem:[#allocation8 + $0x54] ss:$20 sps:$4 sm:$0xff]  }
  0x8d   :  { %v7217_v15 = vld [vmem:[#allocation8 + $0x78] ss:$20 sps:$4 sm:$0xff]   ;;  %v7228_v18 = vld [vmem:[#allocation8 + $0x2d4] ss:$20 sps:$4 sm:$0xff]   ;;  %v7223_v19 = vld [vmem:[#allocation8 + $0x50] ss:$20 sps:$4 sm:$0xff]  }
  0x8e   :  { %550 = vmatpush1.bf16.msra.mxu0 %v7153_v27  ;;  %591 = vmatpush1.bf16.msra.mxu1 %v7154_v28  ;;  %v7220_v16 = vld [vmem:[#allocation8 + $0x2f8] ss:$20 sps:$4 sm:$0xff]   ;;  %v7226_v20 = vld [vmem:[#allocation8 + $0x2d0] ss:$20 sps:$4 sm:$0xff]   ;;  %v7229_v23 = vld [vmem:[#allocation8 + $0x28] ss:$20 sps:$4 sm:$0xff]  }
  0x8f   :  { %551 = vmatprep.subr.bf16.mxu0 %v7155_v29  ;;  %592 = vmatprep.subr.bf16.mxu1 %v7157_v30  ;;  %v7231_v21 = vld [vmem:[#allocation8 + $0x2c] ss:$20 sps:$4 sm:$0xff]   ;;  %v7232_v24 = vld [vmem:[#allocation8 + $0x2a8] ss:$20 sps:$4 sm:$0xff]   ;;  %v7237_v25 = vld [vmem:[#allocation8 + $0x4] ss:$20 sps:$4 sm:$0xff]  }
  0x90   :  { %v7234_v22 = vld [vmem:[#allocation8 + $0x2ac] ss:$20 sps:$4 sm:$0xff]   ;;  %v7240_v26 = vld [vmem:[#allocation8 + $0x284] ss:$20 sps:$4 sm:$0xff]   ;;  %v7243_v29 = vld [vmem:[#allocation8 + $0x25c] ss:$20 sps:$4 sm:$0xff]  }
  0x91   :  { %v7235_v27 = vld [vmem:[#allocation8] ss:$20 sps:$4 sm:$0xff]   ;;  %v7246_v30 = vld [vmem:[#allocation8 + $0x4dc] ss:$20 sps:$4 sm:$0xff]   ;;  %s8057_s6 = smov [#allocation17]  }
  0x92   :  { %552 = vmatpush1.bf16.msra.mxu0 %v7159_v31  ;;  %593 = vmatpush1.bf16.msra.mxu1 %v7160_v32  ;;  %v7238_v28 = vld [vmem:[#allocation8 + $0x280] ss:$20 sps:$4 sm:$0xff]   ;;  %v7241_v31 = vld [vmem:[#allocation8 + $0x258] ss:$20 sps:$4 sm:$0xff]   ;;  %s6203_s8 = sshll.u32 %s8057_s6, 4  ;;  %s6204_s8 = int_to_ptr.vmem [resolvable:$true] %s6203_s8 }
  0x93   :  { %7052 = vmatprep.subr.bf16.mxu1 %v8055_v38  ;;  %619 = vmatprep.subr.bf16.mxu0 %v7169_v34  ;;  %v7244_v32 = vld [vmem:[#allocation8 + $0x4d8] ss:$20 sps:$4 sm:$0xff]   ;;  %v7249_v33 = vld [vmem:[#allocation8 + $0x234] ss:$20 sps:$4 sm:$0xff]   ;;  %s8005_s13 = scalar_lea.vmem %s6204_s8, 1024  ;;  %p8010_p4 = scmp.lt.s32.totalorder %s6204_s8, %s6204_s8 }
  0x94   :  { %v7252_v34 = vld [vmem:[#allocation8 + $0x4b4] ss:$20 sps:$4 sm:$0xff]   ;;  %p8006_p3 = scmp.ne.s32.totalorder %s6204_s8, %s8005_s13  ;;  %p8011_p5 = scmp.lt.s32.totalorder %s8005_s13, %s8005_s13 }
  0x95   :  { %570 = vmatmul.mubr.bf16.vlgmr.msra.gmra.mxu0 %v8137_v35  ;;  %611 = vmatmul.mubr.bf16.vlgmr.msra.gmra.mxu1 %v8137_v35 }
  0x96   :  { %7053 = vmatpush3.bf16.msra.mxu1 %v7161_v36  ;;  %620 = vmatpush1.bf16.msra.mxu0 %v7167_v37  ;;  %v7250_v36 = vld [vmem:[#allocation8 + $0x4b0] ss:$20 sps:$4 sm:$0xff]   ;;  %v7255_v37 = vld [vmem:[#allocation8 + $0x20c] ss:$20 sps:$4 sm:$0xff]   ;;  %p8012_p6 = por %p8011_p5, %p8010_p4 }
  0x97   :  { %7054 = vmatprep.subr.bf16.mxu1 %v8055_v38  ;;  %621 = vmatprep.subr.bf16.mxu0 %v7173_v39  ;;  %v7258_v39 = vld [vmem:[#allocation8 + $0x48c] ss:$20 sps:$4 sm:$0xff]  }
  0x98   :  { %7068 = vmatprep.mubr.msk.bf16.mxu1 %vm8056_vm0, %v8055_v38  ;;  %651 = vmatprep.mubr.bf16.mxu0 %v8054_v0  ;;  %p8013_p7 = pnand %p8012_p6, %p8006_p3 }
  0x9a   :  { %7055 = vmatpush3.bf16.msra.mxu1 %v7162_v40  ;;  %622 = vmatpush1.bf16.msra.mxu0 %v7171_v41  ;;  %v7253_v40 = vld [vmem:[#allocation8 + $0x208] ss:$20 sps:$4 sm:$0xff]  }
  0x9b   :  { %7056 = vmatprep.subr.bf16.mxu1 %v8055_v38  ;;  %623 = vmatprep.subr.bf16.mxu0 %v7177_v42  ;;  %v7256_v41 = vld [vmem:[#allocation8 + $0x488] ss:$20 sps:$4 sm:$0xff]   ;;  %v7261_v42 = vld [vmem:[#allocation8 + $0x1e4] ss:$20 sps:$4 sm:$0xff]  }
  0x9e   :  { %7057 = vmatpush3.bf16.msra.mxu1 %v7163_v43  ;;  %624 = vmatpush1.bf16.msra.mxu0 %v7175_v44  ;;  %v7264_v43 = vld [vmem:[#allocation8 + $0x464] ss:$20 sps:$4 sm:$0xff]   ;;  %v7259_v44 = vld [vmem:[#allocation8 + $0x1e0] ss:$20 sps:$4 sm:$0xff]  }
  0x9f   :  { %7058 = vmatprep.subr.bf16.mxu1 %v8055_v38  ;;  %625 = vmatprep.subr.bf16.mxu0 %v7180_v45  ;;  %v7262_v45 = vld [vmem:[#allocation8 + $0x460] ss:$20 sps:$4 sm:$0xff]  }
  0xa2   :  { %7059 = vmatpush3.bf16.msra.mxu1 %v7164_v46  ;;  %626 = vmatpush1.bf16.msra.mxu0 %v7178_v47  ;;  %v7267_v46 = vld [vmem:[#allocation8 + $0x1bc] ss:$20 sps:$4 sm:$0xff]  }
  0xa3   :  { %7060 = vmatprep.subr.bf16.mxu1 %v8055_v38  ;;  %627 = vmatprep.subr.bf16.mxu0 %v7183_v48  ;;  %v7270_v47 = vld [vmem:[#allocation8 + $0x43c] ss:$20 sps:$4 sm:$0xff]   ;;  %v7265_v48 = vld [vmem:[#allocation8 + $0x1b8] ss:$20 sps:$4 sm:$0xff]  }
  0xa6   :  { %7061 = vmatpush3.bf16.msra.mxu1 %v7165_v49  ;;  %628 = vmatpush1.bf16.msra.mxu0 %v7181_v50  ;;  %v7268_v49 = vld [vmem:[#allocation8 + $0x438] ss:$20 sps:$4 sm:$0xff]   ;;  %v7273_v50 = vld [vmem:[#allocation8 + $0x194] ss:$20 sps:$4 sm:$0xff]  }
  0xa7   :  { %7062 = vmatprep.subr.bf16.mxu1 %v8055_v38  ;;  %629 = vmatprep.subr.bf16.mxu0 %v7186_v51  ;;  %v7276_v51 = vld [vmem:[#allocation8 + $0x414] ss:$20 sps:$4 sm:$0xff]  }
  0xaa   :  { %7063 = vmatpush3.bf16.msra.mxu1 %v7166_v52  ;;  %630 = vmatpush1.bf16.msra.mxu0 %v7184_v53  ;;  %v7271_v52 = vld [vmem:[#allocation8 + $0x190] ss:$20 sps:$4 sm:$0xff]  }
  0xab   :  { %7064 = vmatprep.subr.bf16.mxu1 %v8055_v38  ;;  %631 = vmatprep.subr.bf16.mxu0 %v7189_v54  ;;  %v7274_v53 = vld [vmem:[#allocation8 + $0x410] ss:$20 sps:$4 sm:$0xff]   ;;  %v7279_v54 = vld [vmem:[#allocation8 + $0x16c] ss:$20 sps:$4 sm:$0xff]  }
  0xae   :  { %7065 = vmatpush3.bf16.msra.mxu1 %v7170_v55  ;;  %632 = vmatpush1.bf16.msra.mxu0 %v7187_v56  ;;  %v7282_v55 = vld [vmem:[#allocation8 + $0x3ec] ss:$20 sps:$4 sm:$0xff]   ;;  %v7277_v56 = vld [vmem:[#allocation8 + $0x168] ss:$20 sps:$4 sm:$0xff]  }
  0xaf   :  { %7066 = vmatprep.subr.bf16.mxu1 %v8055_v38  ;;  %633 = vmatprep.subr.bf16.mxu0 %v7192_v57  ;;  %v7280_v57 = vld [vmem:[#allocation8 + $0x3e8] ss:$20 sps:$4 sm:$0xff]  }
  0xb2   :  { %7067 = vmatpush3.bf16.msra.mxu1 %v7174_v58  ;;  %634 = vmatpush1.bf16.msra.mxu0 %v7190_v59  ;;  %v7285_v58 = vld [vmem:[#allocation8 + $0x144] ss:$20 sps:$4 sm:$0xff]  }
  0xb3   :  { %2540 = vmatprep.subr.bf16.mxu0 %v7195_v60  ;;  %2581 = vmatprep.subr.bf16.mxu1 %v7198_v61  ;;  %v7288_v59 = vld [vmem:[#allocation8 + $0x3c4] ss:$20 sps:$4 sm:$0xff]   ;;  %v7283_v60 = vld [vmem:[#allocation8 + $0x140] ss:$20 sps:$4 sm:$0xff]  }
  0xb4   :  { %v7286_v61 = vld [vmem:[#allocation8 + $0x3c0] ss:$20 sps:$4 sm:$0xff]  }
  0xb5   :  { %7069 = vmatmul.mubr.bf16.vlgmr.msra.gmra.mxu1 %v8137_v35  ;;  %652 = vmatmul.mubr.bf16.vlgmr.msra.gmra.mxu0 %v8137_v35  ;;  %v7247_v35 = vld [vmem:[#allocation8 + $0x230] ss:$20 sps:$4 sm:$0xff]  }
  0xb6   :  { %2541 = vmatpush1.bf16.msra.mxu0 %v7193_v62  ;;  %2582 = vmatpush1.bf16.msra.mxu1 %v7196_v63  ;;  %v7291_v62 = vld [vmem:[#allocation8 + $0x61c] ss:$20 sps:$4 sm:$0xff]  }
  0xb7   :  { %2542 = vmatprep.subr.bf16.mxu0 %v7201_v1  ;;  %2583 = vmatprep.subr.bf16.mxu1 %v7204_v2  ;;  %v7294_v63 = vld [vmem:[#allocation8 + $0x89c] ss:$20 sps:$4 sm:$0xff]   ;;  %v214_v1 = vlaneseq }
  0xb9   :  { %v8154_v2 = vshrl.u32 %v214_v1, 7 }
  0xba   :  { %2543 = vmatpush1.bf16.msra.mxu0 %v7199_v3  ;;  %2584 = vmatpush1.bf16.msra.mxu1 %v7202_v4 }
  0xbb   :  { %2544 = vmatprep.subr.bf16.mxu0 %v7207_v5  ;;  %2585 = vmatprep.subr.bf16.mxu1 %v7210_v6  ;;  %v8157_v3 = vsub.s32 0, %v8154_v2  ;;  %v8160_v4 = vsub.s32 2, %v8154_v2  ;;  %v8162_v5 = vld [vmem:[#allocation7] sm:$0xff]  ;;  %v8165_v6 = vsub.s32 1, %v8154_v2 }
  0xbe   :  { %2545 = vmatpush1.bf16.msra.mxu0 %v7205_v7  ;;  %2586 = vmatpush1.bf16.msra.mxu1 %v7208_v8  ;;  %v8168_v7 = vsub.s32 3, %v8154_v2  ;;  %v217_v8 = vrot.slane %v8162_v5, %v8157_v3 }
  0xbf   :  { %2546 = vmatprep.subr.bf16.mxu0 %v7213_v9  ;;  %2587 = vmatprep.subr.bf16.mxu1 %v7216_v10  ;;  %v225_v9 = vrot.slane %v8162_v5, %v8160_v4  ;;  %v221_v10 = vrot.slane %v8162_v5, %v8165_v6 }
  0xc2   :  { %2547 = vmatpush1.bf16.msra.mxu0 %v7211_v11  ;;  %2588 = vmatpush1.bf16.msra.mxu1 %v7214_v12  ;;  %v229_v11 = vrot.slane %v8162_v5, %v8168_v7 }
  0xc3   :  { %2548 = vmatprep.subr.bf16.mxu0 %v7219_v13  ;;  %2589 = vmatprep.subr.bf16.mxu1 %v7222_v14 }
  0xc6   :  { %2549 = vmatpush1.bf16.msra.mxu0 %v7217_v15  ;;  %2590 = vmatpush1.bf16.msra.mxu1 %v7220_v16 }
  0xc7   :  { %2550 = vmatprep.subr.bf16.mxu0 %v7225_v17  ;;  %2591 = vmatprep.subr.bf16.mxu1 %v7228_v18 }
  0xca   :  { %2551 = vmatpush1.bf16.msra.mxu0 %v7223_v19  ;;  %2592 = vmatpush1.bf16.msra.mxu1 %v7226_v20 }
  0xcb   :  { %2552 = vmatprep.subr.bf16.mxu0 %v7231_v21  ;;  %2593 = vmatprep.subr.bf16.mxu1 %v7234_v22 }
  0xce   :  { %2553 = vmatpush1.bf16.msra.mxu0 %v7229_v23  ;;  %2594 = vmatpush1.bf16.msra.mxu1 %v7232_v24 }
  0xcf   :  { %2554 = vmatprep.subr.bf16.mxu0 %v7237_v25  ;;  %2595 = vmatprep.subr.bf16.mxu1 %v7240_v26 }
  0xd2   :  { %2555 = vmatpush1.bf16.msra.mxu0 %v7235_v27  ;;  %2596 = vmatpush1.bf16.msra.mxu1 %v7238_v28 }
  0xd3   :  { %2556 = vmatprep.subr.bf16.mxu0 %v7243_v29  ;;  %2597 = vmatprep.subr.bf16.mxu1 %v7246_v30 }
  0xd6   :  { %2557 = vmatpush2.bf16.msra.mxu0 %v7241_v31  ;;  %2598 = vmatpush2.bf16.msra.mxu1 %v7244_v32  ;;  %v7289_v32 = vld [vmem:[#allocation8 + $0x618] ss:$20 sps:$4 sm:$0xff]  }
  0xd7   :  { %2558 = vmatprep.subr.bf16.mxu0 %v7249_v33  ;;  %2599 = vmatprep.subr.bf16.mxu1 %v7252_v34  ;;  %v7292_v33 = vld [vmem:[#allocation8 + $0x898] ss:$20 sps:$4 sm:$0xff]  }
  0xda   :  { %2559 = vmatpush2.bf16.msra.mxu0 %v7247_v35  ;;  %2600 = vmatpush2.bf16.msra.mxu1 %v7250_v36  ;;  %v7297_v35 = vld [vmem:[#allocation8 + $0x5f4] ss:$20 sps:$4 sm:$0xff]  }
  0xdb   :  { %2560 = vmatprep.subr.bf16.mxu0 %v7255_v37  ;;  %2601 = vmatprep.subr.bf16.mxu1 %v7258_v39  ;;  %v7300_v36 = vld [vmem:[#allocation8 + $0x874] ss:$20 sps:$4 sm:$0xff]  }
  0xde   :  { %2561 = vmatpush2.bf16.msra.mxu0 %v7253_v40  ;;  %2602 = vmatpush2.bf16.msra.mxu1 %v7256_v41  ;;  %v7295_v41 = vld [vmem:[#allocation8 + $0x5f0] ss:$20 sps:$4 sm:$0xff]  }
  0xdf   :  { %2562 = vmatprep.subr.bf16.mxu0 %v7261_v42  ;;  %2603 = vmatprep.subr.bf16.mxu1 %v7264_v43  ;;  %v7298_v42 = vld [vmem:[#allocation8 + $0x870] ss:$20 sps:$4 sm:$0xff]   ;;  %v7303_v43 = vld [vmem:[#allocation8 + $0x5cc] ss:$20 sps:$4 sm:$0xff]  }
  0xe2   :  { %2563 = vmatpush2.bf16.msra.mxu0 %v7259_v44  ;;  %2604 = vmatpush2.bf16.msra.mxu1 %v7262_v45  ;;  %v7306_v44 = vld [vmem:[#allocation8 + $0x84c] ss:$20 sps:$4 sm:$0xff]   ;;  %v7301_v45 = vld [vmem:[#allocation8 + $0x5c8] ss:$20 sps:$4 sm:$0xff]  }
  0xe3   :  { %2564 = vmatprep.subr.bf16.mxu0 %v7267_v46  ;;  %2605 = vmatprep.subr.bf16.mxu1 %v7270_v47  ;;  %v7304_v46 = vld [vmem:[#allocation8 + $0x848] ss:$20 sps:$4 sm:$0xff]   ;;  %v7309_v47 = vld [vmem:[#allocation8 + $0x5a4] ss:$20 sps:$4 sm:$0xff]  }
  0xe6   :  { %2565 = vmatpush2.bf16.msra.mxu0 %v7265_v48  ;;  %2606 = vmatpush2.bf16.msra.mxu1 %v7268_v49  ;;  %v7312_v48 = vld [vmem:[#allocation8 + $0x824] ss:$20 sps:$4 sm:$0xff]   ;;  %v7307_v49 = vld [vmem:[#allocation8 + $0x5a0] ss:$20 sps:$4 sm:$0xff]  }
  0xe7   :  { %2566 = vmatprep.subr.bf16.mxu0 %v7273_v50  ;;  %2607 = vmatprep.subr.bf16.mxu1 %v7276_v51  ;;  %v7310_v50 = vld [vmem:[#allocation8 + $0x820] ss:$20 sps:$4 sm:$0xff]   ;;  %v7315_v51 = vld [vmem:[#allocation8 + $0x57c] ss:$20 sps:$4 sm:$0xff]  }
  0xea   :  { %2567 = vmatpush2.bf16.msra.mxu0 %v7271_v52  ;;  %2608 = vmatpush2.bf16.msra.mxu1 %v7274_v53  ;;  %v7318_v52 = vld [vmem:[#allocation8 + $0x7fc] ss:$20 sps:$4 sm:$0xff]   ;;  %v7313_v53 = vld [vmem:[#allocation8 + $0x578] ss:$20 sps:$4 sm:$0xff]  }
  0xeb   :  { %2568 = vmatprep.subr.bf16.mxu0 %v7279_v54  ;;  %2609 = vmatprep.subr.bf16.mxu1 %v7282_v55  ;;  %v7316_v54 = vld [vmem:[#allocation8 + $0x7f8] ss:$20 sps:$4 sm:$0xff]   ;;  %v240_v55 = vsub.s32 6, %v8154_v2 }
  0xee   :  { %2569 = vmatpush2.bf16.msra.mxu0 %v7277_v56  ;;  %2610 = vmatpush2.bf16.msra.mxu1 %v7280_v57  ;;  %v7321_v56 = vld [vmem:[#allocation8 + $0x554] ss:$20 sps:$4 sm:$0xff]  }
  0xef   :  { %2570 = vmatprep.subr.bf16.mxu0 %v7285_v58  ;;  %2611 = vmatprep.subr.bf16.mxu1 %v7288_v59  ;;  %v7324_v57 = vld [vmem:[#allocation8 + $0x7d4] ss:$20 sps:$4 sm:$0xff]   ;;  %v236_v58 = vsub.s32 5, %v8154_v2  ;;  %v7319_v59 = vld [vmem:[#allocation8 + $0x550] ss:$20 sps:$4 sm:$0xff]  }
  0xf1   :  { %v237_v1 = vrot.slane %v8162_v5, %v236_v58 }
  0xf2   :  { %2571 = vmatpush2.bf16.msra.mxu0 %v7283_v60  ;;  %2612 = vmatpush2.bf16.msra.mxu1 %v7286_v61  ;;  %v7322_v60 = vld [vmem:[#allocation8 + $0x7d0] ss:$20 sps:$4 sm:$0xff]   ;;  %v241_v61 = vrot.slane %v8162_v5, %v240_v55 }
  0xf3   :  { %2622 = vmatprep.subr.bf16.mxu0 %v7291_v62  ;;  %2663 = vmatprep.subr.bf16.mxu1 %v7294_v63  ;;  %v7327_v62 = vld [vmem:[#allocation8 + $0x52c] ss:$20 sps:$4 sm:$0xff]  }
  0xf4   :  { %v7330_v63 = vld [vmem:[#allocation8 + $0x7ac] ss:$20 sps:$4 sm:$0xff]  }
 0x155   :  { %v571_v12 = vpop.f32.mrf.mxu0  ;;  %v612_v13 = vpop.f32.mrf.mxu1 }
 0x156   :  { %v572_v14 = vadd.f32 %v571_v12, %v217_v8  ;;  %v613_v15 = vadd.f32 %v612_v13, %v225_v9  ;;  %v7328_v12 = vld [vmem:[#allocation8 + $0x7a8] ss:$20 sps:$4 sm:$0xff]  }
 0x157   :  { %v573_v16 = vpop.f32.mrf.mxu0  ;;  %v614_v17 = vpop.f32.mrf.mxu1 }
 0x158   :  { %v700_v18 = vmul.f32 0.01, %v572_v14  ;;  %v702_v19 = vmul.f32 0.01, %v613_v15  ;;  %v574_v20 = vadd.f32 %v573_v16, %v221_v10  ;;  %v615_v21 = vadd.f32 %v614_v17, %v229_v11  ;;  %v7325_v11 = vld [vmem:[#allocation8 + $0x528] ss:$20 sps:$4 sm:$0xff]  }
 0x159   :  { %v575_v22 = vpop.f32.mrf.mxu0  ;;  %v616_v23 = vpop.f32.mrf.mxu1 }
 0x15a   :  { %v709_v24 = vmax.f32 %v613_v15, %v702_v19  ;;  %v701_v25 = vmul.f32 0.01, %v574_v20  ;;  %v703_v26 = vmul.f32 0.01, %v615_v21  ;;  %v707_v27 = vmax.f32 %v572_v14, %v700_v18  ;;  %v7333_v14 = vld [vmem:[#allocation8 + $0x504] ss:$20 sps:$4 sm:$0xff]  }
 0x15b   :  { %v576_v28 = vpop.f32.mrf.mxu0  ;;  %v617_v29 = vpop.f32.mrf.mxu1  ;;  %v7336_v15 = vld [vmem:[#allocation8 + $0x784] ss:$20 sps:$4 sm:$0xff]   ;;  %v7331_v22 = vld [vmem:[#allocation8 + $0x500] ss:$20 sps:$4 sm:$0xff]  }
 0x15c   :  { %v708_v30 = vmax.f32 %v574_v20, %v701_v25  ;;  %v710_v31 = vmax.f32 %v615_v21, %v703_v26  ;;  %v8178_v34 = vpack.c.bf16 %v709_v24, %v709_v24  ;;  %v8184_v40 = vpack.c.bf16 %v707_v27, %v707_v27  ;;  %v7334_v23 = vld [vmem:[#allocation8 + $0x780] ss:$20 sps:$4 sm:$0xff]   ;;  %v7339_v26 = vld [vmem:[#allocation8 + $0x75c] ss:$20 sps:$4 sm:$0xff]   ;;  %v7342_v27 = vld [vmem:[#allocation8 + $0x124] ss:$20 sps:$4 sm:$0xff]  }
 0x15d   :  { %v7337_v29 = vld [vmem:[#allocation8 + $0x758] ss:$20 sps:$4 sm:$0xff]  }
 0x15e   :  { %v8180_v37 = vpack.c.bf16 %v708_v30, %v708_v30  ;;  %v8182_v39 = vpack.c.bf16 %v710_v31, %v710_v31  ;;  %v7340_v30 = vld [vmem:[#allocation8 + $0x120] ss:$20 sps:$4 sm:$0xff]  }
 0x160   :  { %2572 = vmatprep.mubr.bf16.mxu0 %v8180_v37  ;;  %2613 = vmatprep.mubr.bf16.mxu1 %v8182_v39 }
 0x161   :  { %2573 = vmatmul.mubr.bf16.vlgmr.msra.gmra.mxu0 %v8184_v40  ;;  %2614 = vmatmul.mubr.bf16.vlgmr.msra.gmra.mxu1 %v8178_v34 }
 0x162   :  { %2623 = vmatpush1.bf16.msra.mxu0 %v7289_v32  ;;  %2664 = vmatpush1.bf16.msra.mxu1 %v7292_v33  ;;  %v7345_v33 = vld [vmem:[#allocation8 + $0x734] ss:$20 sps:$4 sm:$0xff]  }
 0x163   :  { %2624 = vmatprep.subr.bf16.mxu0 %v7297_v35  ;;  %2665 = vmatprep.subr.bf16.mxu1 %v7300_v36  ;;  %v7343_v36 = vld [vmem:[#allocation8 + $0x730] ss:$20 sps:$4 sm:$0xff]  }
 0x164   :  { %2695 = vmatprep.mubr.bf16.mxu1 %v8054_v0 }
 0x166   :  { %2625 = vmatpush1.bf16.msra.mxu0 %v7295_v41  ;;  %2666 = vmatpush1.bf16.msra.mxu1 %v7298_v42  ;;  %v7348_v41 = vld [vmem:[#allocation8 + $0xfc] ss:$20 sps:$4 sm:$0xff]   ;;  %v7346_v42 = vld [vmem:[#allocation8 + $0xf8] ss:$20 sps:$4 sm:$0xff]  }
 0x167   :  { %2626 = vmatprep.subr.bf16.mxu0 %v7303_v43  ;;  %2667 = vmatprep.subr.bf16.mxu1 %v7306_v44  ;;  %v7351_v43 = vld [vmem:[#allocation8 + $0x70c] ss:$20 sps:$4 sm:$0xff]   ;;  %v7354_v44 = vld [vmem:[#allocation8 + $0xd4] ss:$20 sps:$4 sm:$0xff]  }
 0x16a   :  { %2627 = vmatpush1.bf16.msra.mxu0 %v7301_v45  ;;  %2668 = vmatpush1.bf16.msra.mxu1 %v7304_v46  ;;  %v7349_v45 = vld [vmem:[#allocation8 + $0x708] ss:$20 sps:$4 sm:$0xff]   ;;  %v7352_v46 = vld [vmem:[#allocation8 + $0xd0] ss:$20 sps:$4 sm:$0xff]  }
 0x16b   :  { %2628 = vmatprep.subr.bf16.mxu0 %v7309_v47  ;;  %2669 = vmatprep.subr.bf16.mxu1 %v7312_v48  ;;  %v7357_v47 = vld [vmem:[#allocation8 + $0x6e4] ss:$20 sps:$4 sm:$0xff]   ;;  %v7360_v48 = vld [vmem:[#allocation8 + $0xac] ss:$20 sps:$4 sm:$0xff]  }
 0x16e   :  { %2629 = vmatpush1.bf16.msra.mxu0 %v7307_v49  ;;  %2670 = vmatpush1.bf16.msra.mxu1 %v7310_v50  ;;  %v7355_v49 = vld [vmem:[#allocation8 + $0x6e0] ss:$20 sps:$4 sm:$0xff]   ;;  %v7358_v50 = vld [vmem:[#allocation8 + $0xa8] ss:$20 sps:$4 sm:$0xff]  }
 0x16f   :  { %2630 = vmatprep.subr.bf16.mxu0 %v7315_v51  ;;  %2671 = vmatprep.subr.bf16.mxu1 %v7318_v52  ;;  %v8209_v51 = vsub.s32 4, %v8154_v2  ;;  %v7363_v52 = vld [vmem:[#allocation8 + $0x6bc] ss:$20 sps:$4 sm:$0xff]  }
 0x172   :  { %2631 = vmatpush1.bf16.msra.mxu0 %v7313_v53  ;;  %2672 = vmatpush1.bf16.msra.mxu1 %v7316_v54  ;;  %v7366_v53 = vld [vmem:[#allocation8 + $0x84] ss:$20 sps:$4 sm:$0xff]  }
 0x173   :  { %2632 = vmatprep.subr.bf16.mxu0 %v7321_v56  ;;  %2673 = vmatprep.subr.bf16.mxu1 %v7324_v57  ;;  %v7361_v54 = vld [vmem:[#allocation8 + $0x6b8] ss:$20 sps:$4 sm:$0xff]   ;;  %v7364_v56 = vld [vmem:[#allocation8 + $0x80] ss:$20 sps:$4 sm:$0xff]   ;;  %v233_v57 = vrot.slane %v8162_v5, %v8209_v51 }
 0x174   :  { %v7381_v5 = vld [vmem:[#allocation8 + $0x644] ss:$20 sps:$4 sm:$0xff]  }
 0x175   :  { %v694_v8 = vpop.f32.mrf.mxu1  ;;  %v8199_v9 = vpop.f32.mrf.mxu0 }
 0x176   :  { %2633 = vmatpush1.bf16.msra.mxu0 %v7319_v59  ;;  %2674 = vmatpush1.bf16.msra.mxu1 %v7322_v60  ;;  %v695_v10 = vadd.f32 %v694_v8, %v241_v61  ;;  %v7369_v59 = vld [vmem:[#allocation8 + $0x694] ss:$20 sps:$4 sm:$0xff]   ;;  %v7372_v60 = vld [vmem:[#allocation8 + $0x5c] ss:$20 sps:$4 sm:$0xff]  }
 0x177   :  { %2634 = vmatprep.subr.bf16.mxu0 %v7327_v62  ;;  %2675 = vmatprep.subr.bf16.mxu1 %v7330_v63  ;;  %v7070_v13 = vpop.f32.mrf.mxu1  ;;  %v655_v16 = vpop.f32.mrf.mxu0  ;;  %v7367_v61 = vld [vmem:[#allocation8 + $0x690] ss:$20 sps:$4 sm:$0xff]   ;;  %v7370_v62 = vld [vmem:[#allocation8 + $0x58] ss:$20 sps:$4 sm:$0xff]   ;;  %v654_v63 = vadd.f32 %v8199_v9, %v233_v57  ;;  %v7378_v8 = vld [vmem:[#allocation8 + $0x34] ss:$20 sps:$4 sm:$0xff]  }
 0x178   :  { %v706_v17 = vmul.f32 0.01, %v695_v10  ;;  %v656_v18 = vadd.f32 %v655_v16, %v237_v1  ;;  %v7375_v1 = vld [vmem:[#allocation8 + $0x66c] ss:$20 sps:$4 sm:$0xff]   ;;  %v7387_v9 = vld [vmem:[#allocation8 + $0x264] ss:$20 sps:$4 sm:$0xff]  }
 0x179   :  { %v697_v19 = vpop.f32.mrf.mxu1  ;;  %v657_v20 = vpop.f32.mrf.mxu0  ;;  %v7384_v13 = vld [vmem:[#allocation8 + $0xc] ss:$20 sps:$4 sm:$0xff]   ;;  %v7430_v57 = vld [vmem:[#allocation8 + $0x288] ss:$20 sps:$4 sm:$0xff]  }
 0x17a   :  { %v713_v21 = vmax.f32 %v695_v10, %v706_v17  ;;  %2635 = vmatpush1.bf16.msra.mxu0 %v7325_v11  ;;  %2676 = vmatpush1.bf16.msra.mxu1 %v7328_v12  ;;  %v705_v24 = vmul.f32 0.01, %v656_v18  ;;  %v7373_v10 = vld [vmem:[#allocation8 + $0x668] ss:$20 sps:$4 sm:$0xff]   ;;  %v7376_v11 = vld [vmem:[#allocation8 + $0x30] ss:$20 sps:$4 sm:$0xff]  }
 0x17b   :  { %2636 = vmatprep.subr.bf16.mxu0 %v7333_v14  ;;  %2677 = vmatprep.subr.bf16.mxu1 %v7336_v15  ;;  %v7071_v25 = vpop.f32.mrf.mxu1  ;;  %v658_v28 = vpop.f32.mrf.mxu0  ;;  %v704_v12 = vmul.f32 0.01, %v654_v63  ;;  %v7379_v14 = vld [vmem:[#allocation8 + $0x640] ss:$20 sps:$4 sm:$0xff]   ;;  %v7382_v15 = vld [vmem:[#allocation8 + $0x8] ss:$20 sps:$4 sm:$0xff]  }
 0x17c   :  { %v712_v31 = vmax.f32 %v656_v18, %v705_v24  ;;  %v8201_v32 = vpack.c.bf16 %v713_v21, %v713_v21  ;;  %v7390_v17 = vld [vmem:[#allocation8 + $0x3a4] ss:$20 sps:$4 sm:$0xff]   ;;  %v7385_v18 = vld [vmem:[#allocation8 + $0x260] ss:$20 sps:$4 sm:$0xff]   ;;  %v7393_v21 = vld [vmem:[#allocation8 + $0x23c] ss:$20 sps:$4 sm:$0xff]  }
 0x17d   :  { %v711_v16 = vmax.f32 %v654_v63, %v704_v12  ;;  %v7388_v19 = vld [vmem:[#allocation8 + $0x3a0] ss:$20 sps:$4 sm:$0xff]   ;;  %v7394_v24 = vld [vmem:[#allocation8 + $0x378] ss:$20 sps:$4 sm:$0xff]   ;;  %v7400_v28 = vld [vmem:[#allocation8 + $0x350] ss:$20 sps:$4 sm:$0xff]  }
 0x17e   :  { %2637 = vmatpush1.bf16.msra.mxu0 %v7331_v22  ;;  %2678 = vmatpush1.bf16.msra.mxu1 %v7334_v23  ;;  %v8203_v35 = vpack.c.bf16 %v712_v31, %v712_v31  ;;  %v7396_v22 = vld [vmem:[#allocation8 + $0x37c] ss:$20 sps:$4 sm:$0xff]   ;;  %v7391_v23 = vld [vmem:[#allocation8 + $0x238] ss:$20 sps:$4 sm:$0xff]   ;;  %v7399_v25 = vld [vmem:[#allocation8 + $0x214] ss:$20 sps:$4 sm:$0xff]  }
 0x17f   :  { %2638 = vmatprep.subr.bf16.mxu0 %v7339_v26  ;;  %2704 = vmatprep.subr.bf16.mxu1 %v7342_v27  ;;  %v8214_v20 = vpack.c.bf16 %v711_v16, %v711_v16  ;;  %v7402_v26 = vld [vmem:[#allocation8 + $0x354] ss:$20 sps:$4 sm:$0xff]   ;;  %v7397_v27 = vld [vmem:[#allocation8 + $0x210] ss:$20 sps:$4 sm:$0xff]  }
 0x180   :  { %2654 = vmatprep.mubr.bf16.mxu0 %v8203_v35  ;;  %v7403_v31 = vld [vmem:[#allocation8 + $0x1e8] ss:$20 sps:$4 sm:$0xff]  }
 0x181   :  { %2696 = vmatmul.mubr.bf16.vlgmr.msra.gmra.mxu1 %v8201_v32  ;;  %v7441_v63 = vld [vmem:[#allocation8 + $0x4bc] ss:$20 sps:$4 sm:$0xff]   ;;  %v7450_v12 = vld [vmem:[#allocation8 + $0x5d4] ss:$20 sps:$4 sm:$0xff]  }
 0x182   :  { %2639 = vmatpush2.bf16.msra.mxu0 %v7337_v29  ;;  %2705 = vmatpush1.bf16.msra.mxu1 %v7340_v30  ;;  %v7405_v29 = vld [vmem:[#allocation8 + $0x1ec] ss:$20 sps:$4 sm:$0xff]   ;;  %v7451_v16 = vld [vmem:[#allocation8 + $0x468] ss:$20 sps:$4 sm:$0xff]  }
 0x183   :  { %2736 = vmatprep.mubr.bf16.mxu1 %v8180_v37  ;;  %2640 = vmatprep.subr.bf16.mxu0 %v7345_v33  ;;  %v7408_v30 = vld [vmem:[#allocation8 + $0x32c] ss:$20 sps:$4 sm:$0xff]   ;;  %v7406_v33 = vld [vmem:[#allocation8 + $0x328] ss:$20 sps:$4 sm:$0xff]  }
 0x184   :  { %2706 = vmatprep.subr.bf16.mxu1 %v7348_v41  ;;  %v7414_v41 = vld [vmem:[#allocation8 + $0x304] ss:$20 sps:$4 sm:$0xff]  }
 0x186   :  { %2641 = vmatpush2.bf16.msra.mxu0 %v7343_v36  ;;  %2707 = vmatpush1.bf16.msra.mxu1 %v7346_v42  ;;  %v7411_v36 = vld [vmem:[#allocation8 + $0x1c4] ss:$20 sps:$4 sm:$0xff]   ;;  %v7409_v42 = vld [vmem:[#allocation8 + $0x1c0] ss:$20 sps:$4 sm:$0xff]  }
 0x187   :  { %2642 = vmatprep.subr.bf16.mxu0 %v7351_v43  ;;  %2708 = vmatprep.subr.bf16.mxu1 %v7354_v44  ;;  %v7412_v43 = vld [vmem:[#allocation8 + $0x300] ss:$20 sps:$4 sm:$0xff]   ;;  %v7417_v44 = vld [vmem:[#allocation8 + $0x19c] ss:$20 sps:$4 sm:$0xff]  }
 0x18a   :  { %2643 = vmatpush2.bf16.msra.mxu0 %v7349_v45  ;;  %2709 = vmatpush1.bf16.msra.mxu1 %v7352_v46  ;;  %v7420_v45 = vld [vmem:[#allocation8 + $0x2dc] ss:$20 sps:$4 sm:$0xff]   ;;  %v7415_v46 = vld [vmem:[#allocation8 + $0x198] ss:$20 sps:$4 sm:$0xff]  }
 0x18b   :  { %2644 = vmatprep.subr.bf16.mxu0 %v7357_v47  ;;  %2710 = vmatprep.subr.bf16.mxu1 %v7360_v48  ;;  %v7418_v47 = vld [vmem:[#allocation8 + $0x2d8] ss:$20 sps:$4 sm:$0xff]   ;;  %v7423_v48 = vld [vmem:[#allocation8 + $0x174] ss:$20 sps:$4 sm:$0xff]  }
 0x18e   :  { %2645 = vmatpush2.bf16.msra.mxu0 %v7355_v49  ;;  %2711 = vmatpush1.bf16.msra.mxu1 %v7358_v50  ;;  %v7426_v49 = vld [vmem:[#allocation8 + $0x2b4] ss:$20 sps:$4 sm:$0xff]   ;;  %v7421_v50 = vld [vmem:[#allocation8 + $0x170] ss:$20 sps:$4 sm:$0xff]  }
 0x18f   :  { %2646 = vmatprep.subr.bf16.mxu0 %v7363_v52  ;;  %2712 = vmatprep.subr.bf16.mxu1 %v7366_v53  ;;  %v7424_v52 = vld [vmem:[#allocation8 + $0x2b0] ss:$20 sps:$4 sm:$0xff]   ;;  %v7429_v53 = vld [vmem:[#allocation8 + $0x14c] ss:$20 sps:$4 sm:$0xff]  }
 0x192   :  { %2647 = vmatpush2.bf16.msra.mxu0 %v7361_v54  ;;  %2713 = vmatpush1.bf16.msra.mxu1 %v7364_v56  ;;  %v7432_v54 = vld [vmem:[#allocation8 + $0x28c] ss:$20 sps:$4 sm:$0xff]   ;;  %v7427_v56 = vld [vmem:[#allocation8 + $0x148] ss:$20 sps:$4 sm:$0xff]  }
 0x193   :  { %2648 = vmatprep.subr.bf16.mxu0 %v7369_v59  ;;  %2714 = vmatprep.subr.bf16.mxu1 %v7372_v60  ;;  %v7435_v59 = vld [vmem:[#allocation8 + $0x4e4] ss:$20 sps:$4 sm:$0xff]  }
 0x194   :  { %v7438_v60 = vld [vmem:[#allocation8 + $0x624] ss:$20 sps:$4 sm:$0xff]  }
 0x196   :  { %2649 = vmatpush2.bf16.msra.mxu0 %v7367_v61  ;;  %2715 = vmatpush1.bf16.msra.mxu1 %v7370_v62  ;;  %v7433_v61 = vld [vmem:[#allocation8 + $0x4e0] ss:$20 sps:$4 sm:$0xff]  }
 0x197   :  { %2650 = vmatprep.subr.bf16.mxu0 %v7375_v1  ;;  %2716 = vmatprep.subr.bf16.mxu1 %v7378_v8  ;;  %v7436_v62 = vld [vmem:[#allocation8 + $0x620] ss:$20 sps:$4 sm:$0xff]   ;;  %v7444_v1 = vld [vmem:[#allocation8 + $0x5fc] ss:$20 sps:$4 sm:$0xff]   ;;  %v7439_v8 = vld [vmem:[#allocation8 + $0x4b8] ss:$20 sps:$4 sm:$0xff]  }
 0x19a   :  { %2651 = vmatpush2.bf16.msra.mxu0 %v7373_v10  ;;  %2717 = vmatpush1.bf16.msra.mxu1 %v7376_v11  ;;  %v7442_v10 = vld [vmem:[#allocation8 + $0x5f8] ss:$20 sps:$4 sm:$0xff]   ;;  %v7447_v11 = vld [vmem:[#allocation8 + $0x494] ss:$20 sps:$4 sm:$0xff]  }
 0x19b   :  { %2652 = vmatprep.subr.bf16.mxu0 %v7381_v5  ;;  %2718 = vmatprep.subr.bf16.mxu1 %v7384_v13  ;;  %v7445_v5 = vld [vmem:[#allocation8 + $0x490] ss:$20 sps:$4 sm:$0xff]  }
 0x19c   :  { %v7448_v13 = vld [vmem:[#allocation8 + $0x5d0] ss:$20 sps:$4 sm:$0xff]  }
 0x19e   :  { %2653 = vmatpush2.bf16.msra.mxu0 %v7379_v14  ;;  %2719 = vmatpush1.bf16.msra.mxu1 %v7382_v15  ;;  %v7453_v14 = vld [vmem:[#allocation8 + $0x46c] ss:$20 sps:$4 sm:$0xff]  }
 0x19f   :  { %2720 = vmatprep.subr.bf16.mxu1 %v7387_v9  ;;  %2745 = vmatprep.subr.bf16.mxu0 %v7390_v17  ;;  %v7456_v15 = vld [vmem:[#allocation8 + $0x5ac] ss:$20 sps:$4 sm:$0xff]   ;;  %v7454_v9 = vld [vmem:[#allocation8 + $0x5a8] ss:$20 sps:$4 sm:$0xff]   ;;  %v7459_v17 = vld [vmem:[#allocation8 + $0x444] ss:$20 sps:$4 sm:$0xff]  }
 0x1a1   :  { %2655 = vmatmul.mubr.bf16.vlgmr.msra.gmra.mxu0 %v8214_v20 }
 0x1a2   :  { %2721 = vmatpush2.bf16.msra.mxu1 %v7385_v18  ;;  %2746 = vmatpush1.bf16.msra.mxu0 %v7388_v19  ;;  %v7462_v18 = vld [vmem:[#allocation8 + $0x584] ss:$20 sps:$4 sm:$0xff]   ;;  %v7457_v19 = vld [vmem:[#allocation8 + $0x440] ss:$20 sps:$4 sm:$0xff]  }
 0x1a3   :  { %2777 = vmatprep.mubr.bf16.mxu0 %v8182_v39  ;;  %2722 = vmatprep.subr.bf16.mxu1 %v7393_v21  ;;  %v7460_v21 = vld [vmem:[#allocation8 + $0x580] ss:$20 sps:$4 sm:$0xff]  }
 0x1a4   :  { %2747 = vmatprep.subr.bf16.mxu0 %v7396_v22  ;;  %v7465_v22 = vld [vmem:[#allocation8 + $0x41c] ss:$20 sps:$4 sm:$0xff]  }
 0x1a6   :  { %2723 = vmatpush2.bf16.msra.mxu1 %v7391_v23  ;;  %2748 = vmatpush1.bf16.msra.mxu0 %v7394_v24  ;;  %v7468_v23 = vld [vmem:[#allocation8 + $0x55c] ss:$20 sps:$4 sm:$0xff]   ;;  %v7463_v24 = vld [vmem:[#allocation8 + $0x418] ss:$20 sps:$4 sm:$0xff]  }
 0x1a7   :  { %2724 = vmatprep.subr.bf16.mxu1 %v7399_v25  ;;  %2749 = vmatprep.subr.bf16.mxu0 %v7402_v26  ;;  %v7466_v25 = vld [vmem:[#allocation8 + $0x558] ss:$20 sps:$4 sm:$0xff]   ;;  %v7471_v26 = vld [vmem:[#allocation8 + $0x3f4] ss:$20 sps:$4 sm:$0xff]  }
 0x1aa   :  { %2725 = vmatpush2.bf16.msra.mxu1 %v7397_v27  ;;  %2750 = vmatpush1.bf16.msra.mxu0 %v7400_v28  ;;  %v7474_v27 = vld [vmem:[#allocation8 + $0x534] ss:$20 sps:$4 sm:$0xff]   ;;  %v7469_v28 = vld [vmem:[#allocation8 + $0x3f0] ss:$20 sps:$4 sm:$0xff]  }
 0x1ab   :  { %2726 = vmatprep.subr.bf16.mxu1 %v7405_v29  ;;  %2751 = vmatprep.subr.bf16.mxu0 %v7408_v30  ;;  %v7472_v29 = vld [vmem:[#allocation8 + $0x530] ss:$20 sps:$4 sm:$0xff]   ;;  %v7477_v30 = vld [vmem:[#allocation8 + $0x3cc] ss:$20 sps:$4 sm:$0xff]  }
 0x1ae   :  { %2727 = vmatpush2.bf16.msra.mxu1 %v7403_v31  ;;  %2752 = vmatpush1.bf16.msra.mxu0 %v7406_v33  ;;  %v7480_v31 = vld [vmem:[#allocation8 + $0x50c] ss:$20 sps:$4 sm:$0xff]   ;;  %v7475_v33 = vld [vmem:[#allocation8 + $0x3c8] ss:$20 sps:$4 sm:$0xff]  }
 0x1af   :  { %2728 = vmatprep.subr.bf16.mxu1 %v7411_v36  ;;  %2753 = vmatprep.subr.bf16.mxu0 %v7414_v41  ;;  %v7478_v36 = vld [vmem:[#allocation8 + $0x508] ss:$20 sps:$4 sm:$0xff]   ;;  %v7483_v41 = vld [vmem:[#allocation8 + $0x764] ss:$20 sps:$4 sm:$0xff]  }
 0x1b2   :  { %2729 = vmatpush2.bf16.msra.mxu1 %v7409_v42  ;;  %2754 = vmatpush1.bf16.msra.mxu0 %v7412_v43  ;;  %v7486_v42 = vld [vmem:[#allocation8 + $0x8a4] ss:$20 sps:$4 sm:$0xff]   ;;  %v7481_v43 = vld [vmem:[#allocation8 + $0x760] ss:$20 sps:$4 sm:$0xff]  }
 0x1b3   :  { %2730 = vmatprep.subr.bf16.mxu1 %v7417_v44  ;;  %2755 = vmatprep.subr.bf16.mxu0 %v7420_v45  ;;  %v7484_v44 = vld [vmem:[#allocation8 + $0x8a0] ss:$20 sps:$4 sm:$0xff]   ;;  %v7489_v45 = vld [vmem:[#allocation8 + $0x73c] ss:$20 sps:$4 sm:$0xff]  }
 0x1b6   :  { %2731 = vmatpush2.bf16.msra.mxu1 %v7415_v46  ;;  %2756 = vmatpush1.bf16.msra.mxu0 %v7418_v47  ;;  %v7492_v46 = vld [vmem:[#allocation8 + $0x87c] ss:$20 sps:$4 sm:$0xff]   ;;  %v7487_v47 = vld [vmem:[#allocation8 + $0x738] ss:$20 sps:$4 sm:$0xff]  }
 0x1b7   :  { %2732 = vmatprep.subr.bf16.mxu1 %v7423_v48  ;;  %2757 = vmatprep.subr.bf16.mxu0 %v7426_v49  ;;  %v7490_v48 = vld [vmem:[#allocation8 + $0x878] ss:$20 sps:$4 sm:$0xff]   ;;  %v7495_v49 = vld [vmem:[#allocation8 + $0x714] ss:$20 sps:$4 sm:$0xff]  }
 0x1ba   :  { %2733 = vmatpush2.bf16.msra.mxu1 %v7421_v50  ;;  %2758 = vmatpush1.bf16.msra.mxu0 %v7424_v52  ;;  %v7498_v50 = vld [vmem:[#allocation8 + $0x854] ss:$20 sps:$4 sm:$0xff]   ;;  %v7493_v52 = vld [vmem:[#allocation8 + $0x710] ss:$20 sps:$4 sm:$0xff]  }
 0x1bb   :  { %2734 = vmatprep.subr.bf16.mxu1 %v7429_v53  ;;  %2759 = vmatprep.subr.bf16.mxu0 %v7432_v54  ;;  %v7496_v53 = vld [vmem:[#allocation8 + $0x850] ss:$20 sps:$4 sm:$0xff]   ;;  %v7501_v54 = vld [vmem:[#allocation8 + $0x6ec] ss:$20 sps:$4 sm:$0xff]  }
 0x1be   :  { %2735 = vmatpush2.bf16.msra.mxu1 %v7427_v56  ;;  %2760 = vmatpush1.bf16.msra.mxu0 %v7430_v57  ;;  %v7504_v56 = vld [vmem:[#allocation8 + $0x82c] ss:$20 sps:$4 sm:$0xff]   ;;  %v7499_v57 = vld [vmem:[#allocation8 + $0x6e8] ss:$20 sps:$4 sm:$0xff]  }
 0x1bf   :  { %2761 = vmatprep.subr.bf16.mxu0 %v7435_v59  ;;  %2786 = vmatprep.subr.bf16.mxu1 %v7438_v60  ;;  %v7502_v59 = vld [vmem:[#allocation8 + $0x828] ss:$20 sps:$4 sm:$0xff]   ;;  %v7507_v60 = vld [vmem:[#allocation8 + $0x6c4] ss:$20 sps:$4 sm:$0xff]  }
 0x1c1   :  { %2737 = vmatmul.mubr.bf16.vlgmr.msra.gmra.mxu1 %v8184_v40 }
 0x1c2   :  { %2762 = vmatpush2.bf16.msra.mxu0 %v7433_v61  ;;  %2787 = vmatpush1.bf16.msra.mxu1 %v7436_v62  ;;  %v7510_v61 = vld [vmem:[#allocation8 + $0x804] ss:$20 sps:$4 sm:$0xff]   ;;  %v7505_v62 = vld [vmem:[#allocation8 + $0x6c0] ss:$20 sps:$4 sm:$0xff]  }
 0x1c3   :  { %2818 = vmatprep.mubr.bf16.mxu1 %v8203_v35  ;;  %2763 = vmatprep.subr.bf16.mxu0 %v7441_v63  ;;  %v7508_v63 = vld [vmem:[#allocation8 + $0x800] ss:$20 sps:$4 sm:$0xff]  }
 0x1c4   :  { %2788 = vmatprep.subr.bf16.mxu1 %v7444_v1  ;;  %v7513_v1 = vld [vmem:[#allocation8 + $0x69c] ss:$20 sps:$4 sm:$0xff]  }
 0x1c6   :  { %2764 = vmatpush2.bf16.msra.mxu0 %v7439_v8  ;;  %2789 = vmatpush1.bf16.msra.mxu1 %v7442_v10  ;;  %v7516_v8 = vld [vmem:[#allocation8 + $0x7dc] ss:$20 sps:$4 sm:$0xff]   ;;  %v7511_v10 = vld [vmem:[#allocation8 + $0x698] ss:$20 sps:$4 sm:$0xff]  }
 0x1c7   :  { %2765 = vmatprep.subr.bf16.mxu0 %v7447_v11  ;;  %2790 = vmatprep.subr.bf16.mxu1 %v7450_v12  ;;  %v7514_v11 = vld [vmem:[#allocation8 + $0x7d8] ss:$20 sps:$4 sm:$0xff]   ;;  %v7519_v12 = vld [vmem:[#allocation8 + $0x674] ss:$20 sps:$4 sm:$0xff]  }
 0x1ca   :  { %2766 = vmatpush2.bf16.msra.mxu0 %v7445_v5  ;;  %2791 = vmatpush1.bf16.msra.mxu1 %v7448_v13  ;;  %v7522_v5 = vld [vmem:[#allocation8 + $0x7b4] ss:$20 sps:$4 sm:$0xff]   ;;  %v7517_v13 = vld [vmem:[#allocation8 + $0x670] ss:$20 sps:$4 sm:$0xff]  }
 0x1cb   :  { %2767 = vmatprep.subr.bf16.mxu0 %v7453_v14  ;;  %2792 = vmatprep.subr.bf16.mxu1 %v7456_v15  ;;  %v7520_v14 = vld [vmem:[#allocation8 + $0x7b0] ss:$20 sps:$4 sm:$0xff]   ;;  %v7525_v15 = vld [vmem:[#allocation8 + $0x64c] ss:$20 sps:$4 sm:$0xff]  }
 0x1ce   :  { %2768 = vmatpush2.bf16.msra.mxu0 %v7451_v16  ;;  %2793 = vmatpush1.bf16.msra.mxu1 %v7454_v9  ;;  %v7528_v16 = vld [vmem:[#allocation8 + $0x78c] ss:$20 sps:$4 sm:$0xff]   ;;  %v7523_v9 = vld [vmem:[#allocation8 + $0x648] ss:$20 sps:$4 sm:$0xff]  }
 0x1cf   :  { %2769 = vmatprep.subr.bf16.mxu0 %v7459_v17  ;;  %2794 = vmatprep.subr.bf16.mxu1 %v7462_v18  ;;  %v7526_v17 = vld [vmem:[#allocation8 + $0x788] ss:$20 sps:$4 sm:$0xff]  }
 0x1d0   :  { %v7529_v18 = vld [vmem:[#allocation8 + $0x268] ss:$20 sps:$4 sm:$0xff]  }
 0x1d2   :  { %2770 = vmatpush2.bf16.msra.mxu0 %v7457_v19  ;;  %2795 = vmatpush1.bf16.msra.mxu1 %v7460_v21  ;;  %v7530_v19 = vld [vmem:[#allocation8 + $0x4e8] ss:$20 sps:$4 sm:$0xff]  }
 0x1d3   :  { %2771 = vmatprep.subr.bf16.mxu0 %v7465_v22  ;;  %2796 = vmatprep.subr.bf16.mxu1 %v7468_v23  ;;  %v7531_v21 = vld [vmem:[#allocation8 + $0x128] ss:$20 sps:$4 sm:$0xff]   ;;  %v7533_v23 = vld [vmem:[#allocation8 + $0x240] ss:$20 sps:$4 sm:$0xff]  }
 0x1d4   :  { %v7532_v22 = vld [vmem:[#allocation8 + $0x3a8] ss:$20 sps:$4 sm:$0xff]  }
 0x1d6   :  { %2772 = vmatpush2.bf16.msra.mxu0 %v7463_v24  ;;  %2797 = vmatpush1.bf16.msra.mxu1 %v7466_v25  ;;  %v7534_v24 = vld [vmem:[#allocation8 + $0x4c0] ss:$20 sps:$4 sm:$0xff]  }
 0x1d7   :  { %2773 = vmatprep.subr.bf16.mxu0 %v7471_v26  ;;  %2798 = vmatprep.subr.bf16.mxu1 %v7474_v27  ;;  %v7535_v25 = vld [vmem:[#allocation8 + $0x100] ss:$20 sps:$4 sm:$0xff]   ;;  %v7537_v27 = vld [vmem:[#allocation8 + $0x218] ss:$20 sps:$4 sm:$0xff]  }
 0x1d8   :  { %v7536_v26 = vld [vmem:[#allocation8 + $0x380] ss:$20 sps:$4 sm:$0xff]  }
 0x1da   :  { %2774 = vmatpush2.bf16.msra.mxu0 %v7469_v28  ;;  %2799 = vmatpush1.bf16.msra.mxu1 %v7472_v29  ;;  %v7538_v28 = vld [vmem:[#allocation8 + $0x498] ss:$20 sps:$4 sm:$0xff]  }
 0x1db   :  { %2775 = vmatprep.subr.bf16.mxu0 %v7477_v30  ;;  %2800 = vmatprep.subr.bf16.mxu1 %v7480_v31  ;;  %v7539_v29 = vld [vmem:[#allocation8 + $0xd8] ss:$20 sps:$4 sm:$0xff]   ;;  %v7541_v31 = vld [vmem:[#allocation8 + $0x1f0] ss:$20 sps:$4 sm:$0xff]  }
 0x1dc   :  { %v7540_v30 = vld [vmem:[#allocation8 + $0x358] ss:$20 sps:$4 sm:$0xff]  }
 0x1de   :  { %2776 = vmatpush2.bf16.msra.mxu0 %v7475_v33  ;;  %2801 = vmatpush1.bf16.msra.mxu1 %v7478_v36  ;;  %v7542_v33 = vld [vmem:[#allocation8 + $0x470] ss:$20 sps:$4 sm:$0xff]  }
 0x1df   :  { %2802 = vmatprep.subr.bf16.mxu1 %v7483_v41  ;;  %2827 = vmatprep.subr.bf16.mxu0 %v7486_v42  ;;  %v7543_v36 = vld [vmem:[#allocation8 + $0xb0] ss:$20 sps:$4 sm:$0xff]   ;;  %v7545_v41 = vld [vmem:[#allocation8 + $0x1c8] ss:$20 sps:$4 sm:$0xff]  }
 0x1e0   :  { %v7547_v42 = vld [vmem:[#allocation8 + $0x88] ss:$20 sps:$4 sm:$0xff]  }
 0x1e1   :  { %2778 = vmatmul.mubr.bf16.vlgmr.msra.gmra.mxu0 %v8178_v34 }
 0x1e2   :  { %2803 = vmatpush2.bf16.msra.mxu1 %v7481_v43  ;;  %2828 = vmatpush1.bf16.msra.mxu0 %v7484_v44  ;;  %v7548_v43 = vld [vmem:[#allocation8 + $0x308] ss:$20 sps:$4 sm:$0xff]   ;;  %v7549_v44 = vld [vmem:[#allocation8 + $0x1a0] ss:$20 sps:$4 sm:$0xff]  }
 0x1e3   :  { %2804 = vmatprep.subr.bf16.mxu1 %v7489_v45  ;;  %2829 = vmatprep.subr.bf16.mxu0 %v7492_v46  ;;  %v7550_v45 = vld [vmem:[#allocation8 + $0x420] ss:$20 sps:$4 sm:$0xff]  }
 0x1e4   :  { %2859 = vmatprep.mubr.bf16.mxu0 %v8054_v0  ;;  %v7551_v46 = vld [vmem:[#allocation8 + $0x60] ss:$20 sps:$4 sm:$0xff]  }
 0x1e6   :  { %2805 = vmatpush2.bf16.msra.mxu1 %v7487_v47  ;;  %2830 = vmatpush1.bf16.msra.mxu0 %v7490_v48  ;;  %v7552_v47 = vld [vmem:[#allocation8 + $0x2e0] ss:$20 sps:$4 sm:$0xff]   ;;  %v7553_v48 = vld [vmem:[#allocation8 + $0x178] ss:$20 sps:$4 sm:$0xff]  }
 0x1e7   :  { %2806 = vmatprep.subr.bf16.mxu1 %v7495_v49  ;;  %2831 = vmatprep.subr.bf16.mxu0 %v7498_v50  ;;  %v7554_v49 = vld [vmem:[#allocation8 + $0x3f8] ss:$20 sps:$4 sm:$0xff]  }
 0x1e8   :  { %v7555_v50 = vld [vmem:[#allocation8 + $0x38] ss:$20 sps:$4 sm:$0xff]  }
 0x1ea   :  { %2807 = vmatpush2.bf16.msra.mxu1 %v7493_v52  ;;  %2832 = vmatpush1.bf16.msra.mxu0 %v7496_v53  ;;  %v7556_v52 = vld [vmem:[#allocation8 + $0x2b8] ss:$20 sps:$4 sm:$0xff]   ;;  %v7557_v53 = vld [vmem:[#allocation8 + $0x150] ss:$20 sps:$4 sm:$0xff]  }
 0x1eb   :  { %2808 = vmatprep.subr.bf16.mxu1 %v7501_v54  ;;  %2833 = vmatprep.subr.bf16.mxu0 %v7504_v56  ;;  %v7558_v54 = vld [vmem:[#allocation8 + $0x3d0] ss:$20 sps:$4 sm:$0xff]  }
 0x1ec   :  { %v7559_v56 = vld [vmem:[#allocation8 + $0x10] ss:$20 sps:$4 sm:$0xff]  }
 0x1ee   :  { %2809 = vmatpush2.bf16.msra.mxu1 %v7499_v57  ;;  %2834 = vmatpush1.bf16.msra.mxu0 %v7502_v59  ;;  %v7560_v57 = vld [vmem:[#allocation8 + $0x290] ss:$20 sps:$4 sm:$0xff]   ;;  %v7561_v59 = vld [vmem:[#allocation8 + $0x768] ss:$20 sps:$4 sm:$0xff]  }
 0x1ef   :  { %2810 = vmatprep.subr.bf16.mxu1 %v7507_v60  ;;  %2835 = vmatprep.subr.bf16.mxu0 %v7510_v61  ;;  %v8226_v60 = vld [vmem:[#allocation10] sm:$0x1f] }
 0x1f0   :  { %v1062_v61 = vrot.slane %v8226_v60, %v8157_v3 }
 0x1f2   :  { %2811 = vmatpush2.bf16.msra.mxu1 %v7505_v62  ;;  %2836 = vmatpush1.bf16.msra.mxu0 %v7508_v63  ;;  %v7562_v62 = vld [vmem:[#allocation8 + $0x628] ss:$20 sps:$4 sm:$0xff]  }
 0x1f3   :  { %2812 = vmatprep.subr.bf16.mxu1 %v7513_v1  ;;  %2837 = vmatprep.subr.bf16.mxu0 %v7516_v8  ;;  %v7563_v63 = vld [vmem:[#allocation8 + $0x8a8] ss:$20 sps:$4 sm:$0xff]   ;;  %v7564_v1 = vld [vmem:[#allocation8 + $0x740] ss:$20 sps:$4 sm:$0xff]  }
 0x1f6   :  { %2813 = vmatpush2.bf16.msra.mxu1 %v7511_v10  ;;  %2838 = vmatpush1.bf16.msra.mxu0 %v7514_v11 }
 0x1f7   :  { %2814 = vmatprep.subr.bf16.mxu1 %v7519_v12  ;;  %2839 = vmatprep.subr.bf16.mxu0 %v7522_v5  ;;  %v7565_v12 = vld [vmem:[#allocation8 + $0x600] ss:$20 sps:$4 sm:$0xff]  }
 0x1fa   :  { %2815 = vmatpush2.bf16.msra.mxu1 %v7517_v13  ;;  %2840 = vmatpush1.bf16.msra.mxu0 %v7520_v14  ;;  %v7566_v14 = vld [vmem:[#allocation8 + $0x880] ss:$20 sps:$4 sm:$0xff]  }
 0x1fb   :  { %2816 = vmatprep.subr.bf16.mxu1 %v7525_v15  ;;  %2841 = vmatprep.subr.bf16.mxu0 %v7528_v16  ;;  %v7567_v15 = vld [vmem:[#allocation8 + $0x718] ss:$20 sps:$4 sm:$0xff]  }
 0x1fe   :  { %2817 = vmatpush2.bf16.msra.mxu1 %v7523_v9  ;;  %2842 = vmatpush1.bf16.msra.mxu0 %v7526_v17 }
 0x1ff   :  { %6977 = vmatprep.subr.bf16.mxu0 %v7529_v18  ;;  %6999 = vmatprep.subr.bf16.mxu1 %v7530_v19  ;;  %v7569_v18 = vld [vmem:[#allocation8 + $0x858] ss:$20 sps:$4 sm:$0xff]   ;;  %v7570_v19 = vld [vmem:[#allocation8 + $0x6f0] ss:$20 sps:$4 sm:$0xff]  }
 0x201   :  { %2819 = vmatmul.mubr.bf16.vlgmr.msra.gmra.mxu1 %v8214_v20  ;;  %2860 = vmatmul.mubr.bf16.vlgmr.msra.gmra.mxu0 %v8201_v32 }
 0x202   :  { %6978 = vmatpush3.bf16.msra.mxu0 %v7531_v21  ;;  %2900 = vmatprep.mubr.bf16.mxu0 %v8180_v37  ;;  %v7544_v37 = vld [vmem:[#allocation8 + $0x330] ss:$20 sps:$4 sm:$0xff]  }
 0x203   :  { %7000 = vmatpush3.bf16.msra.mxu1 %v7532_v22  ;;  %2940 = vmatprep.mubr.bf16.mxu1 %v8182_v39  ;;  %v7546_v39 = vld [vmem:[#allocation8 + $0x448] ss:$20 sps:$4 sm:$0xff]   ;;  %v7571_v21 = vld [vmem:[#allocation8 + $0x5b0] ss:$20 sps:$4 sm:$0xff]  }
 0x204   :  { %6979 = vmatprep.subr.bf16.mxu0 %v7533_v23  ;;  %7001 = vmatprep.subr.bf16.mxu1 %v7534_v24  ;;  %v7572_v22 = vld [vmem:[#allocation8 + $0x830] ss:$20 sps:$4 sm:$0xff]   ;;  %v7573_v23 = vld [vmem:[#allocation8 + $0x6c8] ss:$20 sps:$4 sm:$0xff]  }
 0x205   :  { %v7574_v24 = vld [vmem:[#allocation8 + $0x588] ss:$20 sps:$4 sm:$0xff]  }
 0x206   :  { %6980 = vmatpush3.bf16.msra.mxu0 %v7535_v25  ;;  %v7575_v25 = vld [vmem:[#allocation8 + $0x808] ss:$20 sps:$4 sm:$0xff]  }
 0x207   :  { %7002 = vmatpush3.bf16.msra.mxu1 %v7536_v26  ;;  %6981 = vmatprep.subr.bf16.mxu0 %v7537_v27  ;;  %v7576_v26 = vld [vmem:[#allocation8 + $0x6a0] ss:$20 sps:$4 sm:$0xff]  }
 0x208   :  { %7003 = vmatprep.subr.bf16.mxu1 %v7538_v28  ;;  %v7577_v27 = vld [vmem:[#allocation8 + $0x560] ss:$20 sps:$4 sm:$0xff]  }
 0x209   :  { %v7578_v28 = vld [vmem:[#allocation8 + $0x7e0] ss:$20 sps:$4 sm:$0xff]  }
 0x20a   :  { %6982 = vmatpush3.bf16.msra.mxu0 %v7539_v29  ;;  %v7579_v29 = vld [vmem:[#allocation8 + $0x678] ss:$20 sps:$4 sm:$0xff]  }
 0x20b   :  { %7004 = vmatpush3.bf16.msra.mxu1 %v7540_v30  ;;  %6983 = vmatprep.subr.bf16.mxu0 %v7541_v31  ;;  %v7580_v30 = vld [vmem:[#allocation8 + $0x538] ss:$20 sps:$4 sm:$0xff]  }
 0x20c   :  { %7005 = vmatprep.subr.bf16.mxu1 %v7542_v33  ;;  %v7581_v31 = vld [vmem:[#allocation8 + $0x7b8] ss:$20 sps:$4 sm:$0xff]   ;;  %v7582_v33 = vld [vmem:[#allocation8 + $0x650] ss:$20 sps:$4 sm:$0xff]  }
 0x20e   :  { %6984 = vmatpush3.bf16.msra.mxu0 %v7543_v36  ;;  %v7583_v36 = vld [vmem:[#allocation8 + $0x510] ss:$20 sps:$4 sm:$0xff]  }
 0x20f   :  { %7006 = vmatpush3.bf16.msra.mxu1 %v7544_v37  ;;  %6985 = vmatprep.subr.bf16.mxu0 %v7545_v41  ;;  %v7584_v37 = vld [vmem:[#allocation8 + $0x790] ss:$20 sps:$4 sm:$0xff]   ;;  %v7587_v41 = vld [vmem:[#allocation11 + $0xe4] ss:$16 sps:$4 sm:$0xff]  }
 0x210   :  { %7007 = vmatprep.subr.bf16.mxu1 %v7546_v39  ;;  %v7635_v39 = vld [vmem:[#allocation11 + $0x2e4] ss:$16 sps:$4 sm:$0xff]  }
 0x212   :  { %6986 = vmatpush3.bf16.msra.mxu0 %v7547_v42  ;;  %v7585_v42 = vld [vmem:[#allocation11 + $0xe0] ss:$16 sps:$4 sm:$0xff]  }
 0x213   :  { %7008 = vmatpush3.bf16.msra.mxu1 %v7548_v43  ;;  %6987 = vmatprep.subr.bf16.mxu0 %v7549_v44  ;;  %v7590_v43 = vld [vmem:[#allocation11 + $0xc4] ss:$16 sps:$4 sm:$0xff]   ;;  %v7633_v44 = vld [vmem:[#allocation11 + $0x2e0] ss:$16 sps:$4 sm:$0xff]  }
 0x214   :  { %7009 = vmatprep.subr.bf16.mxu1 %v7550_v45  ;;  %v7638_v45 = vld [vmem:[#allocation11 + $0x2c4] ss:$16 sps:$4 sm:$0xff]  }
 0x216   :  { %6988 = vmatpush3.bf16.msra.mxu0 %v7551_v46 }
 0x217   :  { %7010 = vmatpush3.bf16.msra.mxu1 %v7552_v47  ;;  %6989 = vmatprep.subr.bf16.mxu0 %v7553_v48  ;;  %v7588_v47 = vld [vmem:[#allocation11 + $0xc0] ss:$16 sps:$4 sm:$0xff]  }
 0x218   :  { %7011 = vmatprep.subr.bf16.mxu1 %v7554_v49  ;;  %v7636_v49 = vld [vmem:[#allocation11 + $0x2c0] ss:$16 sps:$4 sm:$0xff]  }
 0x21a   :  { %6990 = vmatpush3.bf16.msra.mxu0 %v7555_v50  ;;  %v7641_v50 = vld [vmem:[#allocation11 + $0x2a4] ss:$16 sps:$4 sm:$0xff]  }
 0x21b   :  { %7012 = vmatpush3.bf16.msra.mxu1 %v7556_v52  ;;  %6991 = vmatprep.subr.bf16.mxu0 %v7557_v53  ;;  %v7591_v53 = vld [vmem:[#allocation11 + $0xa0] ss:$16 sps:$4 sm:$0xff]  }
 0x21c   :  { %7013 = vmatprep.subr.bf16.mxu1 %v7558_v54 }
 0x21e   :  { %6992 = vmatpush3.bf16.msra.mxu0 %v7559_v56  ;;  %v7596_v56 = vld [vmem:[#allocation11 + $0x84] ss:$16 sps:$4 sm:$0xff]  }
 0x21f   :  { %7014 = vmatpush3.bf16.msra.mxu1 %v7560_v57  ;;  %7021 = vmatprep.subr.bf16.mxu0 %v7561_v59  ;;  %v7594_v57 = vld [vmem:[#allocation11 + $0x80] ss:$16 sps:$4 sm:$0xff]   ;;  %v7599_v59 = vld [vmem:[#allocation11 + $0x64] ss:$16 sps:$4 sm:$0xff]  }
 0x220   :  { %7072 = vmatprep.subr.bf16.mxu1 %v8055_v38 }
 0x221   :  { %2901 = vmatmul.mubr.bf16.vlgmr.msra.gmra.mxu0 %v8184_v40  ;;  %v2574_v8 = vpop.f32.mrf.mxu0  ;;  %v2615_v10 = vpop.f32.mrf.mxu1 }
 0x222   :  { %2941 = vmatmul.mubr.bf16.vlgmr.msra.gmra.mxu1 %v8178_v34  ;;  %v2575_v11 = vadd.f32 %v2574_v8, %v1062_v61  ;;  %7022 = vmatpush3.bf16.msra.mxu0 %v7562_v62  ;;  %v7568_v34 = vld [vmem:[#allocation8 + $0x5d8] ss:$20 sps:$4 sm:$0xff]  }
 0x223   :  { %2980 = vmatprep.mubr.bf16.mxu0 %v8203_v35  ;;  %7073 = vmatpush3.bf16.msra.mxu1 %v7563_v63  ;;  %v8234_v5 = vpop.f32.mrf.mxu0  ;;  %v8236_v13 = vpop.f32.mrf.mxu1  ;;  %v7642_v61 = vld [vmem:[#allocation11 + $0x280] ss:$16 sps:$4 sm:$0xff]   ;;  %v7647_v62 = vld [vmem:[#allocation11 + $0x264] ss:$16 sps:$4 sm:$0xff]  }
 0x224   :  { %v8238_v16 = vadd.f32 %v2615_v10, %v2575_v11  ;;  %7023 = vmatprep.subr.bf16.mxu0 %v7564_v1  ;;  %7074 = vmatprep.subr.bf16.mxu1 %v8055_v38  ;;  %v7597_v63 = vld [vmem:[#allocation11 + $0x60] ss:$16 sps:$4 sm:$0xff]   ;;  %v7602_v1 = vld [vmem:[#allocation11 + $0x44] ss:$16 sps:$4 sm:$0xff]  }
 0x225   :  { %v2578_v40 = vpop.f32.mrf.mxu0  ;;  %v2619_v9 = vpop.f32.mrf.mxu1  ;;  %7088 = vmatprep.mubr.msk.bf16.mxu1 %vm8056_vm0, %v8055_v38  ;;  %v7645_v8 = vld [vmem:[#allocation11 + $0x260] ss:$16 sps:$4 sm:$0xff]   ;;  %v7650_v10 = vld [vmem:[#allocation11 + $0x244] ss:$16 sps:$4 sm:$0xff]  }
 0x226   :  { %7024 = vmatpush3.bf16.msra.mxu0 %v7565_v12  ;;  %v7600_v11 = vld [vmem:[#allocation11 + $0x40] ss:$16 sps:$4 sm:$0xff]   ;;  %v7605_v12 = vld [vmem:[#allocation11 + $0x24] ss:$16 sps:$4 sm:$0xff]  }
 0x227   :  { %7075 = vmatpush3.bf16.msra.mxu1 %v7566_v14  ;;  %v2579_v35 = vpop.f32.mrf.mxu0  ;;  %v2620_v17 = vpop.f32.mrf.mxu1  ;;  %7025 = vmatprep.subr.bf16.mxu0 %v7567_v15  ;;  %v7648_v14 = vld [vmem:[#allocation11 + $0x240] ss:$16 sps:$4 sm:$0xff]   ;;  %v7653_v15 = vld [vmem:[#allocation11 + $0x224] ss:$16 sps:$4 sm:$0xff]  }
 0x228   :  { %7076 = vmatprep.subr.bf16.mxu1 %v8055_v38  ;;  %v7603_v40 = vld [vmem:[#allocation11 + $0x20] ss:$16 sps:$4 sm:$0xff]   ;;  %v7608_v9 = vld [vmem:[#allocation11 + $0x4] ss:$16 sps:$4 sm:$0xff]   ;;  %v1066_v17 = vrot.slane %v8226_v60, %v8165_v6 }
 0x229   :  { %v7656_v35 = vld [vmem:[#allocation11 + $0x204] ss:$16 sps:$4 sm:$0xff]  }
 0x22a   :  { %7026 = vmatpush3.bf16.msra.mxu0 %v7568_v34  ;;  %v7651_v34 = vld [vmem:[#allocation11 + $0x220] ss:$16 sps:$4 sm:$0xff]  }
 0x22b   :  { %7077 = vmatpush3.bf16.msra.mxu1 %v7569_v18  ;;  %7027 = vmatprep.subr.bf16.mxu0 %v7570_v19  ;;  %v7606_v18 = vld [vmem:[#allocation11] ss:$16 sps:$4 sm:$0xff]   ;;  %v7611_v19 = vld [vmem:[#allocation11 + $0x1e4] ss:$16 sps:$4 sm:$0xff]  }
 0x22c   :  { %7078 = vmatprep.subr.bf16.mxu1 %v8055_v38 }
 0x22e   :  { %7028 = vmatpush3.bf16.msra.mxu0 %v7571_v21  ;;  %v7654_v21 = vld [vmem:[#allocation11 + $0x200] ss:$16 sps:$4 sm:$0xff]  }
 0x22f   :  { %7079 = vmatpush3.bf16.msra.mxu1 %v7572_v22  ;;  %7029 = vmatprep.subr.bf16.mxu0 %v7573_v23  ;;  %v7659_v22 = vld [vmem:[#allocation11 + $0x3e4] ss:$16 sps:$4 sm:$0xff]   ;;  %v2577_v23 = vadd.f32 %v8234_v5, %v1066_v17 }
 0x230   :  { %7080 = vmatprep.subr.bf16.mxu1 %v8055_v38  ;;  %v7665_v5 = vld [vmem:[#allocation11 + $0x3a4] ss:$16 sps:$4 sm:$0xff]  }
 0x231   :  { %v7716_v17 = vld [vmem:[#allocation11 + $0x4c4] ss:$16 sps:$4 sm:$0xff]  }
 0x232   :  { %7030 = vmatpush3.bf16.msra.mxu0 %v7574_v24  ;;  %v7609_v24 = vld [vmem:[#allocation11 + $0x1e0] ss:$16 sps:$4 sm:$0xff]  }
 0x233   :  { %7081 = vmatpush3.bf16.msra.mxu1 %v7575_v25  ;;  %7031 = vmatprep.subr.bf16.mxu0 %v7576_v26  ;;  %v7614_v25 = vld [vmem:[#allocation11 + $0x1c4] ss:$16 sps:$4 sm:$0xff]   ;;  %v7657_v26 = vld [vmem:[#allocation11 + $0x3e0] ss:$16 sps:$4 sm:$0xff]  }
 0x234   :  { %7082 = vmatprep.subr.bf16.mxu1 %v8055_v38 }
 0x236   :  { %7032 = vmatpush3.bf16.msra.mxu0 %v7577_v27  ;;  %v7662_v27 = vld [vmem:[#allocation11 + $0x3c4] ss:$16 sps:$4 sm:$0xff]  }
 0x237   :  { %7083 = vmatpush3.bf16.msra.mxu1 %v7578_v28  ;;  %7033 = vmatprep.subr.bf16.mxu0 %v7579_v29  ;;  %v2618_v29 = vadd.f32 %v8236_v13, %v2577_v23  ;;  %v7663_v13 = vld [vmem:[#allocation11 + $0x3a0] ss:$16 sps:$4 sm:$0xff]  }
 0x238   :  { %7084 = vmatprep.subr.bf16.mxu1 %v8055_v38 }
 0x23a   :  { %7034 = vmatpush3.bf16.msra.mxu0 %v7580_v30  ;;  %v7612_v30 = vld [vmem:[#allocation11 + $0x1c0] ss:$16 sps:$4 sm:$0xff]  }
 0x23b   :  { %7085 = vmatpush3.bf16.msra.mxu1 %v7581_v31  ;;  %7035 = vmatprep.subr.bf16.mxu0 %v7582_v33  ;;  %v7617_v33 = vld [vmem:[#allocation11 + $0x1a4] ss:$16 sps:$4 sm:$0xff]  }
 0x23c   :  { %7086 = vmatprep.subr.bf16.mxu1 %v8055_v38  ;;  %v7593_v38 = vld [vmem:[#allocation11 + $0xa4] ss:$16 sps:$4 sm:$0xff]  }
 0x23e   :  { %7036 = vmatpush3.bf16.msra.mxu0 %v7583_v36  ;;  %v7660_v36 = vld [vmem:[#allocation11 + $0x3c0] ss:$16 sps:$4 sm:$0xff]  }
 0x23f   :  { %7087 = vmatpush3.bf16.msra.mxu1 %v7584_v37  ;;  %4025 = vmatprep.subr.bf16.mxu0 %v7587_v41 }
 0x240   :  { %4066 = vmatprep.subr.bf16.mxu1 %v7635_v39 }
 0x241   :  { %v8249_v46 = vpop.f32.mrf.mxu1  ;;  %2981 = vmatmul.mubr.bf16.vlgmr.msra.gmra.mxu0 %v8214_v20  ;;  %v7639_v20 = vld [vmem:[#allocation11 + $0x2a0] ss:$16 sps:$4 sm:$0xff]  }
 0x242   :  { %7089 = vmatmul.mubr.bf16.vlgmr.msra.gmra.mxu1 %v8201_v32  ;;  %4026 = vmatpush1.bf16.msra.mxu0 %v7585_v42  ;;  %v7644_v32 = vld [vmem:[#allocation11 + $0x284] ss:$16 sps:$4 sm:$0xff]   ;;  %v7615_v42 = vld [vmem:[#allocation11 + $0x1a0] ss:$16 sps:$4 sm:$0xff]  }
 0x243   :  { %v8253_v48 = vpop.f32.mrf.mxu1  ;;  %4027 = vmatprep.subr.bf16.mxu0 %v7590_v43  ;;  %4067 = vmatpush1.bf16.msra.mxu1 %v7633_v44  ;;  %v7620_v44 = vld [vmem:[#allocation11 + $0x184] ss:$16 sps:$4 sm:$0xff]  }
 0x244   :  { %4068 = vmatprep.subr.bf16.mxu1 %v7638_v45 }
 0x245   :  { %v2701_v52 = vpop.f32.mrf.mxu1 }
 0x246   :  { %4028 = vmatpush1.bf16.msra.mxu0 %v7588_v47  ;;  %v7668_v47 = vld [vmem:[#allocation11 + $0x384] ss:$16 sps:$4 sm:$0xff]   ;;  %v7666_v52 = vld [vmem:[#allocation11 + $0x380] ss:$16 sps:$4 sm:$0xff]  }
 0x247   :  { %v2702_v54 = vpop.f32.mrf.mxu1  ;;  %4029 = vmatprep.subr.bf16.mxu0 %v7593_v38  ;;  %4069 = vmatpush1.bf16.msra.mxu1 %v7636_v49  ;;  %v7618_v38 = vld [vmem:[#allocation11 + $0x180] ss:$16 sps:$4 sm:$0xff]  }
 0x248   :  { %4070 = vmatprep.subr.bf16.mxu1 %v7641_v50  ;;  %v7623_v50 = vld [vmem:[#allocation11 + $0x164] ss:$16 sps:$4 sm:$0xff]   ;;  %v7621_v54 = vld [vmem:[#allocation11 + $0x160] ss:$16 sps:$4 sm:$0xff]  }
 0x24a   :  { %4030 = vmatpush1.bf16.msra.mxu0 %v7591_v53 }
 0x24b   :  { %4031 = vmatprep.subr.bf16.mxu0 %v7596_v56  ;;  %4071 = vmatpush1.bf16.msra.mxu1 %v7639_v20  ;;  %v7626_v20 = vld [vmem:[#allocation11 + $0x144] ss:$16 sps:$4 sm:$0xff]  }
 0x24c   :  { %4072 = vmatprep.subr.bf16.mxu1 %v7644_v32  ;;  %v7669_v32 = vld [vmem:[#allocation11 + $0x360] ss:$16 sps:$4 sm:$0xff]  }
 0x24e   :  { %4032 = vmatpush1.bf16.msra.mxu0 %v7594_v57  ;;  %v7674_v57 = vld [vmem:[#allocation11 + $0x344] ss:$16 sps:$4 sm:$0xff]  }
 0x24f   :  { %4033 = vmatprep.subr.bf16.mxu0 %v7599_v59  ;;  %4073 = vmatpush1.bf16.msra.mxu1 %v7642_v61  ;;  %v7624_v59 = vld [vmem:[#allocation11 + $0x140] ss:$16 sps:$4 sm:$0xff]  }
 0x250   :  { %4074 = vmatprep.subr.bf16.mxu1 %v7647_v62  ;;  %v7629_v62 = vld [vmem:[#allocation11 + $0x124] ss:$16 sps:$4 sm:$0xff]  }
 0x252   :  { %4034 = vmatpush1.bf16.msra.mxu0 %v7597_v63  ;;  %v7672_v63 = vld [vmem:[#allocation11 + $0x340] ss:$16 sps:$4 sm:$0xff]  }
 0x253   :  { %4035 = vmatprep.subr.bf16.mxu0 %v7602_v1  ;;  %4075 = vmatpush1.bf16.msra.mxu1 %v7645_v8  ;;  %v7677_v1 = vld [vmem:[#allocation11 + $0x324] ss:$16 sps:$4 sm:$0xff]   ;;  %v7627_v8 = vld [vmem:[#allocation11 + $0x120] ss:$16 sps:$4 sm:$0xff]  }
 0x254   :  { %4076 = vmatprep.subr.bf16.mxu1 %v7650_v10 }
 0x256   :  { %4036 = vmatpush1.bf16.msra.mxu0 %v7600_v11  ;;  %v7675_v11 = vld [vmem:[#allocation11 + $0x320] ss:$16 sps:$4 sm:$0xff]  }
 0x257   :  { %4037 = vmatprep.subr.bf16.mxu0 %v7605_v12  ;;  %4077 = vmatpush1.bf16.msra.mxu1 %v7648_v14  ;;  %v7680_v12 = vld [vmem:[#allocation11 + $0x304] ss:$16 sps:$4 sm:$0xff]   ;;  %v7630_v14 = vld [vmem:[#allocation11 + $0x100] ss:$16 sps:$4 sm:$0xff]  }
 0x258   :  { %4078 = vmatprep.subr.bf16.mxu1 %v7653_v15 }
 0x25a   :  { %4038 = vmatpush1.bf16.msra.mxu0 %v7603_v40  ;;  %v7710_v40 = vld [vmem:[#allocation11 + $0x4e4] ss:$16 sps:$4 sm:$0xff]  }
 0x25b   :  { %4039 = vmatprep.subr.bf16.mxu0 %v7608_v9  ;;  %4079 = vmatpush1.bf16.msra.mxu1 %v7651_v34  ;;  %v7683_v9 = vld [vmem:[#allocation11 + $0xec] ss:$16 sps:$4 sm:$0xff]   ;;  %v7708_v34 = vld [vmem:[#allocation11 + $0x4e0] ss:$16 sps:$4 sm:$0xff]  }
 0x25c   :  { %4080 = vmatprep.subr.bf16.mxu1 %v7656_v35 }
 0x25e   :  { %4040 = vmatpush1.bf16.msra.mxu0 %v7606_v18 }
 0x25f   :  { %4041 = vmatprep.subr.bf16.mxu0 %v7611_v19  ;;  %4081 = vmatpush1.bf16.msra.mxu1 %v7654_v21  ;;  %v7714_v19 = vld [vmem:[#allocation11 + $0x4c0] ss:$16 sps:$4 sm:$0xff]  }
 0x260   :  { %4082 = vmatprep.subr.bf16.mxu1 %v7659_v22  ;;  %v7722_v22 = vld [vmem:[#allocation11 + $0x4a4] ss:$16 sps:$4 sm:$0xff]  }
 0x261   :  { %v2656_v28 = vpop.f32.mrf.mxu0 }
 0x262   :  { %4042 = vmatpush2.bf16.msra.mxu0 %v7609_v24  ;;  %v2657_v56 = vadd.f32 %v2656_v28, %v8238_v16  ;;  %v7632_v16 = vld [vmem:[#allocation11 + $0x104] ss:$16 sps:$4 sm:$0xff]   ;;  %v7720_v24 = vld [vmem:[#allocation11 + $0x4a0] ss:$16 sps:$4 sm:$0xff]  }
 0x263   :  { %v2658_v31 = vpop.f32.mrf.mxu0  ;;  %4043 = vmatprep.subr.bf16.mxu0 %v7614_v25  ;;  %4083 = vmatpush2.bf16.msra.mxu1 %v7657_v26  ;;  %v7728_v26 = vld [vmem:[#allocation11 + $0x484] ss:$16 sps:$4 sm:$0xff]  }
 0x264   :  { %v2659_v37 = vadd.f32 %v2658_v31, %v2618_v29  ;;  %4084 = vmatprep.subr.bf16.mxu1 %v7662_v27  ;;  %v2698_v61 = vadd.f32 %v8249_v46, %v2657_v56  ;;  %v7678_v46 = vld [vmem:[#allocation11 + $0x300] ss:$16 sps:$4 sm:$0xff]   ;;  %v7734_v28 = vld [vmem:[#allocation11 + $0x464] ss:$16 sps:$4 sm:$0xff]  }
 0x265   :  { %v2660_v41 = vpop.f32.mrf.mxu0  ;;  %v7726_v27 = vld [vmem:[#allocation11 + $0x480] ss:$16 sps:$4 sm:$0xff]  }
 0x266   :  { %v2700_v39 = vadd.f32 %v8253_v48, %v2659_v37  ;;  %4044 = vmatpush2.bf16.msra.mxu0 %v7612_v30  ;;  %v7671_v48 = vld [vmem:[#allocation11 + $0x364] ss:$16 sps:$4 sm:$0xff]   ;;  %v3028_v10 = vmul.f32 0.01, %v2698_v61  ;;  %v7732_v29 = vld [vmem:[#allocation11 + $0x460] ss:$16 sps:$4 sm:$0xff]  }
 0x267   :  { %v2661_v43 = vpop.f32.mrf.mxu0  ;;  %4045 = vmatprep.subr.bf16.mxu0 %v7617_v33  ;;  %4085 = vmatpush2.bf16.msra.mxu1 %v7660_v36  ;;  %v7740_v30 = vld [vmem:[#allocation11 + $0x444] ss:$16 sps:$4 sm:$0xff]   ;;  %v7738_v31 = vld [vmem:[#allocation11 + $0x440] ss:$16 sps:$4 sm:$0xff]   ;;  %v7758_v41 = vld [vmem:[#allocation11 + $0x2ec] ss:$16 sps:$4 sm:$0xff]  }
 0x268   :  { %v3029_v45 = vmul.f32 0.01, %v2700_v39  ;;  %4086 = vmatprep.subr.bf16.mxu1 %v7665_v5  ;;  %v3033_v15 = vmax.f32 %v2698_v61, %v3028_v10  ;;  %v7746_v33 = vld [vmem:[#allocation11 + $0x424] ss:$16 sps:$4 sm:$0xff]   ;;  %v7744_v36 = vld [vmem:[#allocation11 + $0x420] ss:$16 sps:$4 sm:$0xff]  }
 0x269   :  { %v7752_v37 = vld [vmem:[#allocation11 + $0x404] ss:$16 sps:$4 sm:$0xff]   ;;  %v7750_v5 = vld [vmem:[#allocation11 + $0x400] ss:$16 sps:$4 sm:$0xff]  }
 0x26a   :  { %4046 = vmatpush2.bf16.msra.mxu0 %v7615_v42  ;;  %v3034_v49 = vmax.f32 %v2700_v39, %v3029_v45  ;;  %v8265_v35 = vpack.c.bf16 %v3033_v15, %v3033_v15  ;;  %v1074_v45 = vrot.slane %v8226_v60, %v8168_v7 }
 0x26b   :  { %4047 = vmatprep.subr.bf16.mxu0 %v7620_v44  ;;  %4087 = vmatpush2.bf16.msra.mxu1 %v7663_v13  ;;  %v1070_v13 = vrot.slane %v8226_v60, %v8160_v4 }
 0x26c   :  { %v8260_v53 = vpack.c.bf16 %v3034_v49, %v3034_v49  ;;  %4088 = vmatprep.subr.bf16.mxu1 %v7668_v47 }
 0x26e   :  { %4048 = vmatpush2.bf16.msra.mxu0 %v7618_v38  ;;  %4057 = vmatprep.mubr.bf16.mxu0 %v8260_v53 }
 0x26f   :  { %4049 = vmatprep.subr.bf16.mxu0 %v7623_v50  ;;  %4089 = vmatpush2.bf16.msra.mxu1 %v7666_v52 }
 0x270   :  { %4090 = vmatprep.subr.bf16.mxu1 %v7671_v48 }
 0x272   :  { %4050 = vmatpush2.bf16.msra.mxu0 %v7621_v54 }
 0x273   :  { %4051 = vmatprep.subr.bf16.mxu0 %v7626_v20  ;;  %4091 = vmatpush2.bf16.msra.mxu1 %v7669_v32 }
 0x274   :  { %4092 = vmatprep.subr.bf16.mxu1 %v7674_v57 }
 0x276   :  { %4052 = vmatpush2.bf16.msra.mxu0 %v7624_v59 }
 0x277   :  { %4053 = vmatprep.subr.bf16.mxu0 %v7629_v62  ;;  %4093 = vmatpush2.bf16.msra.mxu1 %v7672_v63 }
 0x278   :  { %4094 = vmatprep.subr.bf16.mxu1 %v7677_v1 }
 0x27a   :  { %4054 = vmatpush2.bf16.msra.mxu0 %v7627_v8 }
 0x27b   :  { %4055 = vmatprep.subr.bf16.mxu0 %v7632_v16  ;;  %4095 = vmatpush2.bf16.msra.mxu1 %v7675_v11 }
 0x27c   :  { %4096 = vmatprep.subr.bf16.mxu1 %v7680_v12 }
 0x27e   :  { %4056 = vmatpush2.bf16.msra.mxu0 %v7630_v14  ;;  %v7681_v14 = vld [vmem:[#allocation11 + $0xe8] ss:$16 sps:$4 sm:$0xff]  }
 0x27f   :  { %4097 = vmatpush2.bf16.msra.mxu1 %v7678_v46  ;;  %4107 = vmatprep.subr.bf16.mxu0 %v7710_v40  ;;  %v7686_v46 = vld [vmem:[#allocation11 + $0xcc] ss:$16 sps:$4 sm:$0xff]   ;;  %v7684_v40 = vld [vmem:[#allocation11 + $0xc8] ss:$16 sps:$4 sm:$0xff]  }
 0x280   :  { %4148 = vmatprep.subr.bf16.mxu1 %v7683_v9  ;;  %v7689_v9 = vld [vmem:[#allocation11 + $0xac] ss:$16 sps:$4 sm:$0xff]  }
 0x281   :  { %v2738_v18 = vpop.f32.mrf.mxu1  ;;  %4058 = vmatmul.mubr.bf16.vlgmr.msra.gmra.mxu0 %v8265_v35 }
 0x282   :  { %4108 = vmatpush1.bf16.msra.mxu0 %v7708_v34  ;;  %4139 = vmatprep.mubr.bf16.mxu0 %v8054_v0  ;;  %v2739_v47 = vadd.f32 %v2738_v18, %v1070_v13  ;;  %v7687_v34 = vld [vmem:[#allocation11 + $0xa8] ss:$16 sps:$4 sm:$0xff]   ;;  %v7725_v13 = vld [vmem:[#allocation11 + $0x18c] ss:$16 sps:$4 sm:$0xff]  }
 0x283   :  { %v2740_v21 = vpop.f32.mrf.mxu1  ;;  %4109 = vmatprep.subr.bf16.mxu0 %v7716_v17  ;;  %v7692_v17 = vld [vmem:[#allocation11 + $0x8c] ss:$16 sps:$4 sm:$0xff]   ;;  %v7690_v18 = vld [vmem:[#allocation11 + $0x88] ss:$16 sps:$4 sm:$0xff]  }
 0x284   :  { %v2741_v38 = vadd.f32 %v2740_v21, %v1074_v45  ;;  %v7693_v21 = vld [vmem:[#allocation11 + $0x68] ss:$16 sps:$4 sm:$0xff]  }
 0x285   :  { %v2742_v23 = vpop.f32.mrf.mxu1  ;;  %v7723_v45 = vld [vmem:[#allocation11 + $0x188] ss:$16 sps:$4 sm:$0xff]  }
 0x286   :  { %4110 = vmatpush1.bf16.msra.mxu0 %v7714_v19  ;;  %v7695_v19 = vld [vmem:[#allocation11 + $0x6c] ss:$16 sps:$4 sm:$0xff]   ;;  %v7696_v23 = vld [vmem:[#allocation11 + $0x48] ss:$16 sps:$4 sm:$0xff]  }
 0x287   :  { %v2743_v25 = vpop.f32.mrf.mxu1  ;;  %4111 = vmatprep.subr.bf16.mxu0 %v7722_v22  ;;  %v7698_v22 = vld [vmem:[#allocation11 + $0x4c] ss:$16 sps:$4 sm:$0xff]  }
 0x28a   :  { %4112 = vmatpush1.bf16.msra.mxu0 %v7720_v24 }
 0x28b   :  { %4113 = vmatprep.subr.bf16.mxu0 %v7728_v26 }
 0x28e   :  { %4114 = vmatpush1.bf16.msra.mxu0 %v7726_v27 }
 0x28f   :  { %4115 = vmatprep.subr.bf16.mxu0 %v7734_v28  ;;  %v7699_v28 = vld [vmem:[#allocation11 + $0x28] ss:$16 sps:$4 sm:$0xff]  }
 0x292   :  { %4116 = vmatpush1.bf16.msra.mxu0 %v7732_v29 }
 0x293   :  { %4117 = vmatprep.subr.bf16.mxu0 %v7740_v30  ;;  %v7704_v30 = vld [vmem:[#allocation11 + $0xc] ss:$16 sps:$4 sm:$0xff]  }
 0x296   :  { %4118 = vmatpush1.bf16.msra.mxu0 %v7738_v31 }
 0x297   :  { %4119 = vmatprep.subr.bf16.mxu0 %v7746_v33 }
 0x29a   :  { %4120 = vmatpush1.bf16.msra.mxu0 %v7744_v36 }
 0x29b   :  { %4121 = vmatprep.subr.bf16.mxu0 %v7752_v37  ;;  %v7702_v37 = vld [vmem:[#allocation11 + $0x8] ss:$16 sps:$4 sm:$0xff]  }
 0x29e   :  { %4122 = vmatpush1.bf16.msra.mxu0 %v7750_v5  ;;  %v7707_v5 = vld [vmem:[#allocation11 + $0x1ec] ss:$16 sps:$4 sm:$0xff]  }
 0x29f   :  { %4189 = vmatprep.subr.bf16.mxu0 %v7758_v41  ;;  %v7705_v41 = vld [vmem:[#allocation11 + $0x1e8] ss:$16 sps:$4 sm:$0xff]  }
 0x2a1   :  { %v2779_v39 = vpop.f32.mrf.mxu0 }
 0x2a2   :  { %v2780_v49 = vadd.f32 %v2779_v39, %v2739_v47  ;;  %v7713_v39 = vld [vmem:[#allocation11 + $0x1cc] ss:$16 sps:$4 sm:$0xff]  }
 0x2a3   :  { %v2781_v42 = vpop.f32.mrf.mxu0  ;;  %v7731_v47 = vld [vmem:[#allocation11 + $0x16c] ss:$16 sps:$4 sm:$0xff]  }
 0x2a4   :  { %v2782_v48 = vadd.f32 %v2781_v42, %v2741_v38  ;;  %v7711_v42 = vld [vmem:[#allocation11 + $0x1c8] ss:$16 sps:$4 sm:$0xff]   ;;  %v1078_v38 = vrot.slane %v8226_v60, %v8209_v51 }
 0x2a5   :  { %v2783_v43 = vpop.f32.mrf.mxu0 }
 0x2a6   :  { %v7719_v43 = vld [vmem:[#allocation11 + $0x1ac] ss:$16 sps:$4 sm:$0xff]  }
 0x2a7   :  { %v2784_v44 = vpop.f32.mrf.mxu0 }
 0x2a8   :  { %v7717_v44 = vld [vmem:[#allocation11 + $0x1a8] ss:$16 sps:$4 sm:$0xff]  }
 0x2c1   :  { %v2820_v50 = vpop.f32.mrf.mxu1  ;;  %v2861_v52 = vpop.f32.mrf.mxu0 }
 0x2c2   :  { %v2821_v54 = vadd.f32 %v2820_v50, %v2780_v49  ;;  %v7729_v50 = vld [vmem:[#allocation11 + $0x168] ss:$16 sps:$4 sm:$0xff]  }
 0x2c3   :  { %v2822_v56 = vpop.f32.mrf.mxu1  ;;  %v2863_v20 = vpop.f32.mrf.mxu0 }
 0x2c4   :  { %v2862_v32 = vadd.f32 %v2861_v52, %v2821_v54  ;;  %v2823_v57 = vadd.f32 %v2822_v56, %v2782_v48  ;;  %v7737_v52 = vld [vmem:[#allocation11 + $0x14c] ss:$16 sps:$4 sm:$0xff]   ;;  %v7735_v54 = vld [vmem:[#allocation11 + $0x148] ss:$16 sps:$4 sm:$0xff]  }
 0x2c5   :  { %v2824_v59 = vpop.f32.mrf.mxu1  ;;  %v2865_v61 = vpop.f32.mrf.mxu0 }
 0x2c6   :  { %v3030_v62 = vmul.f32 0.01, %v2862_v32  ;;  %v2864_v63 = vadd.f32 %v2863_v20, %v2823_v57  ;;  %v7743_v20 = vld [vmem:[#allocation11 + $0x12c] ss:$16 sps:$4 sm:$0xff]  }
 0x2c7   :  { %v2825_v1 = vpop.f32.mrf.mxu1  ;;  %v2866_v8 = vpop.f32.mrf.mxu0 }
 0x2c8   :  { %v3031_v10 = vmul.f32 0.01, %v2864_v63  ;;  %v3035_v16 = vmax.f32 %v2862_v32, %v3030_v62  ;;  %v7741_v1 = vld [vmem:[#allocation11 + $0x128] ss:$16 sps:$4 sm:$0xff]   ;;  %v7749_v8 = vld [vmem:[#allocation11 + $0x10c] ss:$16 sps:$4 sm:$0xff]  }
 0x2ca   :  { %v3036_v11 = vmax.f32 %v2864_v63, %v3031_v10  ;;  %v8275_v15 = vpack.c.bf16 %v3035_v16, %v3035_v16 }
 0x2cc   :  { %v8273_v12 = vpack.c.bf16 %v3036_v11, %v3036_v11 }
 0x2ce   :  { %4098 = vmatprep.mubr.bf16.mxu1 %v8273_v12 }
 0x2cf   :  { %4099 = vmatmul.mubr.bf16.vlgmr.msra.gmra.mxu1 %v8275_v15 }
 0x2d0   :  { %4149 = vmatpush1.bf16.msra.mxu1 %v7681_v14  ;;  %4180 = vmatprep.mubr.bf16.mxu1 %v8260_v53  ;;  %v7701_v53 = vld [vmem:[#allocation11 + $0x2c] ss:$16 sps:$4 sm:$0xff]  }
 0x2d1   :  { %4150 = vmatprep.subr.bf16.mxu1 %v7686_v46 }
 0x2d4   :  { %4151 = vmatpush1.bf16.msra.mxu1 %v7684_v40  ;;  %v7747_v40 = vld [vmem:[#allocation11 + $0x108] ss:$16 sps:$4 sm:$0xff]  }
 0x2d5   :  { %4152 = vmatprep.subr.bf16.mxu1 %v7689_v9  ;;  %v7755_v9 = vld [vmem:[#allocation11 + $0x4ec] ss:$16 sps:$4 sm:$0xff]  }
 0x2d8   :  { %4153 = vmatpush1.bf16.msra.mxu1 %v7687_v34 }
 0x2d9   :  { %4154 = vmatprep.subr.bf16.mxu1 %v7692_v17 }
 0x2dc   :  { %4155 = vmatpush1.bf16.msra.mxu1 %v7690_v18  ;;  %v7753_v18 = vld [vmem:[#allocation11 + $0x4e8] ss:$16 sps:$4 sm:$0xff]  }
 0x2dd   :  { %4156 = vmatprep.subr.bf16.mxu1 %v7695_v19  ;;  %v7756_v19 = vld [vmem:[#allocation11 + $0x2e8] ss:$16 sps:$4 sm:$0xff]  }
 0x2e0   :  { %4157 = vmatpush1.bf16.msra.mxu1 %v7693_v21 }
 0x2e1   :  { %v6993_v24 = vpop.f32.mrf.mxu0  ;;  %4158 = vmatprep.subr.bf16.mxu1 %v7698_v22  ;;  %v7761_v22 = vld [vmem:[#allocation11 + $0x4cc] ss:$16 sps:$4 sm:$0xff]  }
 0x2e2   :  { %v7015_v25 = vpop.f32.mrf.mxu1 }
 0x2e3   :  { %v6994_v26 = vpop.f32.mrf.mxu0 }
 0x2e4   :  { %v7016_v27 = vpop.f32.mrf.mxu1  ;;  %4159 = vmatpush1.bf16.msra.mxu1 %v7696_v23  ;;  %v6995_v49 = vadd.f32 %v6994_v26, %v6993_v24  ;;  %v7764_v23 = vld [vmem:[#allocation11 + $0x2cc] ss:$16 sps:$4 sm:$0xff]   ;;  %v7759_v24 = vld [vmem:[#allocation11 + $0x4c8] ss:$16 sps:$4 sm:$0xff]  }
 0x2e5   :  { %v6996_v29 = vpop.f32.mrf.mxu0  ;;  %4160 = vmatprep.subr.bf16.mxu1 %v7701_v53  ;;  %v7017_v32 = vadd.f32 %v7016_v27, %v7015_v25  ;;  %v7762_v53 = vld [vmem:[#allocation11 + $0x2c8] ss:$16 sps:$4 sm:$0xff]   ;;  %v7767_v25 = vld [vmem:[#allocation11 + $0x4ac] ss:$16 sps:$4 sm:$0xff]  }
 0x2e6   :  { %v7018_v31 = vpop.f32.mrf.mxu1  ;;  %v2903_v48 = vadd.f32 %v6995_v49, %v1078_v38  ;;  %v7770_v26 = vld [vmem:[#allocation11 + $0x2ac] ss:$16 sps:$4 sm:$0xff]   ;;  %v7765_v27 = vld [vmem:[#allocation11 + $0x4a8] ss:$16 sps:$4 sm:$0xff]  }
 0x2e7   :  { %v6997_v33 = vpop.f32.mrf.mxu0  ;;  %v7776_v29 = vld [vmem:[#allocation11 + $0x28c] ss:$16 sps:$4 sm:$0xff]   ;;  %v7795_v38 = vld [vmem:[#allocation11 + $0x408] ss:$16 sps:$4 sm:$0xff]  }
 0x2e8   :  { %v7019_v36 = vpop.f32.mrf.mxu1  ;;  %4161 = vmatpush1.bf16.msra.mxu1 %v7699_v28  ;;  %v2943_v61 = vadd.f32 %v7017_v32, %v2903_v48  ;;  %v7768_v28 = vld [vmem:[#allocation11 + $0x2a8] ss:$16 sps:$4 sm:$0xff]   ;;  %v7779_v31 = vld [vmem:[#allocation11 + $0x46c] ss:$16 sps:$4 sm:$0xff]  }
 0x2e9   :  { %4162 = vmatprep.subr.bf16.mxu1 %v7704_v30  ;;  %v7771_v30 = vld [vmem:[#allocation11 + $0x488] ss:$16 sps:$4 sm:$0xff]   ;;  %v7782_v33 = vld [vmem:[#allocation11 + $0x26c] ss:$16 sps:$4 sm:$0xff]  }
 0x2ea   :  { %v7777_v36 = vld [vmem:[#allocation11 + $0x468] ss:$16 sps:$4 sm:$0xff]   ;;  %v7806_v48 = vld [vmem:[#allocation11 + $0x3cc] ss:$16 sps:$4 sm:$0xff]  }
 0x2eb   :  { %v7798_v49 = vld [vmem:[#allocation11 + $0x208] ss:$16 sps:$4 sm:$0xff]   ;;  %v7812_v32 = vld [vmem:[#allocation11 + $0x38c] ss:$16 sps:$4 sm:$0xff]  }
 0x2ec   :  { %4163 = vmatpush1.bf16.msra.mxu1 %v7702_v37  ;;  %v7785_v37 = vld [vmem:[#allocation11 + $0x44c] ss:$16 sps:$4 sm:$0xff]  }
 0x2ed   :  { %4164 = vmatprep.subr.bf16.mxu1 %v7707_v5  ;;  %v7788_v5 = vld [vmem:[#allocation11 + $0x24c] ss:$16 sps:$4 sm:$0xff]  }
 0x2f0   :  { %4165 = vmatpush2.bf16.msra.mxu1 %v7705_v41  ;;  %v7783_v41 = vld [vmem:[#allocation11 + $0x448] ss:$16 sps:$4 sm:$0xff]  }
 0x2f1   :  { %4166 = vmatprep.subr.bf16.mxu1 %v7713_v39  ;;  %v7786_v39 = vld [vmem:[#allocation11 + $0x248] ss:$16 sps:$4 sm:$0xff]  }
 0x2f4   :  { %4167 = vmatpush2.bf16.msra.mxu1 %v7711_v42  ;;  %v7791_v42 = vld [vmem:[#allocation11 + $0x42c] ss:$16 sps:$4 sm:$0xff]  }
 0x2f5   :  { %4168 = vmatprep.subr.bf16.mxu1 %v7719_v43  ;;  %v7794_v43 = vld [vmem:[#allocation11 + $0x22c] ss:$16 sps:$4 sm:$0xff]  }
 0x2f8   :  { %4169 = vmatpush2.bf16.msra.mxu1 %v7717_v44  ;;  %v7789_v44 = vld [vmem:[#allocation11 + $0x428] ss:$16 sps:$4 sm:$0xff]  }
 0x2f9   :  { %4170 = vmatprep.subr.bf16.mxu1 %v7725_v13  ;;  %v7792_v13 = vld [vmem:[#allocation11 + $0x228] ss:$16 sps:$4 sm:$0xff]  }
 0x2fc   :  { %4171 = vmatpush2.bf16.msra.mxu1 %v7723_v45  ;;  %v7797_v45 = vld [vmem:[#allocation11 + $0x40c] ss:$16 sps:$4 sm:$0xff]  }
 0x2fd   :  { %4172 = vmatprep.subr.bf16.mxu1 %v7731_v47  ;;  %v7800_v47 = vld [vmem:[#allocation11 + $0x20c] ss:$16 sps:$4 sm:$0xff]  }
 0x300   :  { %4173 = vmatpush2.bf16.msra.mxu1 %v7729_v50  ;;  %v7803_v50 = vld [vmem:[#allocation11 + $0x3ec] ss:$16 sps:$4 sm:$0xff]  }
 0x301   :  { %v7037_v56 = vpop.f32.mrf.mxu0  ;;  %4174 = vmatprep.subr.bf16.mxu1 %v7737_v52  ;;  %v7801_v52 = vld [vmem:[#allocation11 + $0x3e8] ss:$16 sps:$4 sm:$0xff]  }
 0x302   :  { %v3022_v57 = vpop.f32.mrf.mxu1 }
 0x303   :  { %v7038_v59 = vpop.f32.mrf.mxu0 }
 0x304   :  { %v7039_v62 = vadd.f32 %v7038_v59, %v7037_v56  ;;  %v7090_v63 = vpop.f32.mrf.mxu1  ;;  %4175 = vmatpush2.bf16.msra.mxu1 %v7735_v54  ;;  %v7804_v54 = vld [vmem:[#allocation11 + $0x3c8] ss:$16 sps:$4 sm:$0xff]   ;;  %v7809_v56 = vld [vmem:[#allocation11 + $0x3ac] ss:$16 sps:$4 sm:$0xff]  }
 0x305   :  { %v7040_v60 = vpop.f32.mrf.mxu0  ;;  %4176 = vmatprep.subr.bf16.mxu1 %v7743_v20  ;;  %v7807_v20 = vld [vmem:[#allocation11 + $0x3a8] ss:$16 sps:$4 sm:$0xff]   ;;  %v7815_v59 = vld [vmem:[#allocation11 + $0x36c] ss:$16 sps:$4 sm:$0xff]  }
 0x306   :  { %v2983_v10 = vadd.f32 %v7039_v62, %v2943_v61  ;;  %v3025_v16 = vpop.f32.mrf.mxu1  ;;  %v7813_v61 = vld [vmem:[#allocation11 + $0x368] ss:$16 sps:$4 sm:$0xff]   ;;  %v7818_v62 = vld [vmem:[#allocation11 + $0x34c] ss:$16 sps:$4 sm:$0xff]  }
 0x307   :  { %v7041_v11 = vpop.f32.mrf.mxu0  ;;  %v7821_v60 = vld [vmem:[#allocation11 + $0x32c] ss:$16 sps:$4 sm:$0xff]   ;;  %v7819_v16 = vld [vmem:[#allocation11 + $0x328] ss:$16 sps:$4 sm:$0xff]  }
 0x308   :  { %v3023_v14 = vadd.f32 %v3022_v57, %v2983_v10  ;;  %v7091_v46 = vpop.f32.mrf.mxu1  ;;  %4177 = vmatpush2.bf16.msra.mxu1 %v7741_v1  ;;  %v7810_v57 = vld [vmem:[#allocation11 + $0x388] ss:$16 sps:$4 sm:$0xff]   ;;  %v7824_v11 = vld [vmem:[#allocation11 + $0x30c] ss:$16 sps:$4 sm:$0xff]  }
 0x309   :  { %4178 = vmatprep.subr.bf16.mxu1 %v7749_v8  ;;  %v7816_v1 = vld [vmem:[#allocation11 + $0x348] ss:$16 sps:$4 sm:$0xff]  }
 0x30a   :  { %v3032_v34 = vmul.f32 0.01, %v3023_v14  ;;  %v4339_v46 = vld [vmem:[#allocation14 + $0x1c0] sm:$0xff] }
 0x30c   :  { %v3037_v17 = vmax.f32 %v3023_v14, %v3032_v34  ;;  %4179 = vmatpush2.bf16.msra.mxu1 %v7747_v40  ;;  %v4343_v40 = vld [vmem:[#allocation14 + $0x1e0] sm:$0xff] }
 0x30d   :  { %4230 = vmatprep.subr.bf16.mxu1 %v7755_v9  ;;  %v7822_v9 = vld [vmem:[#allocation11 + $0x308] ss:$16 sps:$4 sm:$0xff]   ;;  %v6769_v34 = vcombine.high %v4339_v46, %v4343_v40 }
 0x30e   :  { %v8282_v21 = vpack.c.bf16 %v3037_v17, %v3037_v17  ;;  %v4331_v17 = vld [vmem:[#allocation14 + $0x180] sm:$0xff] }
 0x30f   :  { %4181 = vmatmul.mubr.bf16.vlgmr.msra.gmra.mxu1 %v8265_v35  ;;  %v7773_v35 = vld [vmem:[#allocation11 + $0x48c] ss:$16 sps:$4 sm:$0xff]  }
 0x310   :  { %4231 = vmatpush1.bf16.msra.mxu1 %v7753_v18  ;;  %4140 = vmatmul.mubr.bf16.vlgmr.msra.gmra.mxu0 %v8282_v21  ;;  %v4335_v18 = vld [vmem:[#allocation14 + $0x1a0] sm:$0xff] }
 0x311   :  { %4190 = vmatpush1.bf16.msra.mxu0 %v7756_v19  ;;  %4221 = vmatprep.mubr.bf16.mxu0 %v8273_v12  ;;  %v7774_v12 = vld [vmem:[#allocation11 + $0x288] ss:$16 sps:$4 sm:$0xff]   ;;  %v6768_v19 = vcombine.low %v4339_v46, %v4343_v40 }
 0x312   :  { %4232 = vmatprep.subr.bf16.mxu1 %v7761_v22  ;;  %4191 = vmatprep.subr.bf16.mxu0 %v7764_v23  ;;  %v4323_v22 = vld [vmem:[#allocation14 + $0x140] sm:$0xff] }
 0x313   :  { %4262 = vmatprep.mubr.bf16.mxu1 %v8054_v0  ;;  %v7780_v0 = vld [vmem:[#allocation11 + $0x268] ss:$16 sps:$4 sm:$0xff]  }
 0x314   :  { %4233 = vmatpush1.bf16.msra.mxu1 %v7759_v24  ;;  %v4327_v23 = vld [vmem:[#allocation14 + $0x160] sm:$0xff]  ;;  %v6760_v24 = vcombine.low %v4331_v17, %v4335_v18 }
 0x315   :  { %4192 = vmatpush1.bf16.msra.mxu0 %v7762_v53  ;;  %4234 = vmatprep.subr.bf16.mxu1 %v7767_v25  ;;  %v6753_v53 = vcombine.high %v4323_v22, %v4327_v23  ;;  %v4315_v25 = vld [vmem:[#allocation14 + $0x100] sm:$0xff] }
 0x316   :  { %4193 = vmatprep.subr.bf16.mxu0 %v7770_v26  ;;  %v4319_v26 = vld [vmem:[#allocation14 + $0x120] sm:$0xff] }
 0x317   :  { %v4435_v40 = vld [vmem:[#allocation14 + $0x4c0] sm:$0xff] }
 0x318   :  { %4235 = vmatpush1.bf16.msra.mxu1 %v7765_v27  ;;  %v6752_v27 = vcombine.low %v4323_v22, %v4327_v23  ;;  %v4427_v23 = vld [vmem:[#allocation14 + $0x480] sm:$0xff] }
 0x319   :  { %4194 = vmatpush1.bf16.msra.mxu0 %v7768_v28  ;;  %4236 = vmatprep.subr.bf16.mxu1 %v7773_v35  ;;  %v6745_v28 = vcombine.high %v4315_v25, %v4319_v26  ;;  %v4307_v35 = vld [vmem:[#allocation14 + $0xc0] sm:$0xff] }
 0x31a   :  { %4195 = vmatprep.subr.bf16.mxu0 %v7776_v29  ;;  %v4311_v29 = vld [vmem:[#allocation14 + $0xe0] sm:$0xff] }
 0x31c   :  { %4237 = vmatpush1.bf16.msra.mxu1 %v7771_v30  ;;  %v6744_v30 = vcombine.low %v4315_v25, %v4319_v26  ;;  %v4391_v25 = vld [vmem:[#allocation14 + $0x360] sm:$0xff] }
 0x31d   :  { %4196 = vmatpush1.bf16.msra.mxu0 %v7774_v12  ;;  %4238 = vmatprep.subr.bf16.mxu1 %v7779_v31  ;;  %v8294_v12 = vld [vmem:[#allocation14 + $0x1c8] sm:$0xff] }
 0x31e   :  { %4197 = vmatprep.subr.bf16.mxu0 %v7782_v33  ;;  %v8296_v31 = vld [vmem:[#allocation14 + $0x1e8] sm:$0xff]  ;;  %v4467_v33 = vld [vmem:[#allocation14 + $0x5c0] sm:$0xff] }
 0x320   :  { %4239 = vmatpush1.bf16.msra.mxu1 %v7777_v36  ;;  %v4471_v36 = vld [vmem:[#allocation14 + $0x5e0] sm:$0xff] }
 0x321   :  { %4198 = vmatpush1.bf16.msra.mxu0 %v7780_v0  ;;  %4240 = vmatprep.subr.bf16.mxu1 %v7785_v37  ;;  %v4299_v0 = vld [vmem:[#allocation14 + $0x80] sm:$0xff] }
 0x322   :  { %4199 = vmatprep.subr.bf16.mxu0 %v7788_v5  ;;  %v4303_v37 = vld [vmem:[#allocation14 + $0xa0] sm:$0xff]  ;;  %v6770_v5 = vcombine.low %v8294_v12, %v8296_v31 }
 0x324   :  { %4241 = vmatpush1.bf16.msra.mxu1 %v7783_v41  ;;  %v6897_v41 = vcombine.high %v4467_v33, %v4471_v36 }
 0x325   :  { %4200 = vmatpush1.bf16.msra.mxu0 %v7786_v39  ;;  %4242 = vmatprep.subr.bf16.mxu1 %v7791_v42  ;;  %v6896_v39 = vcombine.low %v4467_v33, %v4471_v36  ;;  %v6736_v42 = vcombine.low %v4307_v35, %v4311_v29  ;;  %v4383_v33 = vld [vmem:[#allocation14 + $0x320] sm:$0xff] }
 0x326   :  { %4201 = vmatprep.subr.bf16.mxu0 %v7794_v43  ;;  %v6729_v43 = vcombine.high %v4299_v0, %v4303_v37 }
 0x328   :  { %4243 = vmatpush1.bf16.msra.mxu1 %v7789_v44  ;;  %v4459_v44 = vld [vmem:[#allocation14 + $0x580] sm:$0xff] }
 0x329   :  { %4202 = vmatpush1.bf16.msra.mxu0 %v7792_v13  ;;  %4244 = vmatprep.subr.bf16.mxu1 %v7797_v45  ;;  %v4463_v13 = vld [vmem:[#allocation14 + $0x5a0] sm:$0xff] }
 0x32a   :  { %4203 = vmatprep.subr.bf16.mxu0 %v7800_v47  ;;  %v4291_v45 = vld [vmem:[#allocation14 + $0x40] sm:$0xff] }
 0x32b   :  { %v4295_v47 = vld [vmem:[#allocation14 + $0x60] sm:$0xff] }
 0x32c   :  { %4245 = vmatpush1.bf16.msra.mxu1 %v7795_v38  ;;  %v6888_v38 = vcombine.low %v4459_v44, %v4463_v13 }
 0x32d   :  { %4204 = vmatpush1.bf16.msra.mxu0 %v7798_v49  ;;  %5902 = vmatprep.subr.bf16.mxu1 %v6897_v41  ;;  %v6889_v49 = vcombine.high %v4459_v44, %v4463_v13  ;;  %v4375_v44 = vld [vmem:[#allocation14 + $0x2e0] sm:$0xff] }
 0x32e   :  { %4205 = vmatprep.subr.bf16.mxu0 %v7803_v50  ;;  %v6728_v50 = vcombine.low %v4299_v0, %v4303_v37 }
 0x32f   :  { %4263 = vmatmul.mubr.bf16.vlgmr.msra.gmra.mxu1 %v8282_v21  ;;  %v6761_v21 = vcombine.high %v4331_v17, %v4335_v18  ;;  %v4399_v17 = vld [vmem:[#allocation14 + $0x3a0] sm:$0xff] }
 0x330   :  { %5903 = vmatpush1.bf16.msra.mxu1 %v6896_v39  ;;  %v4411_v39 = vld [vmem:[#allocation14 + $0x400] sm:$0xff] }
 0x331   :  { %4206 = vmatpush2.bf16.msra.mxu0 %v7801_v52  ;;  %5904 = vmatprep.subr.bf16.mxu1 %v6889_v49  ;;  %v6721_v52 = vcombine.high %v4291_v45, %v4295_v47  ;;  %v4531_v49 = vld [vmem:[#allocation14 + $0x7c0] sm:$0xff] }
 0x332   :  { %4207 = vmatprep.subr.bf16.mxu0 %v7806_v48  ;;  %v4451_v48 = vld [vmem:[#allocation14 + $0x540] sm:$0xff] }
 0x334   :  { %5905 = vmatpush1.bf16.msra.mxu1 %v6888_v38 }
 0x335   :  { %4208 = vmatpush2.bf16.msra.mxu0 %v7804_v54  ;;  %v4455_v54 = vld [vmem:[#allocation14 + $0x560] sm:$0xff] }
 0x336   :  { %4209 = vmatprep.subr.bf16.mxu0 %v7809_v56  ;;  %v4283_v56 = vld [vmem:[#allocation14] sm:$0xff] }
 0x339   :  { %4210 = vmatpush2.bf16.msra.mxu0 %v7807_v20  ;;  %v4287_v20 = vld [vmem:[#allocation14 + $0x20] sm:$0xff] }
 0x33a   :  { %4211 = vmatprep.subr.bf16.mxu0 %v7812_v32  ;;  %v6880_v32 = vcombine.low %v4451_v48, %v4455_v54 }
 0x33d   :  { %4212 = vmatpush2.bf16.msra.mxu0 %v7810_v57  ;;  %v6881_v57 = vcombine.high %v4451_v48, %v4455_v54  ;;  %v4367_v48 = vld [vmem:[#allocation14 + $0x2a0] sm:$0xff] }
 0x33e   :  { %4213 = vmatprep.subr.bf16.mxu0 %v7815_v59  ;;  %v6720_v59 = vcombine.low %v4291_v45, %v4295_v47 }
 0x33f   :  { %5906 = vmatprep.subr.bf16.mxu1 %v6881_v57  ;;  %v4523_v57 = vld [vmem:[#allocation14 + $0x780] sm:$0xff] }
 0x340   :  { %5907 = vmatpush1.bf16.msra.mxu1 %v6880_v32 }
 0x341   :  { %4214 = vmatpush2.bf16.msra.mxu0 %v7813_v61  ;;  %v8289_v63 = vpop.f32.mrf.mxu0  ;;  %v6713_v61 = vcombine.high %v4283_v56, %v4287_v20 }
 0x342   :  { %4215 = vmatprep.subr.bf16.mxu0 %v7818_v62  ;;  %v4443_v62 = vld [vmem:[#allocation14 + $0x500] sm:$0xff] }
 0x343   :  { %v8291_v8 = vpop.f32.mrf.mxu0 }
 0x345   :  { %4216 = vmatpush2.bf16.msra.mxu0 %v7816_v1  ;;  %v4063_v10 = vpop.f32.mrf.mxu0  ;;  %v4447_v1 = vld [vmem:[#allocation14 + $0x520] sm:$0xff] }
 0x346   :  { %4217 = vmatprep.subr.bf16.mxu0 %v7821_v60  ;;  %v4403_v60 = vld [vmem:[#allocation14 + $0x3c0] sm:$0xff] }
 0x347   :  { %v4064_v14 = vpop.f32.mrf.mxu0  ;;  %v4407_v10 = vld [vmem:[#allocation14 + $0x3e0] sm:$0xff] }
 0x348   :  { %v6712_v14 = vcombine.low %v4283_v56, %v4287_v20  ;;  %v6833_v46 = vcombine.high %v4403_v60, %v4407_v10 }
 0x349   :  { %4218 = vmatpush2.bf16.msra.mxu0 %v7819_v16  ;;  %v6872_v16 = vcombine.low %v4443_v62, %v4447_v1 }
 0x34a   :  { %4219 = vmatprep.subr.bf16.mxu0 %v7824_v11  ;;  %v6873_v11 = vcombine.high %v4443_v62, %v4447_v1  ;;  %v4359_v62 = vld [vmem:[#allocation14 + $0x260] sm:$0xff] }
 0x34c   :  { %5908 = vmatprep.subr.bf16.mxu1 %v6873_v11  ;;  %v4515_v11 = vld [vmem:[#allocation14 + $0x740] sm:$0xff] }
 0x34d   :  { %4220 = vmatpush2.bf16.msra.mxu0 %v7822_v9  ;;  %5909 = vmatpush1.bf16.msra.mxu1 %v6872_v16  ;;  %v4439_v9 = vld [vmem:[#allocation14 + $0x4e0] sm:$0xff] }
 0x34e   :  { %5861 = vmatprep.subr.bf16.mxu0 %v6769_v34  ;;  %v4395_v34 = vld [vmem:[#allocation14 + $0x380] sm:$0xff]  ;;  %v6864_v18 = vcombine.low %v4435_v40, %v4439_v9 }
 0x34f   :  { %v6825_v22 = vcombine.high %v4395_v34, %v4399_v17 }
 0x350   :  { %4222 = vmatmul.mubr.bf16.vlgmr.msra.gmra.mxu0 %v8275_v15  ;;  %v6737_v15 = vcombine.high %v4307_v35, %v4311_v29  ;;  %v4419_v29 = vld [vmem:[#allocation14 + $0x440] sm:$0xff] }
 0x351   :  { %5862 = vmatpush1.bf16.msra.mxu0 %v6768_v19  ;;  %v6865_v19 = vcombine.high %v4435_v40, %v4439_v9  ;;  %v4351_v40 = vld [vmem:[#allocation14 + $0x220] sm:$0xff] }
 0x352   :  { %5863 = vmatprep.subr.bf16.mxu0 %v6761_v21  ;;  %v6832_v21 = vcombine.low %v4403_v60, %v4407_v10 }
 0x353   :  { %5910 = vmatprep.subr.bf16.mxu1 %v6865_v19  ;;  %v4507_v19 = vld [vmem:[#allocation14 + $0x700] sm:$0xff] }
 0x354   :  { %5911 = vmatpush1.bf16.msra.mxu1 %v6864_v18 }
 0x355   :  { %5864 = vmatpush1.bf16.msra.mxu0 %v6760_v24  ;;  %v4431_v24 = vld [vmem:[#allocation14 + $0x4a0] sm:$0xff] }
 0x356   :  { %5865 = vmatprep.subr.bf16.mxu0 %v6753_v53  ;;  %v4387_v53 = vld [vmem:[#allocation14 + $0x340] sm:$0xff]  ;;  %v6857_v26 = vcombine.high %v4427_v23, %v4431_v24 }
 0x357   :  { %v6817_v35 = vcombine.high %v4387_v53, %v4391_v25  ;;  %v6816_v37 = vcombine.low %v4387_v53, %v4391_v25 }
 0x358   :  { %5912 = vmatprep.subr.bf16.mxu1 %v6857_v26  ;;  %v6771_v26 = vcombine.high %v8294_v12, %v8296_v31  ;;  %v4304_v12 = vld [vmem:[#allocation14 + $0xa8] sm:$0xff] }
 0x359   :  { %5866 = vmatpush1.bf16.msra.mxu0 %v6752_v27  ;;  %v6856_v27 = vcombine.low %v4427_v23, %v4431_v24 }
 0x35a   :  { %5867 = vmatprep.subr.bf16.mxu0 %v6745_v28  ;;  %v6824_v28 = vcombine.low %v4395_v34, %v4399_v17 }
 0x35b   :  { %5913 = vmatpush1.bf16.msra.mxu1 %v6856_v27  ;;  %v4499_v27 = vld [vmem:[#allocation14 + $0x6c0] sm:$0xff] }
 0x35d   :  { %5868 = vmatpush1.bf16.msra.mxu0 %v6744_v30  ;;  %v4423_v30 = vld [vmem:[#allocation14 + $0x460] sm:$0xff] }
 0x35e   :  { %5869 = vmatprep.subr.bf16.mxu0 %v6737_v15  ;;  %v4379_v15 = vld [vmem:[#allocation14 + $0x300] sm:$0xff]  ;;  %v6849_v36 = vcombine.high %v4419_v29, %v4423_v30  ;;  %v6848_v0 = vcombine.low %v4419_v29, %v4423_v30 }
 0x35f   :  { %v6809_v41 = vcombine.high %v4379_v15, %v4383_v33  ;;  %v6808_v47 = vcombine.low %v4379_v15, %v4383_v33  ;;  %v4491_v15 = vld [vmem:[#allocation14 + $0x680] sm:$0xff] }
 0x360   :  { %5914 = vmatprep.subr.bf16.mxu1 %v6849_v36  ;;  %v4495_v33 = vld [vmem:[#allocation14 + $0x6a0] sm:$0xff] }
 0x361   :  { %5870 = vmatpush1.bf16.msra.mxu0 %v6736_v42  ;;  %5915 = vmatpush1.bf16.msra.mxu1 %v6848_v0  ;;  %v4415_v42 = vld [vmem:[#allocation14 + $0x420] sm:$0xff]  ;;  %v6921_v0 = vcombine.high %v4491_v15, %v4495_v33 }
 0x362   :  { %5871 = vmatprep.subr.bf16.mxu0 %v6729_v43  ;;  %v4371_v43 = vld [vmem:[#allocation14 + $0x2c0] sm:$0xff]  ;;  %v6840_v13 = vcombine.low %v4411_v39, %v4415_v42  ;;  %v6841_v45 = vcombine.high %v4411_v39, %v4415_v42 }
 0x363   :  { %v6801_v38 = vcombine.high %v4371_v43, %v4375_v44  ;;  %v6800_v20 = vcombine.low %v4371_v43, %v4375_v44  ;;  %v4483_v42 = vld [vmem:[#allocation14 + $0x640] sm:$0xff] }
 0x364   :  { %5916 = vmatprep.subr.bf16.mxu1 %v6841_v45  ;;  %v4487_v43 = vld [vmem:[#allocation14 + $0x660] sm:$0xff] }
 0x365   :  { %5872 = vmatpush1.bf16.msra.mxu0 %v6728_v50  ;;  %5917 = vmatpush1.bf16.msra.mxu1 %v6840_v13  ;;  %v4535_v50 = vld [vmem:[#allocation14 + $0x7e0] sm:$0xff]  ;;  %v6913_v13 = vcombine.high %v4483_v42, %v4487_v43  ;;  %v6912_v45 = vcombine.low %v4483_v42, %v4487_v43 }
 0x366   :  { %5873 = vmatprep.subr.bf16.mxu0 %v6721_v52  ;;  %v4363_v52 = vld [vmem:[#allocation14 + $0x280] sm:$0xff]  ;;  %v6960_v54 = vcombine.low %v4531_v49, %v4535_v50  ;;  %v6961_v56 = vcombine.high %v4531_v49, %v4535_v50 }
 0x367   :  { %v6793_v32 = vcombine.high %v4363_v52, %v4367_v48  ;;  %v6792_v10 = vcombine.low %v4363_v52, %v4367_v48  ;;  %v8307_v52 = vld [vmem:[#allocation14 + $0x5c8] sm:$0xff] }
 0x368   :  { %5918 = vmatprep.subr.bf16.mxu1 %v6961_v56  ;;  %v8309_v48 = vld [vmem:[#allocation14 + $0x5e8] sm:$0xff] }
 0x369   :  { %5874 = vmatpush1.bf16.msra.mxu0 %v6720_v59  ;;  %5919 = vmatpush2.bf16.msra.mxu1 %v6960_v54  ;;  %v4527_v59 = vld [vmem:[#allocation14 + $0x7a0] sm:$0xff]  ;;  %v6899_v54 = vcombine.high %v8307_v52, %v8309_v48  ;;  %v6898_v56 = vcombine.low %v8307_v52, %v8309_v48 }
 0x36a   :  { %5875 = vmatprep.subr.bf16.mxu0 %v6713_v61  ;;  %v4355_v61 = vld [vmem:[#allocation14 + $0x240] sm:$0xff]  ;;  %v6952_v1 = vcombine.low %v4523_v57, %v4527_v59  ;;  %v6953_v60 = vcombine.high %v4523_v57, %v4527_v59 }
 0x36b   :  { %v6785_v16 = vcombine.high %v4355_v61, %v4359_v62  ;;  %v6784_v17 = vcombine.low %v4355_v61, %v4359_v62 }
 0x36c   :  { %5920 = vmatprep.subr.bf16.mxu1 %v6953_v60 }
 0x36d   :  { %5876 = vmatpush1.bf16.msra.mxu0 %v6712_v14  ;;  %5921 = vmatpush2.bf16.msra.mxu1 %v6952_v1  ;;  %v4519_v14 = vld [vmem:[#allocation14 + $0x760] sm:$0xff] }
 0x36e   :  { %5877 = vmatprep.subr.bf16.mxu0 %v6833_v46  ;;  %v4347_v46 = vld [vmem:[#allocation14 + $0x200] sm:$0xff]  ;;  %v6944_v9 = vcombine.low %v4515_v11, %v4519_v14  ;;  %v6945_v34 = vcombine.high %v4515_v11, %v4519_v14 }
 0x36f   :  { %v6777_v18 = vcombine.high %v4347_v46, %v4351_v40  ;;  %v6776_v53 = vcombine.low %v4347_v46, %v4351_v40 }
 0x370   :  { %5922 = vmatprep.subr.bf16.mxu1 %v6945_v34 }
 0x371   :  { %5878 = vmatpush2.bf16.msra.mxu0 %v6832_v21  ;;  %5923 = vmatpush2.bf16.msra.mxu1 %v6944_v9  ;;  %v4511_v21 = vld [vmem:[#allocation14 + $0x720] sm:$0xff] }
 0x372   :  { %5879 = vmatprep.subr.bf16.mxu0 %v6825_v22  ;;  %v8300_v22 = vld [vmem:[#allocation13] sm:$0xf]  ;;  %v6936_v23 = vcombine.low %v4507_v19, %v4511_v21  ;;  %v6937_v24 = vcombine.high %v4507_v19, %v4511_v21  ;;  %v4336_v19 = vld [vmem:[#allocation14 + $0x1a8] sm:$0xff] }
 0x373   :  { %v3208_v25 = vrot.slane %v8300_v22, %v8157_v3 }
 0x374   :  { %5924 = vmatprep.subr.bf16.mxu1 %v6937_v24  ;;  %v4324_v24 = vld [vmem:[#allocation14 + $0x148] sm:$0xff] }
 0x375   :  { %5880 = vmatpush2.bf16.msra.mxu0 %v6824_v28  ;;  %5925 = vmatpush2.bf16.msra.mxu1 %v6936_v23  ;;  %v4503_v28 = vld [vmem:[#allocation14 + $0x6e0] sm:$0xff]  ;;  %v4060_v30 = vadd.f32 %v8289_v63, %v3208_v25 }
 0x376   :  { %5881 = vmatprep.subr.bf16.mxu0 %v6817_v35  ;;  %v6928_v35 = vcombine.low %v4499_v27, %v4503_v28  ;;  %v6929_v29 = vcombine.high %v4499_v27, %v4503_v28  ;;  %v4475_v63 = vld [vmem:[#allocation14 + $0x600] sm:$0xff]  ;;  %v4316_v27 = vld [vmem:[#allocation14 + $0x108] sm:$0xff] }
 0x377   :  { %v4320_v28 = vld [vmem:[#allocation14 + $0x128] sm:$0xff] }
 0x378   :  { %5926 = vmatprep.subr.bf16.mxu1 %v6929_v29  ;;  %v6747_v29 = vcombine.high %v4316_v27, %v4320_v28 }
 0x379   :  { %5882 = vmatpush2.bf16.msra.mxu0 %v6816_v37  ;;  %5927 = vmatpush2.bf16.msra.mxu1 %v6928_v35 }
 0x37a   :  { %5883 = vmatprep.subr.bf16.mxu0 %v6809_v41  ;;  %v6920_v41 = vcombine.low %v4491_v15, %v4495_v33  ;;  %5928 = vmatprep.subr.bf16.mxu1 %v6921_v0  ;;  %v4312_v15 = vld [vmem:[#allocation14 + $0xe8] sm:$0xff]  ;;  %v6746_v33 = vcombine.low %v4316_v27, %v4320_v28  ;;  %v3216_v27 = vrot.slane %v8300_v22, %v8160_v4 }
 0x37b   :  { %v4300_v0 = vld [vmem:[#allocation14 + $0x88] sm:$0xff] }
 0x37c   :  { %v4356_v28 = vld [vmem:[#allocation14 + $0x248] sm:$0xff] }
 0x37d   :  { %5884 = vmatpush2.bf16.msra.mxu0 %v6808_v47  ;;  %5929 = vmatpush2.bf16.msra.mxu1 %v6920_v41  ;;  %v4296_v41 = vld [vmem:[#allocation14 + $0x68] sm:$0xff] }
 0x37e   :  { %5885 = vmatprep.subr.bf16.mxu0 %v6801_v38  ;;  %5930 = vmatprep.subr.bf16.mxu1 %v6913_v13  ;;  %v4479_v38 = vld [vmem:[#allocation14 + $0x620] sm:$0xff]  ;;  %v4288_v13 = vld [vmem:[#allocation14 + $0x28] sm:$0xff] }
 0x37f   :  { %v6905_v49 = vcombine.high %v4475_v63, %v4479_v38  ;;  %v6904_v50 = vcombine.low %v4475_v63, %v4479_v38 }
 0x381   :  { %5886 = vmatpush2.bf16.msra.mxu0 %v6800_v20  ;;  %5931 = vmatpush2.bf16.msra.mxu1 %v6912_v45  ;;  %v3212_v20 = vrot.slane %v8300_v22, %v8165_v6 }
 0x382   :  { %5887 = vmatprep.subr.bf16.mxu0 %v6793_v32  ;;  %5932 = vmatprep.subr.bf16.mxu1 %v6905_v49  ;;  %v4404_v49 = vld [vmem:[#allocation14 + $0x3c8] sm:$0xff] }
 0x383   :  { %v4062_v32 = vadd.f32 %v8291_v8, %v3212_v20 }
 0x385   :  { %5888 = vmatpush2.bf16.msra.mxu0 %v6792_v10  ;;  %5933 = vmatpush2.bf16.msra.mxu1 %v6904_v50  ;;  %v4408_v50 = vld [vmem:[#allocation14 + $0x3e8] sm:$0xff] }
 0x386   :  { %5889 = vmatprep.subr.bf16.mxu0 %v6785_v16  ;;  %5984 = vmatprep.subr.bf16.mxu1 %v6899_v54 }
 0x389   :  { %5890 = vmatpush2.bf16.msra.mxu0 %v6784_v17 }
 0x38a   :  { %5891 = vmatprep.subr.bf16.mxu0 %v6777_v18  ;;  %v4332_v18 = vld [vmem:[#allocation14 + $0x188] sm:$0xff] }
 0x38b   :  { %v6763_v23 = vcombine.high %v4332_v18, %v4336_v19  ;;  %v6762_v25 = vcombine.low %v4332_v18, %v4336_v19  ;;  %v4376_v18 = vld [vmem:[#allocation14 + $0x2e8] sm:$0xff] }
 0x38d   :  { %5892 = vmatpush2.bf16.msra.mxu0 %v6776_v53  ;;  %v4328_v53 = vld [vmem:[#allocation14 + $0x168] sm:$0xff] }
 0x38e   :  { %5943 = vmatprep.subr.bf16.mxu0 %v6771_v26  ;;  %v6755_v26 = vcombine.high %v4324_v24, %v4328_v53  ;;  %v6754_v35 = vcombine.low %v4324_v24, %v4328_v53  ;;  %v4364_v24 = vld [vmem:[#allocation14 + $0x288] sm:$0xff] }
 0x38f   :  { %v4100_v36 = vpop.f32.mrf.mxu1  ;;  %v4368_v53 = vld [vmem:[#allocation14 + $0x2a8] sm:$0xff] }
 0x390   :  { %v4101_v37 = vadd.f32 %v4100_v36, %v4060_v30  ;;  %v4308_v30 = vld [vmem:[#allocation14 + $0xc8] sm:$0xff] }
 0x391   :  { %v4102_v39 = vpop.f32.mrf.mxu1  ;;  %v6739_v36 = vcombine.high %v4308_v30, %v4312_v15  ;;  %v6738_v31 = vcombine.low %v4308_v30, %v4312_v15  ;;  %v6794_v30 = vcombine.low %v4364_v24, %v4368_v53 }
 0x392   :  { %v4103_v61 = vadd.f32 %v4102_v39, %v4062_v32  ;;  %v6730_v39 = vcombine.low %v4300_v0, %v4304_v12  ;;  %v6835_v32 = vcombine.high %v4404_v49, %v4408_v50 }
 0x393   :  { %v4104_v44 = vpop.f32.mrf.mxu1 }
 0x394   :  { %v4284_v44 = vld [vmem:[#allocation14 + $0x8] sm:$0xff] }
 0x395   :  { %v4105_v47 = vpop.f32.mrf.mxu1  ;;  %v6715_v63 = vcombine.high %v4284_v44, %v4288_v13  ;;  %v6714_v20 = vcombine.low %v4284_v44, %v4288_v13  ;;  %v4341_v44 = vld [vmem:[#allocation14 + $0x1d0] sm:$0xff] }
 0x396   :  { %v4345_v13 = vld [vmem:[#allocation14 + $0x1f0] sm:$0xff] }
 0x3cf   :  { %v8318_v57 = vpop.f32.mrf.mxu1 }
 0x3d0   :  { %v4141_v59 = vpop.f32.mrf.mxu0 }
 0x3d1   :  { %v4142_v62 = vadd.f32 %v4141_v59, %v4101_v37  ;;  %v8320_v1 = vpop.f32.mrf.mxu1  ;;  %v4292_v37 = vld [vmem:[#allocation14 + $0x48] sm:$0xff] }
 0x3d2   :  { %v4143_v60 = vpop.f32.mrf.mxu0  ;;  %v6723_v42 = vcombine.high %v4292_v37, %v4296_v41  ;;  %v6722_v47 = vcombine.low %v4292_v37, %v4296_v41  ;;  %v4396_v59 = vld [vmem:[#allocation14 + $0x388] sm:$0xff] }
 0x3d3   :  { %v4271_v10 = vmul.f32 0.01, %v4142_v62  ;;  %v4144_v16 = vadd.f32 %v4143_v60, %v4103_v61  ;;  %v4186_v11 = vpop.f32.mrf.mxu1  ;;  %v4400_v61 = vld [vmem:[#allocation14 + $0x3a8] sm:$0xff] }
 0x3d4   :  { %v4145_v14 = vpop.f32.mrf.mxu0  ;;  %v6827_v60 = vcombine.high %v4396_v59, %v4400_v61  ;;  %v6826_v11 = vcombine.low %v4396_v59, %v4400_v61  ;;  %v6772_v59 = vcombine.low %v4341_v44, %v4345_v13  ;;  %v4337_v61 = vld [vmem:[#allocation14 + $0x1b0] sm:$0xff] }
 0x3d5   :  { %v4272_v46 = vmul.f32 0.01, %v4144_v16  ;;  %v4187_v40 = vpop.f32.mrf.mxu1  ;;  %v4275_v9 = vmax.f32 %v4142_v62, %v4271_v10  ;;  %v6834_v62 = vcombine.low %v4404_v49, %v4408_v50  ;;  %v4388_v10 = vld [vmem:[#allocation14 + $0x348] sm:$0xff] }
 0x3d6   :  { %v4146_v34 = vpop.f32.mrf.mxu0  ;;  %v4384_v40 = vld [vmem:[#allocation14 + $0x328] sm:$0xff] }
 0x3d7   :  { %v4276_v17 = vmax.f32 %v4144_v16, %v4272_v46  ;;  %v8324_v21 = vpack.c.bf16 %v4275_v9, %v4275_v9  ;;  %v4392_v16 = vld [vmem:[#allocation14 + $0x368] sm:$0xff] }
 0x3d8   :  { %v6819_v14 = vcombine.high %v4388_v10, %v4392_v16  ;;  %v4380_v46 = vld [vmem:[#allocation14 + $0x308] sm:$0xff]  ;;  %v6818_v9 = vcombine.low %v4388_v10, %v4392_v16  ;;  %v4325_v10 = vld [vmem:[#allocation14 + $0x150] sm:$0xff] }
 0x3d9   :  { %v8322_v8 = vpack.c.bf16 %v4276_v17, %v4276_v17  ;;  %v6811_v34 = vcombine.high %v4380_v46, %v4384_v40  ;;  %v4372_v17 = vld [vmem:[#allocation14 + $0x2c8] sm:$0xff]  ;;  %v6810_v19 = vcombine.low %v4380_v46, %v4384_v40  ;;  %v4329_v16 = vld [vmem:[#allocation14 + $0x170] sm:$0xff] }
 0x3da   :  { %v4452_v40 = vld [vmem:[#allocation14 + $0x548] sm:$0xff] }
 0x3db   :  { %5893 = vmatprep.mubr.bf16.mxu0 %v8322_v8 }
 0x3dc   :  { %5894 = vmatmul.mubr.bf16.vlgmr.msra.gmra.mxu0 %v8324_v21 }
 0x3dd   :  { %5944 = vmatpush1.bf16.msra.mxu0 %v6770_v5  ;;  %5975 = vmatprep.mubr.bf16.mxu0 %v8322_v8  ;;  %v6731_v5 = vcombine.high %v4300_v0, %v4304_v12  ;;  %v4352_v0 = vld [vmem:[#allocation14 + $0x228] sm:$0xff] }
 0x3de   :  { %5945 = vmatprep.subr.bf16.mxu0 %v6763_v23  ;;  %v6803_v23 = vcombine.high %v4372_v17, %v4376_v18 }
 0x3e1   :  { %5946 = vmatpush1.bf16.msra.mxu0 %v6762_v25  ;;  %v6802_v25 = vcombine.low %v4372_v17, %v4376_v18  ;;  %v4317_v18 = vld [vmem:[#allocation14 + $0x110] sm:$0xff] }
 0x3e2   :  { %5947 = vmatprep.subr.bf16.mxu0 %v6755_v26  ;;  %v6795_v26 = vcombine.high %v4364_v24, %v4368_v53  ;;  %v6756_v24 = vcombine.low %v4325_v10, %v4329_v16  ;;  %v4444_v53 = vld [vmem:[#allocation14 + $0x508] sm:$0xff] }
 0x3e5   :  { %5948 = vmatpush1.bf16.msra.mxu0 %v6754_v35  ;;  %v4360_v35 = vld [vmem:[#allocation14 + $0x268] sm:$0xff] }
 0x3e6   :  { %5949 = vmatprep.subr.bf16.mxu0 %v6747_v29  ;;  %v3220_v29 = vrot.slane %v8300_v22, %v8168_v7  ;;  %v6787_v15 = vcombine.high %v4356_v28, %v4360_v35  ;;  %v6786_v37 = vcombine.low %v4356_v28, %v4360_v35  ;;  %v4309_v28 = vld [vmem:[#allocation14 + $0xd0] sm:$0xff] }
 0x3e7   :  { %v4313_v35 = vld [vmem:[#allocation14 + $0xf0] sm:$0xff] }
 0x3e9   :  { %5950 = vmatpush1.bf16.msra.mxu0 %v6746_v33  ;;  %v4183_v33 = vadd.f32 %v8318_v57, %v3216_v27 }
 0x3ea   :  { %5951 = vmatprep.subr.bf16.mxu0 %v6739_v36  ;;  %v4348_v36 = vld [vmem:[#allocation14 + $0x208] sm:$0xff] }
 0x3ed   :  { %5952 = vmatpush1.bf16.msra.mxu0 %v6738_v31  ;;  %v4185_v31 = vadd.f32 %v8320_v1, %v3220_v29  ;;  %v6773_v1 = vcombine.high %v4341_v44, %v4345_v13  ;;  %v4440_v29 = vld [vmem:[#allocation14 + $0x4e8] sm:$0xff] }
 0x3ee   :  { %5953 = vmatprep.subr.bf16.mxu0 %v6731_v5  ;;  %v4420_v13 = vld [vmem:[#allocation14 + $0x448] sm:$0xff] }
 0x3ef   :  { %v8332_v43 = vpop.f32.mrf.mxu1 }
 0x3f1   :  { %v8334_v45 = vpop.f32.mrf.mxu1  ;;  %5954 = vmatpush1.bf16.msra.mxu0 %v6730_v39  ;;  %v6779_v39 = vcombine.high %v4348_v36, %v4352_v0 }
 0x3f2   :  { %5955 = vmatprep.subr.bf16.mxu0 %v6723_v42 }
 0x3f3   :  { %v4268_v38 = vpop.f32.mrf.mxu1 }
 0x3f4   :  { %v6778_v38 = vcombine.low %v4348_v36, %v4352_v0  ;;  %v4305_v36 = vld [vmem:[#allocation14 + $0xb0] sm:$0xff] }
 0x3f5   :  { %v4269_v54 = vpop.f32.mrf.mxu1  ;;  %5956 = vmatpush1.bf16.msra.mxu0 %v6722_v47 }
 0x3f6   :  { %5957 = vmatprep.subr.bf16.mxu0 %v6715_v63 }
 0x3f9   :  { %5958 = vmatpush1.bf16.msra.mxu0 %v6714_v20  ;;  %v4333_v20 = vld [vmem:[#allocation14 + $0x190] sm:$0xff] }
 0x3fa   :  { %5959 = vmatprep.subr.bf16.mxu0 %v6835_v32  ;;  %v6764_v46 = vcombine.low %v4333_v20, %v4337_v61 }
 0x3fd   :  { %5960 = vmatpush2.bf16.msra.mxu0 %v6834_v62  ;;  %v4464_v62 = vld [vmem:[#allocation14 + $0x5a8] sm:$0xff] }
 0x3fe   :  { %5961 = vmatprep.subr.bf16.mxu0 %v6827_v60 }
 0x401   :  { %5962 = vmatpush2.bf16.msra.mxu0 %v6826_v11  ;;  %v6765_v11 = vcombine.high %v4333_v20, %v4337_v61  ;;  %v4416_v20 = vld [vmem:[#allocation14 + $0x428] sm:$0xff]  ;;  %v4405_v61 = vld [vmem:[#allocation14 + $0x3d0] sm:$0xff] }
 0x402   :  { %5963 = vmatprep.subr.bf16.mxu0 %v6819_v14 }
 0x405   :  { %5964 = vmatpush2.bf16.msra.mxu0 %v6818_v9  ;;  %v4456_v9 = vld [vmem:[#allocation14 + $0x568] sm:$0xff] }
 0x406   :  { %5965 = vmatprep.subr.bf16.mxu0 %v6811_v34  ;;  %v6757_v34 = vcombine.high %v4325_v10, %v4329_v16  ;;  %v6882_v27 = vcombine.low %v4452_v40, %v4456_v9  ;;  %v4532_v16 = vld [vmem:[#allocation14 + $0x7c8] sm:$0xff] }
 0x409   :  { %5966 = vmatpush2.bf16.msra.mxu0 %v6810_v19  ;;  %v4321_v19 = vld [vmem:[#allocation14 + $0x130] sm:$0xff] }
 0x40a   :  { %5967 = vmatprep.subr.bf16.mxu0 %v6803_v23  ;;  %v6883_v23 = vcombine.high %v4452_v40, %v4456_v9  ;;  %v6748_v48 = vcombine.low %v4317_v18, %v4321_v19  ;;  %v4397_v40 = vld [vmem:[#allocation14 + $0x390] sm:$0xff] }
 0x40b   :  { %v4401_v9 = vld [vmem:[#allocation14 + $0x3b0] sm:$0xff] }
 0x40d   :  { %5968 = vmatpush2.bf16.msra.mxu0 %v6802_v25  ;;  %v4448_v25 = vld [vmem:[#allocation14 + $0x528] sm:$0xff] }
 0x40e   :  { %5969 = vmatprep.subr.bf16.mxu0 %v6795_v26  ;;  %v6749_v26 = vcombine.high %v4317_v18, %v4321_v19  ;;  %v6875_v52 = vcombine.high %v4444_v53, %v4448_v25  ;;  %v4524_v18 = vld [vmem:[#allocation14 + $0x788] sm:$0xff] }
 0x40f   :  { %v4528_v19 = vld [vmem:[#allocation14 + $0x7a8] sm:$0xff] }
 0x410   :  { %v4223_v12 = vpop.f32.mrf.mxu0 }
 0x411   :  { %v4224_v5 = vadd.f32 %v4223_v12, %v4183_v33  ;;  %5970 = vmatpush2.bf16.msra.mxu0 %v6794_v30  ;;  %v6741_v30 = vcombine.high %v4309_v28, %v4313_v35  ;;  %v4301_v33 = vld [vmem:[#allocation14 + $0x90] sm:$0xff]  ;;  %v6740_v12 = vcombine.low %v4309_v28, %v4313_v35  ;;  %v4516_v28 = vld [vmem:[#allocation14 + $0x748] sm:$0xff] }
 0x412   :  { %v4225_v41 = vpop.f32.mrf.mxu0  ;;  %5971 = vmatprep.subr.bf16.mxu0 %v6787_v15  ;;  %v6874_v15 = vcombine.low %v4444_v53, %v4448_v25  ;;  %v6732_v44 = vcombine.low %v4301_v33, %v4305_v36  ;;  %v4389_v53 = vld [vmem:[#allocation14 + $0x350] sm:$0xff]  ;;  %v4520_v35 = vld [vmem:[#allocation14 + $0x768] sm:$0xff] }
 0x413   :  { %v4265_v42 = vadd.f32 %v8332_v43, %v4224_v5  ;;  %v4226_v22 = vadd.f32 %v4225_v41, %v4185_v31  ;;  %v4460_v43 = vld [vmem:[#allocation14 + $0x588] sm:$0xff]  ;;  %v4393_v25 = vld [vmem:[#allocation14 + $0x370] sm:$0xff] }
 0x414   :  { %v4227_v47 = vpop.f32.mrf.mxu0  ;;  %v6891_v14 = vcombine.high %v4460_v43, %v4464_v62  ;;  %v6890_v17 = vcombine.low %v4460_v43, %v4464_v62  ;;  %v4428_v31 = vld [vmem:[#allocation14 + $0x488] sm:$0xff]  ;;  %v4409_v43 = vld [vmem:[#allocation14 + $0x3f0] sm:$0xff] }
 0x415   :  { %v4273_v63 = vmul.f32 0.01, %v4265_v42  ;;  %v4267_v57 = vadd.f32 %v8334_v45, %v4226_v22  ;;  %5972 = vmatpush2.bf16.msra.mxu0 %v6786_v37  ;;  %v4432_v5 = vld [vmem:[#allocation14 + $0x4a8] sm:$0xff]  ;;  %v6733_v37 = vcombine.high %v4301_v33, %v4305_v36 }
 0x416   :  { %v4228_v49 = vpop.f32.mrf.mxu0  ;;  %5973 = vmatprep.subr.bf16.mxu0 %v6779_v39  ;;  %v4293_v39 = vld [vmem:[#allocation14 + $0x50] sm:$0xff]  ;;  %v6859_v22 = vcombine.high %v4428_v31, %v4432_v5  ;;  %v4424_v47 = vld [vmem:[#allocation14 + $0x468] sm:$0xff] }
 0x417   :  { %v4274_v50 = vmul.f32 0.01, %v4267_v57  ;;  %v4277_v54 = vmax.f32 %v4265_v42, %v4273_v63  ;;  %v4297_v42 = vld [vmem:[#allocation14 + $0x70] sm:$0xff]  ;;  %v4508_v33 = vld [vmem:[#allocation14 + $0x708] sm:$0xff] }
 0x418   :  { %v6725_v63 = vcombine.high %v4293_v39, %v4297_v42  ;;  %v4289_v49 = vld [vmem:[#allocation14 + $0x30] sm:$0xff]  ;;  %v4512_v36 = vld [vmem:[#allocation14 + $0x728] sm:$0xff] }
 0x419   :  { %v4278_v32 = vmax.f32 %v4267_v57, %v4274_v50  ;;  %5974 = vmatpush2.bf16.msra.mxu0 %v6778_v38  ;;  %v8346_v45 = vpack.c.bf16 %v4277_v54, %v4277_v54  ;;  %v6858_v57 = vcombine.low %v4428_v31, %v4432_v5  ;;  %v4285_v38 = vld [vmem:[#allocation14 + $0x10] sm:$0xff]  ;;  %v6724_v50 = vcombine.low %v4293_v39, %v4297_v42  ;;  %v4412_v54 = vld [vmem:[#allocation14 + $0x408] sm:$0xff] }
 0x41a   :  { %6025 = vmatprep.subr.bf16.mxu0 %v6773_v1  ;;  %v6851_v1 = vcombine.high %v4420_v13, %v4424_v47  ;;  %v6843_v62 = vcombine.high %v4412_v54, %v4416_v20  ;;  %v6716_v10 = vcombine.low %v4285_v38, %v4289_v49  ;;  %v4373_v31 = vld [vmem:[#allocation14 + $0x2d0] sm:$0xff]  ;;  %v4500_v39 = vld [vmem:[#allocation14 + $0x6c8] sm:$0xff] }
 0x41b   :  { %v8344_v60 = vpack.c.bf16 %v4278_v32, %v4278_v32  ;;  %v6717_v32 = vcombine.high %v4285_v38, %v4289_v49  ;;  %v4377_v5 = vld [vmem:[#allocation14 + $0x2f0] sm:$0xff]  ;;  %v4504_v42 = vld [vmem:[#allocation14 + $0x6e8] sm:$0xff] }
 0x41c   :  { %5976 = vmatmul.mubr.bf16.vlgmr.msra.gmra.mxu0 %v8324_v21  ;;  %v4492_v38 = vld [vmem:[#allocation14 + $0x688] sm:$0xff] }
 0x41d   :  { %5934 = vmatprep.mubr.bf16.mxu1 %v8344_v60  ;;  %6026 = vmatpush1.bf16.msra.mxu0 %v6772_v59  ;;  %v6850_v59 = vcombine.low %v4420_v13, %v4424_v47  ;;  %v4365_v13 = vld [vmem:[#allocation14 + $0x290] sm:$0xff]  ;;  %v4496_v49 = vld [vmem:[#allocation14 + $0x6a8] sm:$0xff] }
 0x41e   :  { %6057 = vmatprep.mubr.bf16.mxu0 %v8322_v8  ;;  %5935 = vmatmul.mubr.bf16.vlgmr.msra.gmra.mxu1 %v8346_v45  ;;  %v4369_v47 = vld [vmem:[#allocation14 + $0x2b0] sm:$0xff] }
 0x41f   :  { %5985 = vmatpush1.bf16.msra.mxu1 %v6898_v56  ;;  %6016 = vmatprep.mubr.bf16.mxu1 %v8344_v60  ;;  %v4436_v56 = vld [vmem:[#allocation14 + $0x4c8] sm:$0xff] }
 0x420   :  { %6027 = vmatprep.subr.bf16.mxu0 %v6765_v11  ;;  %5986 = vmatprep.subr.bf16.mxu1 %v6891_v14  ;;  %v6867_v0 = vcombine.high %v4436_v56, %v4440_v29  ;;  %v6866_v41 = vcombine.low %v4436_v56, %v4440_v29  ;;  %v4536_v11 = vld [vmem:[#allocation14 + $0x7e8] sm:$0xff]  ;;  %v6837_v14 = vcombine.high %v4405_v61, %v4409_v43  ;;  %v4381_v56 = vld [vmem:[#allocation14 + $0x310] sm:$0xff] }
 0x421   :  { %6028 = vmatpush1.bf16.msra.mxu0 %v6764_v46  ;;  %v6842_v46 = vcombine.low %v4412_v54, %v4416_v20  ;;  %v4385_v29 = vld [vmem:[#allocation14 + $0x330] sm:$0xff] }
 0x422   :  { %6029 = vmatprep.subr.bf16.mxu0 %v6757_v34  ;;  %v6963_v34 = vcombine.high %v4532_v16, %v4536_v11  ;;  %v4357_v54 = vld [vmem:[#allocation14 + $0x250] sm:$0xff] }
 0x423   :  { %5987 = vmatpush1.bf16.msra.mxu1 %v6890_v17  ;;  %v6836_v17 = vcombine.low %v4405_v61, %v4409_v43  ;;  %v4361_v20 = vld [vmem:[#allocation14 + $0x270] sm:$0xff]  ;;  %v4484_v61 = vld [vmem:[#allocation14 + $0x648] sm:$0xff] }
 0x424   :  { %5988 = vmatprep.subr.bf16.mxu1 %v6883_v23  ;;  %v6829_v23 = vcombine.high %v4397_v40, %v4401_v9  ;;  %v4488_v43 = vld [vmem:[#allocation14 + $0x668] sm:$0xff] }
 0x425   :  { %6030 = vmatpush1.bf16.msra.mxu0 %v6756_v24  ;;  %v6962_v24 = vcombine.low %v4532_v16, %v4536_v11  ;;  %v4349_v16 = vld [vmem:[#allocation14 + $0x210] sm:$0xff] }
 0x426   :  { %6031 = vmatprep.subr.bf16.mxu0 %v6749_v26  ;;  %v6955_v26 = vcombine.high %v4524_v18, %v4528_v19  ;;  %v4353_v11 = vld [vmem:[#allocation14 + $0x230] sm:$0xff] }
 0x427   :  { %5989 = vmatpush1.bf16.msra.mxu1 %v6882_v27  ;;  %v6828_v27 = vcombine.low %v4397_v40, %v4401_v9  ;;  %v4476_v40 = vld [vmem:[#allocation14 + $0x608] sm:$0xff] }
 0x428   :  { %5990 = vmatprep.subr.bf16.mxu1 %v6875_v52  ;;  %v6821_v52 = vcombine.high %v4389_v53, %v4393_v25  ;;  %v4480_v9 = vld [vmem:[#allocation14 + $0x628] sm:$0xff] }
 0x429   :  { %6032 = vmatpush1.bf16.msra.mxu0 %v6748_v48  ;;  %v6954_v48 = vcombine.low %v4524_v18, %v4528_v19  ;;  %v4342_v18 = vld [vmem:[#allocation14 + $0x1d8] sm:$0xff] }
 0x42a   :  { %6033 = vmatprep.subr.bf16.mxu0 %v6741_v30  ;;  %v6947_v30 = vcombine.high %v4516_v28, %v4520_v35  ;;  %v4346_v19 = vld [vmem:[#allocation14 + $0x1f8] sm:$0xff] }
 0x42b   :  { %5991 = vmatpush1.bf16.msra.mxu1 %v6874_v15  ;;  %v6820_v15 = vcombine.low %v4389_v53, %v4393_v25  ;;  %v4469_v53 = vld [vmem:[#allocation14 + $0x5d0] sm:$0xff] }
 0x42c   :  { %5992 = vmatprep.subr.bf16.mxu1 %v6867_v0  ;;  %v6813_v0 = vcombine.high %v4381_v56, %v4385_v29  ;;  %v4473_v25 = vld [vmem:[#allocation14 + $0x5f0] sm:$0xff] }
 0x42d   :  { %6034 = vmatpush1.bf16.msra.mxu0 %v6740_v12  ;;  %v6946_v12 = vcombine.low %v4516_v28, %v4520_v35  ;;  %v4334_v28 = vld [vmem:[#allocation14 + $0x198] sm:$0xff] }
 0x42e   :  { %6035 = vmatprep.subr.bf16.mxu0 %v6733_v37  ;;  %v6939_v37 = vcombine.high %v4508_v33, %v4512_v36  ;;  %v4338_v35 = vld [vmem:[#allocation14 + $0x1b8] sm:$0xff] }
 0x42f   :  { %5993 = vmatpush1.bf16.msra.mxu1 %v6866_v41  ;;  %v6812_v41 = vcombine.low %v4381_v56, %v4385_v29  ;;  %v4461_v56 = vld [vmem:[#allocation14 + $0x590] sm:$0xff] }
 0x430   :  { %5994 = vmatprep.subr.bf16.mxu1 %v6859_v22  ;;  %v6805_v22 = vcombine.high %v4373_v31, %v4377_v5  ;;  %v4465_v29 = vld [vmem:[#allocation14 + $0x5b0] sm:$0xff] }
 0x431   :  { %6036 = vmatpush1.bf16.msra.mxu0 %v6732_v44  ;;  %v6938_v44 = vcombine.low %v4508_v33, %v4512_v36  ;;  %v4326_v33 = vld [vmem:[#allocation14 + $0x158] sm:$0xff] }
 0x432   :  { %6037 = vmatprep.subr.bf16.mxu0 %v6725_v63  ;;  %v6931_v63 = vcombine.high %v4500_v39, %v4504_v42  ;;  %v4330_v36 = vld [vmem:[#allocation14 + $0x178] sm:$0xff] }
 0x433   :  { %5995 = vmatpush1.bf16.msra.mxu1 %v6858_v57  ;;  %v6804_v57 = vcombine.low %v4373_v31, %v4377_v5  ;;  %v4453_v31 = vld [vmem:[#allocation14 + $0x550] sm:$0xff] }
 0x434   :  { %5996 = vmatprep.subr.bf16.mxu1 %v6851_v1  ;;  %v6797_v1 = vcombine.high %v4365_v13, %v4369_v47  ;;  %v4457_v5 = vld [vmem:[#allocation14 + $0x570] sm:$0xff] }
 0x435   :  { %6038 = vmatpush1.bf16.msra.mxu0 %v6724_v50  ;;  %v6930_v50 = vcombine.low %v4500_v39, %v4504_v42  ;;  %v4318_v39 = vld [vmem:[#allocation14 + $0x118] sm:$0xff] }
 0x436   :  { %6039 = vmatprep.subr.bf16.mxu0 %v6717_v32  ;;  %v6923_v32 = vcombine.high %v4492_v38, %v4496_v49  ;;  %v4322_v42 = vld [vmem:[#allocation14 + $0x138] sm:$0xff] }
 0x437   :  { %5997 = vmatpush1.bf16.msra.mxu1 %v6850_v59  ;;  %v6796_v59 = vcombine.low %v4365_v13, %v4369_v47  ;;  %v4445_v13 = vld [vmem:[#allocation14 + $0x510] sm:$0xff] }
 0x438   :  { %5998 = vmatprep.subr.bf16.mxu1 %v6843_v62  ;;  %v6789_v62 = vcombine.high %v4357_v54, %v4361_v20  ;;  %v4449_v47 = vld [vmem:[#allocation14 + $0x530] sm:$0xff] }
 0x439   :  { %6040 = vmatpush1.bf16.msra.mxu0 %v6716_v10  ;;  %v6922_v10 = vcombine.low %v4492_v38, %v4496_v49  ;;  %v4314_v38 = vld [vmem:[#allocation14 + $0xf8] sm:$0xff]  ;;  %v6877_v49 = vcombine.high %v4445_v13, %v4449_v47 }
 0x43a   :  { %6041 = vmatprep.subr.bf16.mxu0 %v6837_v14  ;;  %v6915_v14 = vcombine.high %v4484_v61, %v4488_v43 }
 0x43b   :  { %5999 = vmatpush1.bf16.msra.mxu1 %v6842_v46  ;;  %v6788_v46 = vcombine.low %v4357_v54, %v4361_v20  ;;  %v4441_v54 = vld [vmem:[#allocation14 + $0x4f0] sm:$0xff] }
 0x43c   :  { %6000 = vmatprep.subr.bf16.mxu1 %v6963_v34  ;;  %v6781_v34 = vcombine.high %v4349_v16, %v4353_v11 }
 0x43d   :  { %6042 = vmatpush2.bf16.msra.mxu0 %v6836_v17  ;;  %v6914_v17 = vcombine.low %v4484_v61, %v4488_v43  ;;  %v4306_v61 = vld [vmem:[#allocation14 + $0xb8] sm:$0xff] }
 0x43e   :  { %6043 = vmatprep.subr.bf16.mxu0 %v6829_v23  ;;  %v6907_v23 = vcombine.high %v4476_v40, %v4480_v9 }
 0x43f   :  { %6001 = vmatpush2.bf16.msra.mxu1 %v6962_v24  ;;  %v6780_v24 = vcombine.low %v4349_v16, %v4353_v11  ;;  %v4433_v16 = vld [vmem:[#allocation14 + $0x4b0] sm:$0xff] }
 0x440   :  { %6002 = vmatprep.subr.bf16.mxu1 %v6955_v26  ;;  %v6775_v26 = vcombine.high %v4342_v18, %v4346_v19 }
 0x441   :  { %6044 = vmatpush2.bf16.msra.mxu0 %v6828_v27  ;;  %v6906_v27 = vcombine.low %v4476_v40, %v4480_v9  ;;  %v4298_v40 = vld [vmem:[#allocation14 + $0x78] sm:$0xff] }
 0x442   :  { %6045 = vmatprep.subr.bf16.mxu0 %v6821_v52  ;;  %v6901_v52 = vcombine.high %v4469_v53, %v4473_v25 }
 0x443   :  { %6003 = vmatpush2.bf16.msra.mxu1 %v6954_v48  ;;  %v6774_v48 = vcombine.low %v4342_v18, %v4346_v19  ;;  %v4425_v18 = vld [vmem:[#allocation14 + $0x470] sm:$0xff] }
 0x444   :  { %6004 = vmatprep.subr.bf16.mxu1 %v6947_v30  ;;  %v6767_v30 = vcombine.high %v4334_v28, %v4338_v35 }
 0x445   :  { %6046 = vmatpush2.bf16.msra.mxu0 %v6820_v15  ;;  %v6900_v15 = vcombine.low %v4469_v53, %v4473_v25  ;;  %v4290_v53 = vld [vmem:[#allocation14 + $0x38] sm:$0xff] }
 0x446   :  { %6047 = vmatprep.subr.bf16.mxu0 %v6813_v0  ;;  %v6893_v0 = vcombine.high %v4461_v56, %v4465_v29 }
 0x447   :  { %6005 = vmatpush2.bf16.msra.mxu1 %v6946_v12  ;;  %v6766_v12 = vcombine.low %v4334_v28, %v4338_v35  ;;  %v4417_v28 = vld [vmem:[#allocation14 + $0x430] sm:$0xff] }
 0x448   :  { %6006 = vmatprep.subr.bf16.mxu1 %v6939_v37  ;;  %v6759_v37 = vcombine.high %v4326_v33, %v4330_v36 }
 0x449   :  { %6048 = vmatpush2.bf16.msra.mxu0 %v6812_v41  ;;  %v6892_v41 = vcombine.low %v4461_v56, %v4465_v29  ;;  %v4410_v56 = vld [vmem:[#allocation14 + $0x3f8] sm:$0xff] }
 0x44a   :  { %6049 = vmatprep.subr.bf16.mxu0 %v6805_v22  ;;  %v6885_v22 = vcombine.high %v4453_v31, %v4457_v5 }
 0x44b   :  { %6007 = vmatpush2.bf16.msra.mxu1 %v6938_v44  ;;  %v6758_v44 = vcombine.low %v4326_v33, %v4330_v36  ;;  %v4537_v33 = vld [vmem:[#allocation14 + $0x7f0] sm:$0xff] }
 0x44c   :  { %6008 = vmatprep.subr.bf16.mxu1 %v6931_v63  ;;  %v6884_v63 = vcombine.low %v4453_v31, %v4457_v5  ;;  %v4402_v31 = vld [vmem:[#allocation14 + $0x3b8] sm:$0xff] }
 0x44d   :  { %6050 = vmatpush2.bf16.msra.mxu0 %v6804_v57  ;;  %v4310_v57 = vld [vmem:[#allocation14 + $0xd8] sm:$0xff] }
 0x44e   :  { %6051 = vmatprep.subr.bf16.mxu0 %v6797_v1  ;;  %v6750_v1 = vcombine.low %v4318_v39, %v4322_v42  ;;  %v6743_v20 = vcombine.high %v4310_v57, %v4314_v38 }
 0x44f   :  { %6009 = vmatpush2.bf16.msra.mxu1 %v6930_v50  ;;  %v4437_v50 = vld [vmem:[#allocation14 + $0x4d0] sm:$0xff] }
 0x450   :  { %6010 = vmatprep.subr.bf16.mxu1 %v6923_v32  ;;  %v6876_v32 = vcombine.low %v4445_v13, %v4449_v47  ;;  %v6869_v43 = vcombine.high %v4437_v50, %v4441_v54  ;;  %v4394_v13 = vld [vmem:[#allocation14 + $0x378] sm:$0xff] }
 0x451   :  { %6052 = vmatpush2.bf16.msra.mxu0 %v6796_v59  ;;  %v4302_v59 = vld [vmem:[#allocation14 + $0x98] sm:$0xff] }
 0x452   :  { %6053 = vmatprep.subr.bf16.mxu0 %v6789_v62  ;;  %v6742_v62 = vcombine.low %v4310_v57, %v4314_v38  ;;  %v6735_v11 = vcombine.high %v4302_v59, %v4306_v61  ;;  %v4521_v57 = vld [vmem:[#allocation14 + $0x770] sm:$0xff] }
 0x453   :  { %6011 = vmatpush2.bf16.msra.mxu1 %v6922_v10  ;;  %v4429_v10 = vld [vmem:[#allocation14 + $0x490] sm:$0xff] }
 0x454   :  { %6012 = vmatprep.subr.bf16.mxu1 %v6915_v14  ;;  %v6868_v14 = vcombine.low %v4437_v50, %v4441_v54  ;;  %v6861_v9 = vcombine.high %v4429_v10, %v4433_v16  ;;  %v4386_v50 = vld [vmem:[#allocation14 + $0x338] sm:$0xff] }
 0x455   :  { %6054 = vmatpush2.bf16.msra.mxu0 %v6788_v46  ;;  %v4294_v46 = vld [vmem:[#allocation14 + $0x58] sm:$0xff] }
 0x456   :  { %6055 = vmatprep.subr.bf16.mxu0 %v6781_v34  ;;  %v6734_v34 = vcombine.low %v4302_v59, %v4306_v61  ;;  %v6727_v19 = vcombine.high %v4294_v46, %v4298_v40  ;;  %v4513_v59 = vld [vmem:[#allocation14 + $0x730] sm:$0xff] }
 0x457   :  { %6013 = vmatpush2.bf16.msra.mxu1 %v6914_v17  ;;  %v4421_v17 = vld [vmem:[#allocation14 + $0x450] sm:$0xff] }
 0x458   :  { %6014 = vmatprep.subr.bf16.mxu1 %v6907_v23  ;;  %v6860_v23 = vcombine.low %v4429_v10, %v4433_v16  ;;  %v6853_v25 = vcombine.high %v4421_v17, %v4425_v18  ;;  %v4378_v10 = vld [vmem:[#allocation14 + $0x2f8] sm:$0xff] }
 0x459   :  { %6056 = vmatpush2.bf16.msra.mxu0 %v6780_v24  ;;  %v4286_v24 = vld [vmem:[#allocation14 + $0x18] sm:$0xff] }
 0x45a   :  { %6107 = vmatprep.subr.bf16.mxu0 %v6775_v26  ;;  %v6726_v26 = vcombine.low %v4294_v46, %v4298_v40  ;;  %v6719_v35 = vcombine.high %v4286_v24, %v4290_v53  ;;  %v4505_v46 = vld [vmem:[#allocation14 + $0x6f0] sm:$0xff] }
 0x45b   :  { %6015 = vmatpush2.bf16.msra.mxu1 %v6906_v27  ;;  %v4413_v27 = vld [vmem:[#allocation14 + $0x410] sm:$0xff] }
 0x45c   :  { %6058 = vmatmul.mubr.bf16.vlgmr.msra.gmra.mxu0 %v8324_v21  ;;  %6066 = vmatprep.subr.bf16.mxu1 %v6901_v52  ;;  %v6852_v52 = vcombine.low %v4421_v17, %v4425_v18  ;;  %v6845_v29 = vcombine.high %v4413_v27, %v4417_v28  ;;  %v4370_v17 = vld [vmem:[#allocation14 + $0x2b8] sm:$0xff] }
 0x45d   :  { %6108 = vmatpush1.bf16.msra.mxu0 %v6774_v48  ;;  %6139 = vmatprep.mubr.bf16.mxu0 %v8322_v8  ;;  %v6751_v8 = vcombine.high %v4318_v39, %v4322_v42  ;;  %v4406_v48 = vld [vmem:[#allocation14 + $0x3d8] sm:$0xff]  ;;  %v4529_v39 = vld [vmem:[#allocation14 + $0x7b0] sm:$0xff] }
 0x45e   :  { %6017 = vmatmul.mubr.bf16.vlgmr.msra.gmra.mxu1 %v8346_v45  ;;  %6109 = vmatprep.subr.bf16.mxu0 %v6767_v30  ;;  %v6718_v30 = vcombine.low %v4286_v24, %v4290_v53  ;;  %v6839_v36 = vcombine.high %v4406_v48, %v4410_v56  ;;  %v4497_v24 = vld [vmem:[#allocation14 + $0x6b0] sm:$0xff] }
 0x45f   :  { %6067 = vmatpush1.bf16.msra.mxu1 %v6900_v15  ;;  %6098 = vmatprep.mubr.bf16.mxu1 %v8344_v60  ;;  %v4533_v15 = vld [vmem:[#allocation14 + $0x7d0] sm:$0xff] }
 0x460   :  { %6068 = vmatprep.subr.bf16.mxu1 %v6893_v0  ;;  %v6844_v0 = vcombine.low %v4413_v27, %v4417_v28  ;;  %v6965_v5 = vcombine.high %v4533_v15, %v4537_v33  ;;  %v4362_v27 = vld [vmem:[#allocation14 + $0x278] sm:$0xff] }
 0x461   :  { %6110 = vmatpush1.bf16.msra.mxu0 %v6766_v12  ;;  %v4398_v12 = vld [vmem:[#allocation14 + $0x398] sm:$0xff] }
 0x462   :  { %6111 = vmatprep.subr.bf16.mxu0 %v6759_v37  ;;  %v6838_v37 = vcombine.low %v4406_v48, %v4410_v56  ;;  %v6831_v42 = vcombine.high %v4398_v12, %v4402_v31  ;;  %v4489_v48 = vld [vmem:[#allocation14 + $0x670] sm:$0xff] }
 0x463   :  { %6069 = vmatpush1.bf16.msra.mxu1 %v6892_v41  ;;  %v4525_v41 = vld [vmem:[#allocation14 + $0x790] sm:$0xff] }
 0x464   :  { %6070 = vmatprep.subr.bf16.mxu1 %v6885_v22  ;;  %v6964_v22 = vcombine.low %v4533_v15, %v4537_v33  ;;  %v6957_v47 = vcombine.high %v4525_v41, %v4529_v39  ;;  %v4354_v15 = vld [vmem:[#allocation14 + $0x238] sm:$0xff] }
 0x465   :  { %6112 = vmatpush1.bf16.msra.mxu0 %v6758_v44  ;;  %v4390_v44 = vld [vmem:[#allocation14 + $0x358] sm:$0xff] }
 0x466   :  { %6113 = vmatprep.subr.bf16.mxu0 %v6751_v8  ;;  %v6830_v8 = vcombine.low %v4398_v12, %v4402_v31  ;;  %v6823_v38 = vcombine.high %v4390_v44, %v4394_v13  ;;  %v4481_v12 = vld [vmem:[#allocation14 + $0x630] sm:$0xff] }
 0x467   :  { %6071 = vmatpush1.bf16.msra.mxu1 %v6884_v63  ;;  %v4517_v63 = vld [vmem:[#allocation14 + $0x750] sm:$0xff] }
 0x468   :  { %6072 = vmatprep.subr.bf16.mxu1 %v6877_v49  ;;  %v6956_v49 = vcombine.low %v4525_v41, %v4529_v39  ;;  %v6949_v54 = vcombine.high %v4517_v63, %v4521_v57  ;;  %v4470_v39 = vld [vmem:[#allocation14 + $0x5d8] sm:$0xff] }
 0x469   :  { %6114 = vmatpush1.bf16.msra.mxu0 %v6750_v1  ;;  %v4382_v1 = vld [vmem:[#allocation14 + $0x318] sm:$0xff] }
 0x46a   :  { %6115 = vmatprep.subr.bf16.mxu0 %v6743_v20  ;;  %v6822_v20 = vcombine.low %v4390_v44, %v4394_v13  ;;  %v6815_v61 = vcombine.high %v4382_v1, %v4386_v50  ;;  %v4462_v13 = vld [vmem:[#allocation14 + $0x598] sm:$0xff] }
 0x46b   :  { %6073 = vmatpush1.bf16.msra.mxu1 %v6876_v32  ;;  %v4509_v32 = vld [vmem:[#allocation14 + $0x710] sm:$0xff] }
 0x46c   :  { %6074 = vmatprep.subr.bf16.mxu1 %v6869_v43  ;;  %v6948_v43 = vcombine.low %v4517_v63, %v4521_v57  ;;  %v6941_v16 = vcombine.high %v4509_v32, %v4513_v59 }
 0x46d   :  { %6116 = vmatpush1.bf16.msra.mxu0 %v6742_v62  ;;  %v4374_v62 = vld [vmem:[#allocation14 + $0x2d8] sm:$0xff] }
 0x46e   :  { %6117 = vmatprep.subr.bf16.mxu0 %v6735_v11  ;;  %v6814_v11 = vcombine.low %v4382_v1, %v4386_v50  ;;  %v6807_v40 = vcombine.high %v4374_v62, %v4378_v10 }
 0x46f   :  { %6075 = vmatpush1.bf16.msra.mxu1 %v6868_v14  ;;  %v4501_v14 = vld [vmem:[#allocation14 + $0x6d0] sm:$0xff] }
 0x470   :  { %6076 = vmatprep.subr.bf16.mxu1 %v6861_v9  ;;  %v6940_v9 = vcombine.low %v4509_v32, %v4513_v59  ;;  %v6933_v18 = vcombine.high %v4501_v14, %v4505_v46  ;;  %v4446_v32 = vld [vmem:[#allocation14 + $0x518] sm:$0xff] }
 0x471   :  { %6118 = vmatpush1.bf16.msra.mxu0 %v6734_v34  ;;  %v4366_v34 = vld [vmem:[#allocation14 + $0x298] sm:$0xff] }
 0x472   :  { %6119 = vmatprep.subr.bf16.mxu0 %v6727_v19  ;;  %v6806_v19 = vcombine.low %v4374_v62, %v4378_v10  ;;  %v6799_v53 = vcombine.high %v4366_v34, %v4370_v17  ;;  %v4450_v59 = vld [vmem:[#allocation14 + $0x538] sm:$0xff] }
 0x473   :  { %6077 = vmatpush1.bf16.msra.mxu1 %v6860_v23  ;;  %v4493_v23 = vld [vmem:[#allocation14 + $0x690] sm:$0xff]  ;;  %v4438_v62 = vld [vmem:[#allocation14 + $0x4d8] sm:$0xff] }
 0x474   :  { %6078 = vmatprep.subr.bf16.mxu1 %v6853_v25  ;;  %v6932_v25 = vcombine.low %v4501_v14, %v4505_v46  ;;  %v6925_v28 = vcombine.high %v4493_v23, %v4497_v24  ;;  %v4442_v10 = vld [vmem:[#allocation14 + $0x4f8] sm:$0xff] }
 0x475   :  { %6120 = vmatpush1.bf16.msra.mxu0 %v6726_v26  ;;  %v4358_v26 = vld [vmem:[#allocation14 + $0x258] sm:$0xff] }
 0x476   :  { %6121 = vmatprep.subr.bf16.mxu0 %v6719_v35  ;;  %v6798_v35 = vcombine.low %v4366_v34, %v4370_v17  ;;  %v6791_v56 = vcombine.high %v4358_v26, %v4362_v27  ;;  %v4430_v14 = vld [vmem:[#allocation14 + $0x498] sm:$0xff] }
 0x477   :  { %6079 = vmatpush1.bf16.msra.mxu1 %v6852_v52  ;;  %v4485_v52 = vld [vmem:[#allocation14 + $0x650] sm:$0xff]  ;;  %v4434_v46 = vld [vmem:[#allocation14 + $0x4b8] sm:$0xff] }
 0x478   :  { %6080 = vmatprep.subr.bf16.mxu1 %v6845_v29  ;;  %v6924_v29 = vcombine.low %v4493_v23, %v4497_v24  ;;  %v6917_v33 = vcombine.high %v4485_v52, %v4489_v48  ;;  %v4426_v34 = vld [vmem:[#allocation14 + $0x478] sm:$0xff]  ;;  %v6862_v17 = vcombine.low %v4430_v14, %v4434_v46 }
 0x479   :  { %6122 = vmatpush1.bf16.msra.mxu0 %v6718_v30  ;;  %v4350_v30 = vld [vmem:[#allocation14 + $0x218] sm:$0xff] }
 0x47a   :  { %6123 = vmatprep.subr.bf16.mxu0 %v6839_v36  ;;  %v6790_v36 = vcombine.low %v4358_v26, %v4362_v27  ;;  %v6783_v31 = vcombine.high %v4350_v30, %v4354_v15  ;;  %v6782_v41 = vcombine.low %v4350_v30, %v4354_v15  ;;  %v4418_v23 = vld [vmem:[#allocation14 + $0x438] sm:$0xff] }
 0x47b   :  { %6081 = vmatpush1.bf16.msra.mxu1 %v6844_v0  ;;  %v4477_v0 = vld [vmem:[#allocation14 + $0x610] sm:$0xff]  ;;  %v4538_v26 = vld [vmem:[#allocation14 + $0x7f8] sm:$0xff] }
 0x47c   :  { %6082 = vmatprep.subr.bf16.mxu1 %v6965_v5  ;;  %v6916_v5 = vcombine.low %v4485_v52, %v4489_v48  ;;  %v4530_v52 = vld [vmem:[#allocation14 + $0x7b8] sm:$0xff] }
 0x47d   :  { %6124 = vmatpush2.bf16.msra.mxu0 %v6838_v37  ;;  %v6909_v37 = vcombine.high %v4477_v0, %v4481_v12  ;;  %v4522_v30 = vld [vmem:[#allocation14 + $0x778] sm:$0xff] }
 0x47e   :  { %6125 = vmatprep.subr.bf16.mxu0 %v6831_v42  ;;  %v4474_v42 = vld [vmem:[#allocation14 + $0x5f8] sm:$0xff] }
 0x47f   :  { %6083 = vmatpush2.bf16.msra.mxu1 %v6964_v22  ;;  %v6908_v22 = vcombine.low %v4477_v0, %v4481_v12  ;;  %v6903_v44 = vcombine.high %v4470_v39, %v4474_v42  ;;  %v4514_v0 = vld [vmem:[#allocation14 + $0x738] sm:$0xff] }
 0x480   :  { %6084 = vmatprep.subr.bf16.mxu1 %v6957_v47  ;;  %v4466_v47 = vld [vmem:[#allocation14 + $0x5b8] sm:$0xff] }
 0x481   :  { %6126 = vmatpush2.bf16.msra.mxu0 %v6830_v8  ;;  %v6902_v8 = vcombine.low %v4470_v39, %v4474_v42  ;;  %v6895_v57 = vcombine.high %v4462_v13, %v4466_v47  ;;  %v6894_v50 = vcombine.low %v4462_v13, %v4466_v47  ;;  %v4494_v42 = vld [vmem:[#allocation14 + $0x698] sm:$0xff] }
 0x482   :  { %6127 = vmatprep.subr.bf16.mxu0 %v6823_v38  ;;  %v4454_v38 = vld [vmem:[#allocation14 + $0x558] sm:$0xff] }
 0x483   :  { %6085 = vmatpush2.bf16.msra.mxu1 %v6956_v49  ;;  %v4458_v49 = vld [vmem:[#allocation14 + $0x578] sm:$0xff] }
 0x484   :  { %6086 = vmatprep.subr.bf16.mxu1 %v6949_v54  ;;  %v4486_v47 = vld [vmem:[#allocation14 + $0x658] sm:$0xff] }
 0x485   :  { %6128 = vmatpush2.bf16.msra.mxu0 %v6822_v20  ;;  %v6887_v20 = vcombine.high %v4454_v38, %v4458_v49 }
 0x486   :  { %6129 = vmatprep.subr.bf16.mxu0 %v6815_v61  ;;  %v6886_v61 = vcombine.low %v4454_v38, %v4458_v49  ;;  %v4478_v49 = vld [vmem:[#allocation14 + $0x618] sm:$0xff] }
 0x487   :  { %6087 = vmatpush2.bf16.msra.mxu1 %v6948_v43  ;;  %v6879_v43 = vcombine.high %v4446_v32, %v4450_v59 }
 0x488   :  { %6088 = vmatprep.subr.bf16.mxu1 %v6941_v16  ;;  %v6878_v16 = vcombine.low %v4446_v32, %v4450_v59  ;;  %v4539_v32 = vld [vmem:[#allocation16] sm:$0xff] }
 0x489   :  { %6130 = vmatpush2.bf16.msra.mxu0 %v6814_v11  ;;  %v6871_v11 = vcombine.high %v4438_v62, %v4442_v10 }
 0x48a   :  { %6131 = vmatprep.subr.bf16.mxu0 %v6807_v40  ;;  %v6863_v40 = vcombine.high %v4430_v14, %v4434_v46 }
 0x48b   :  { %6089 = vmatpush2.bf16.msra.mxu1 %v6940_v9  ;;  %v4422_v9 = vld [vmem:[#allocation14 + $0x458] sm:$0xff] }
 0x48c   :  { %6090 = vmatprep.subr.bf16.mxu1 %v6933_v18  ;;  %v6855_v18 = vcombine.high %v4422_v9, %v4426_v34  ;;  %v6854_v24 = vcombine.low %v4422_v9, %v4426_v34 }
 0x48d   :  { %6132 = vmatpush2.bf16.msra.mxu0 %v6806_v19  ;;  %v4414_v19 = vld [vmem:[#allocation14 + $0x418] sm:$0xff] }
 0x48e   :  { %6133 = vmatprep.subr.bf16.mxu0 %v6799_v53  ;;  %v6847_v53 = vcombine.high %v4414_v19, %v4418_v23  ;;  %v6846_v27 = vcombine.low %v4414_v19, %v4418_v23 }
 0x48f   :  { %6091 = vmatpush2.bf16.msra.mxu1 %v6932_v25  ;;  %v4534_v25 = vld [vmem:[#allocation14 + $0x7d8] sm:$0xff] }
 0x490   :  { %6092 = vmatprep.subr.bf16.mxu1 %v6925_v28  ;;  %v6967_v28 = vcombine.high %v4534_v25, %v4538_v26  ;;  %v6966_v48 = vcombine.low %v4534_v25, %v4538_v26 }
 0x491   :  { %6134 = vmatpush2.bf16.msra.mxu0 %v6798_v35  ;;  %v4526_v35 = vld [vmem:[#allocation14 + $0x798] sm:$0xff] }
 0x492   :  { %6135 = vmatprep.subr.bf16.mxu0 %v6791_v56  ;;  %v6959_v56 = vcombine.high %v4526_v35, %v4530_v52  ;;  %v6958_v15 = vcombine.low %v4526_v35, %v4530_v52  ;;  %v4560_v35 = vrot.slane %v4539_v32, %v8209_v51  ;;  %v4568_v51 = vrot.slane %v4539_v32, %v240_v55 }
 0x493   :  { %6093 = vmatpush2.bf16.msra.mxu1 %v6924_v29  ;;  %v4518_v29 = vld [vmem:[#allocation14 + $0x758] sm:$0xff] }
 0x494   :  { %6094 = vmatprep.subr.bf16.mxu1 %v6917_v33  ;;  %v6951_v33 = vcombine.high %v4518_v29, %v4522_v30  ;;  %v6950_v12 = vcombine.low %v4518_v29, %v4522_v30 }
 0x495   :  { %6136 = vmatpush2.bf16.msra.mxu0 %v6790_v36  ;;  %v4510_v36 = vld [vmem:[#allocation14 + $0x718] sm:$0xff] }
 0x496   :  { %6137 = vmatprep.subr.bf16.mxu0 %v6783_v31  ;;  %v6943_v31 = vcombine.high %v4510_v36, %v4514_v0 }
 0x497   :  { %6095 = vmatpush2.bf16.msra.mxu1 %v6916_v5  ;;  %v4502_v5 = vld [vmem:[#allocation14 + $0x6d8] sm:$0xff] }
 0x498   :  { %6096 = vmatprep.subr.bf16.mxu1 %v6909_v37  ;;  %v4506_v37 = vld [vmem:[#allocation14 + $0x6f8] sm:$0xff] }
 0x499   :  { %6138 = vmatpush2.bf16.msra.mxu0 %v6782_v41  ;;  %v6942_v41 = vcombine.low %v4510_v36, %v4514_v0  ;;  %v6935_v39 = vcombine.high %v4502_v5, %v4506_v37 }
 0x49b   :  { %6097 = vmatpush2.bf16.msra.mxu1 %v6908_v22  ;;  %v4498_v22 = vld [vmem:[#allocation14 + $0x6b8] sm:$0xff] }
 0x49c   :  { %6140 = vmatmul.mubr.bf16.vlgmr.msra.gmra.mxu0 %v8324_v21  ;;  %v8361_v63 = vpop.f32.mrf.mxu0  ;;  %6148 = vmatprep.subr.bf16.mxu1 %v6903_v44  ;;  %v6934_v44 = vcombine.low %v4502_v5, %v4506_v37  ;;  %v6927_v13 = vcombine.high %v4494_v42, %v4498_v22  ;;  %v4571_v5 = vsub.s32 7, %v8154_v2 }
 0x49e   :  { %6099 = vmatmul.mubr.bf16.vlgmr.msra.gmra.mxu1 %v8346_v45  ;;  %v8364_v1 = vpop.f32.mrf.mxu0 }
 0x49f   :  { %6149 = vmatpush1.bf16.msra.mxu1 %v6902_v8  ;;  %6180 = vmatprep.mubr.bf16.mxu1 %v8344_v60  ;;  %v6870_v60 = vcombine.low %v4438_v62, %v4442_v10  ;;  %v4490_v8 = vld [vmem:[#allocation14 + $0x678] sm:$0xff] }
 0x4a0   :  { %v5899_v54 = vpop.f32.mrf.mxu0  ;;  %6150 = vmatprep.subr.bf16.mxu1 %v6895_v57  ;;  %v6926_v57 = vcombine.low %v4494_v42, %v4498_v22  ;;  %v6919_v38 = vcombine.high %v4486_v47, %v4490_v8 }
 0x4a1   :  { %v6918_v54 = vcombine.low %v4486_v47, %v4490_v8 }
 0x4a2   :  { %v5900_v21 = vpop.f32.mrf.mxu0 }
 0x4a3   :  { %6151 = vmatpush1.bf16.msra.mxu1 %v6894_v50  ;;  %v4482_v50 = vld [vmem:[#allocation14 + $0x638] sm:$0xff]  ;;  %v4544_v21 = vrot.slane %v4539_v32, %v8157_v3 }
 0x4a4   :  { %6152 = vmatprep.subr.bf16.mxu1 %v6887_v20  ;;  %v6911_v20 = vcombine.high %v4478_v49, %v4482_v50  ;;  %v6910_v59 = vcombine.low %v4478_v49, %v4482_v50 }
 0x4a5   :  { %v5896_v62 = vadd.f32 %v8361_v63, %v4544_v21 }
 0x4a7   :  { %6153 = vmatpush1.bf16.msra.mxu1 %v6886_v61  ;;  %v4548_v61 = vrot.slane %v4539_v32, %v8165_v6  ;;  %v4552_v6 = vrot.slane %v4539_v32, %v8160_v4  ;;  %v4564_v4 = vrot.slane %v4539_v32, %v236_v58  ;;  %v4572_v58 = vrot.slane %v4539_v32, %v4571_v5 }
 0x4a8   :  { %6154 = vmatprep.subr.bf16.mxu1 %v6879_v43 }
 0x4ab   :  { %6155 = vmatpush1.bf16.msra.mxu1 %v6878_v16 }
 0x4ac   :  { %6156 = vmatprep.subr.bf16.mxu1 %v6871_v11  ;;  %v5898_v11 = vadd.f32 %v8364_v1, %v4548_v61 }
 0x4af   :  { %6157 = vmatpush1.bf16.msra.mxu1 %v6870_v60 }
 0x4b0   :  { %6158 = vmatprep.subr.bf16.mxu1 %v6863_v40 }
 0x4b3   :  { %6159 = vmatpush1.bf16.msra.mxu1 %v6862_v17  ;;  %v4556_v17 = vrot.slane %v4539_v32, %v8168_v7 }
 0x4b4   :  { %6160 = vmatprep.subr.bf16.mxu1 %v6855_v18 }
 0x4b7   :  { %6161 = vmatpush1.bf16.msra.mxu1 %v6854_v24 }
 0x4b8   :  { %6162 = vmatprep.subr.bf16.mxu1 %v6847_v53 }
 0x4bb   :  { %6163 = vmatpush1.bf16.msra.mxu1 %v6846_v27 }
 0x4bc   :  { %6164 = vmatprep.subr.bf16.mxu1 %v6967_v28 }
 0x4bf   :  { %6165 = vmatpush2.bf16.msra.mxu1 %v6966_v48 }
 0x4c0   :  { %6166 = vmatprep.subr.bf16.mxu1 %v6959_v56 }
 0x4c3   :  { %6167 = vmatpush2.bf16.msra.mxu1 %v6958_v15 }
 0x4c4   :  { %6168 = vmatprep.subr.bf16.mxu1 %v6951_v33 }
 0x4c7   :  { %6169 = vmatpush2.bf16.msra.mxu1 %v6950_v12 }
 0x4c8   :  { %6170 = vmatprep.subr.bf16.mxu1 %v6943_v31 }
 0x4cb   :  { %6171 = vmatpush2.bf16.msra.mxu1 %v6942_v41 }
 0x4cc   :  { %6172 = vmatprep.subr.bf16.mxu1 %v6935_v39 }
 0x4cf   :  { %6173 = vmatpush2.bf16.msra.mxu1 %v6934_v44 }
 0x4d0   :  { %6174 = vmatprep.subr.bf16.mxu1 %v6927_v13 }
 0x4d3   :  { %6175 = vmatpush2.bf16.msra.mxu1 %v6926_v57 }
 0x4d4   :  { %6176 = vmatprep.subr.bf16.mxu1 %v6919_v38 }
 0x4d7   :  { %6177 = vmatpush2.bf16.msra.mxu1 %v6918_v54 }
 0x4d8   :  { %6178 = vmatprep.subr.bf16.mxu1 %v6911_v20 }
 0x4db   :  { %6179 = vmatpush2.bf16.msra.mxu1 %v6910_v59 }
 0x4dc   :  { %v5977_v43 = vpop.f32.mrf.mxu0 }
 0x4dd   :  { %v5978_v18 = vadd.f32 %v5977_v43, %v4552_v6 }
 0x4de   :  { %6181 = vmatmul.mubr.bf16.vlgmr.msra.gmra.mxu1 %v8346_v45  ;;  %v5936_v10 = vpop.f32.mrf.mxu1  ;;  %v5979_v16 = vpop.f32.mrf.mxu0 }
 0x4df   :  { %v5937_v14 = vadd.f32 %v5936_v10, %v5896_v62  ;;  %v5980_v23 = vadd.f32 %v5979_v16, %v4556_v17 }
 0x4e0   :  { %v5938_v46 = vpop.f32.mrf.mxu1  ;;  %v5981_v60 = vpop.f32.mrf.mxu0 }
 0x4e1   :  { %6189 = vst [vmem:[#allocation17] sm:$0xff] %v5937_v14  ;;  %v5939_v40 = vadd.f32 %v5938_v46, %v5898_v11 }
 0x4e2   :  { %v5940_v9 = vpop.f32.mrf.mxu1  ;;  %v5982_v34 = vpop.f32.mrf.mxu0 }
 0x4e3   :  { %6190 = vst [vmem:[#allocation17 + $0x8] sm:$0xff] %v5939_v40 }
 0x4e4   :  { %v5941_v3 = vpop.f32.mrf.mxu1 }
 0x51c   :  { %v6059_v63 = vpop.f32.mrf.mxu0 }
 0x51d   :  { %v6060_v52 = vadd.f32 %v6059_v63, %v4560_v35 }
 0x51e   :  { %v6018_v45 = vpop.f32.mrf.mxu1  ;;  %v6061_v19 = vpop.f32.mrf.mxu0 }
 0x51f   :  { %v6019_v24 = vadd.f32 %v6018_v45, %v5978_v18  ;;  %v6062_v29 = vadd.f32 %v6061_v19, %v4564_v4 }
 0x520   :  { %v6020_v1 = vpop.f32.mrf.mxu1  ;;  %v6063_v53 = vpop.f32.mrf.mxu0 }
 0x521   :  { %6191 = vst [vmem:[#allocation17 + $0x10] sm:$0xff] %v6019_v24  ;;  %v6021_v25 = vadd.f32 %v6020_v1, %v5980_v23 }
 0x522   :  { %v6022_v26 = vpop.f32.mrf.mxu1  ;;  %v6064_v27 = vpop.f32.mrf.mxu0 }
 0x523   :  { %6192 = vst [vmem:[#allocation17 + $0x18] sm:$0xff] %v6021_v25 }
 0x524   :  { %v6023_v28 = vpop.f32.mrf.mxu1 }
 0x55c   :  { %v6141_v7 = vpop.f32.mrf.mxu0 }
 0x55d   :  { %v6142_v37 = vadd.f32 %v6141_v7, %v4568_v51 }
 0x55e   :  { %v6100_v48 = vpop.f32.mrf.mxu1  ;;  %v6143_v56 = vpop.f32.mrf.mxu0 }
 0x55f   :  { %v6101_v30 = vadd.f32 %v6100_v48, %v6060_v52  ;;  %v6144_v39 = vadd.f32 %v6143_v56, %v4572_v58 }
 0x560   :  { %v6102_v15 = vpop.f32.mrf.mxu1  ;;  %v6145_v33 = vpop.f32.mrf.mxu0 }
 0x561   :  { %6193 = vst [vmem:[#allocation17 + $0x20] sm:$0xff] %v6101_v30  ;;  %v6103_v36 = vadd.f32 %v6102_v15, %v6062_v29 }
 0x562   :  { %v6104_v0 = vpop.f32.mrf.mxu1  ;;  %v6146_v12 = vpop.f32.mrf.mxu0 }
 0x563   :  { %6194 = vst [vmem:[#allocation17 + $0x28] sm:$0xff] %v6103_v36 }
 0x564   :  { %v6105_v31 = vpop.f32.mrf.mxu1 }
 0x59e   :  { %v6182_v41 = vpop.f32.mrf.mxu1 }
 0x59f   :  { %v6183_v42 = vadd.f32 %v6182_v41, %v6142_v37 }
 0x5a0   :  { %v6184_v22 = vpop.f32.mrf.mxu1 }
 0x5a1   :  { %6195 = vst [vmem:[#allocation17 + $0x30] sm:$0xff] %v6183_v42  ;;  %v6185_v44 = vadd.f32 %v6184_v22, %v6144_v39 }
 0x5a2   :  { %v6186_v13 = vpop.f32.mrf.mxu1 }
 0x5a3   :  { %6196 = vst [vmem:[#allocation17 + $0x38] sm:$0xff] %v6185_v44 }
 0x5a4   :  { %v6187_v47 = vpop.f32.mrf.mxu1 }
 0x5a5   :  { %8016 = shalt.err (!%p8013_p7)
}
 0x5a6   :  { %6206 = dma.vmem_to_hbm [thread:$0]  %s6204_s8, 1024, %s8392_s9, [#allocation4]  }
 0x5a7   :  { %8035 = dma.done.wait [#allocation4], 1024  }
 0x5a8   :  { %8036 = vsyncadd [#allocation4], 4294966272 }
 0x5a9   :  { %6210 = vsyncpa [#allocation3], 1 }
 0x5aa   :  { %6211 = vsyncpa [#allocation6], 1 }
 0x5ab   :  { %6212 = vsyncpa [#allocation9], 1 }
 0x5ac   :  { %6213 = vsyncpa [#allocation12], 1 }
 0x5ad   :  { %6214 = vsyncpa [#allocation15], 1 }
 0x5ae   :  { %6215 = vsyncpa [#allocation4], 1 }

</bundles_post_ra>
